<compile_context>
chip_gen: v7x
topology: tpu7x:2x2x1
jax: 0.10.0
libtpu: 0.0.40
codegen_flags: <defaults>
</compile_context>

<pallas_src>
import jax
import jax.numpy as jnp
from jax import lax
from jax.experimental import pallas as pl
from jax.experimental.pallas import tpu as pltpu

N_INPUT = 1
N_H1 = 64
N_H2 = 32
N_OUT = 1
G1 = 4 * N_H1   # 256 gate lanes, layer 1
G2 = 4 * N_H2   # 128 gate lanes, layer 2


def _gate_math(gates, c, H):
    """LSTM cell update. `gates` laid out [i, f, o, g] along the last axis."""
    s = jax.nn.sigmoid(gates[:, : 3 * H])       # one EUP launch covers i, f, o
    i = s[:, :H]
    f = s[:, H:2 * H]
    o = s[:, 2 * H:]
    g = jnp.tanh(gates[:, 3 * H:])              # one EUP launch for g
    c_new = f * c + i * g
    h_new = o * jnp.tanh(c_new)
    return h_new, c_new


def lstm_sim_kernel(x_ref, w1_ref, w2_ref, misc_ref, o_ref, gx1_ref, h2_all_ref):
    T, B = x_ref.shape[0], x_ref.shape[1]

    # ---- unpack the small-parameter slab (one-time, off the hot loop) ----
    misc = misc_ref[...]                          # (3, G1) f32
    wih1 = misc[0:1, :]                           # (1, G1)  layer-1 input row
    b1 = misc[1:2, :]                             # (1, G1)  b_ih1 + b_hh1
    b2 = misc[2:3, :G2]                           # (1, G2)  b_ih2 + b_hh2
    wlin = misc[2:3, G2:G2 + N_H2]                # (1, H2)  linear head row
    blin = misc[2:3, G2 + N_H2:G2 + N_H2 + 1]     # (1, 1)

    # bf16 recurrent weights, held as values across the unrolled loop
    # (~8 + 6 vregs; reload inside step() instead if a bundle dump shows spills).
    w1 = w1_ref[...]                              # (H1, 4*H1)     bf16
    w2 = w2_ref[...]                              # (H1+H2, 4*H2)  bf16 (fused)
    b2b = jnp.broadcast_to(b2, (B, G2))           # hoisted broadcast (1 vreg)

    # ---- non-recurrent layer-1 input projection for ALL timesteps, in-kernel:
    # N_INPUT == 1 -> pure VPU broadcast-multiply + bias, off the serial path.
    gx1_ref[...] = x_ref[...] * wih1[None, :, :] + b1[None, :, :]

    def step(t, carry):
        h1, c1, h2, c2 = carry
        # layer 1: only the recurrent h @ W_hh matmul stays on the serial path.
        g1 = gx1_ref[t] + jnp.dot(h1.astype(jnp.bfloat16), w1,
                                  preferred_element_type=jnp.float32)
        h1, c1 = _gate_math(g1, c1, N_H1)
        # layer 2: single fused matmul  [h1_new | h2_prev] @ [wih2 ; whh2].
        h12 = jnp.concatenate([h1, h2], axis=-1).astype(jnp.bfloat16)   # (B, 96)
        g2 = jnp.dot(h12, w2, preferred_element_type=jnp.float32) + b2b
        h2, c2 = _gate_math(g2, c2, N_H2)
        h2_all_ref[t] = h2
        return (h1, c1, h2, c2)

    z1 = jnp.zeros((B, N_H1), jnp.float32)
    z2 = jnp.zeros((B, N_H2), jnp.float32)
    lax.fori_loop(0, T, step, (z1, z1, z2, z2), unroll=True)

    # Batched linear head (N_OUT == 1): VPU multiply + lane reduce over the
    # whole h2 history at once, then a single bulk write of the (T, B) output.
    out = jnp.sum(h2_all_ref[...] * wlin[None, :, :], axis=-1) + blin
    o_ref[...] = out.astype(o_ref.dtype)


@jax.jit
def lstm_simulator_forward(x, params):
    """x: (T, B, 1) float32. Returns (T, B, 1) float32."""
    T, B, _ = x.shape
    assert B % 8 == 0, "batch must be a multiple of 8 (one full sublane group)"
    w1, w2, misc = params

    vmem = pl.BlockSpec(memory_space=pltpu.MemorySpace.VMEM)
    # NOTE(v7x): for B >= 16 add grid=(2,) over batch blocks with
    # dimension_semantics=("parallel",) to use the second TensorCore.
    out2d = pl.pallas_call(
        lstm_sim_kernel,
        out_shape=jax.ShapeDtypeStruct((T, B), jnp.float32),
        in_specs=[vmem] * 4,
        out_specs=vmem,
        scratch_shapes=[
            pltpu.VMEM((T, B, G1), jnp.float32),     # gx1: hoisted input proj
            pltpu.VMEM((T, B, N_H2), jnp.float32),   # h2 history for the head
        ],
    )(x, w1, w2, misc)
    return out2d[..., None]


def _ifgo_to_ifog(w, H):
    """Permute PyTorch gate-row order [i, f, g, o] -> kernel order [i, f, o, g]."""
    i, f, g, o = w[:H], w[H:2 * H], w[2 * H:3 * H], w[3 * H:]
    return jnp.concatenate([i, f, o, g], axis=0)


def pack_params(raw):
    """Pack PyTorch-layout params for the kernel:
       * gate rows permuted [i,f,g,o] -> [i,f,o,g],
       * matrices transposed for (B, K) @ (K, 4H) matmuls,
       * wih2/whh2 stacked into one fused (H1+H2, 4*H2) weight,
       * recurrent weights cast to bf16,
       * all small f32 params packed into one (3, 4*H1) slab."""
    w1 = _ifgo_to_ifog(raw["whh1"], N_H1).T.astype(jnp.bfloat16)        # (H1, G1)
    w2 = jnp.concatenate([_ifgo_to_ifog(raw["wih2"], N_H2).T,
                          _ifgo_to_ifog(raw["whh2"], N_H2).T],
                         axis=0).astype(jnp.bfloat16)                   # (H1+H2, G2)

    wih1_row = _ifgo_to_ifog(raw["wih1"], N_H1).T                       # (1, G1)
    b1_row = _ifgo_to_ifog(raw["b1"], N_H1)[None, :]                    # (1, G1)
    row2 = jnp.concatenate(
        [_ifgo_to_ifog(raw["b2"], N_H2)[None, :],                       # (1, G2)
         raw["wlin"],                                                   # (1, H2)
         raw["blin"][None, :],                                          # (1, 1)
         jnp.zeros((1, G1 - G2 - N_H2 - 1), jnp.float32)], axis=1)      # pad
    misc = jnp.concatenate([wih1_row, b1_row, row2], axis=0)            # (3, G1)
    return w1, w2, misc


def init_raw_params(key):
    """PyTorch-layout parameters, U(-1/sqrt(H), 1/sqrt(H)) like nn.LSTMCell."""
    ks = jax.random.split(key, 10)
    k1 = 1.0 / jnp.sqrt(N_H1)
    k2 = 1.0 / jnp.sqrt(N_H2)
    u = lambda k, shape, b: jax.random.uniform(k, shape, jnp.float32, -b, b)
    return dict(
        wih1=u(ks[0], (4 * N_H1, N_INPUT), k1),
        whh1=u(ks[1], (4 * N_H1, N_H1), k1),
        b1=u(ks[2], (4 * N_H1,), k1) + u(ks[3], (4 * N_H1,), k1),
        wih2=u(ks[4], (4 * N_H2, N_H1), k2),
        whh2=u(ks[5], (4 * N_H2, N_H2), k2),
        b2=u(ks[6], (4 * N_H2,), k2) + u(ks[7], (4 * N_H2,), k2),
        wlin=u(ks[8], (N_OUT, N_H2), k2),
        blin=u(ks[9], (N_OUT,), k2),
    )


def _lstm_cell_ref(x_t, h, c, w_ih, w_hh, b, H):
    gates = x_t @ w_ih.T + h @ w_hh.T + b        # PyTorch gate order [i, f, g, o]
    i = jax.nn.sigmoid(gates[:, :H])
    f = jax.nn.sigmoid(gates[:, H:2 * H])
    g = jnp.tanh(gates[:, 2 * H:3 * H])
    o = jax.nn.sigmoid(gates[:, 3 * H:])
    c_new = f * c + i * g
    return o * jnp.tanh(c_new), c_new


def reference_forward(x, raw):
    """Pure-JAX f32 reference with PyTorch semantics (lax.scan)."""
    B = x.shape[1]

    def step(carry, x_t):
        h1, c1, h2, c2 = carry
        h1, c1 = _lstm_cell_ref(x_t, h1, c1, raw["wih1"], raw["whh1"], raw["b1"], N_H1)
        h2, c2 = _lstm_cell_ref(h1, h2, c2, raw["wih2"], raw["whh2"], raw["b2"], N_H2)
        out = h2 @ raw["wlin"].T + raw["blin"]
        return (h1, c1, h2, c2), out

    init = (jnp.zeros((B, N_H1)), jnp.zeros((B, N_H1)),
            jnp.zeros((B, N_H2)), jnp.zeros((B, N_H2)))
    _, outs = lax.scan(step, init, x)
    return outs                                   # (T, B, 1)


if __name__ == "__main__":
    key = jax.random.PRNGKey(0)
    kp, kx = jax.random.split(key)

    seq_len, batch = 16, 8        # batch = one full sublane group
    x = jax.random.normal(kx, (seq_len, batch, N_INPUT), jnp.float32)

    raw = init_raw_params(kp)
    params = pack_params(raw)

    out = jax.block_until_ready(lstm_simulator_forward(x, params))
    assert out.shape == (seq_len, batch, N_OUT)

    ref = reference_forward(x, raw)
    # bf16 MXU operands over 16 recurrent steps drift ~1e-3 from the pure-f32
    # reference; 2e-2 tolerance keeps the check meaningful with headroom.
    assert jnp.allclose(out, ref, atol=2e-2, rtol=2e-2), "mismatch vs reference"

    print("KERNEL_OK")
</pallas_src>

<mosaic_0001>
module attributes {stable_mosaic.version = 11 : i64} {
  func.func @lstm_sim_kernel(%arg0: memref<16x8x1xf32, #tpu.memory_space<vmem>>, %arg1: memref<64x256xbf16, #tpu.memory_space<vmem>>, %arg2: memref<96x128xbf16, #tpu.memory_space<vmem>>, %arg3: memref<3x256xf32, #tpu.memory_space<vmem>>, %arg4: memref<16x8xf32, #tpu.memory_space<vmem>>, %arg5: memref<16x8x256xf32, #tpu.memory_space<vmem>>, %arg6: memref<16x8x32xf32, #tpu.memory_space<vmem>>) attributes {dimension_semantics = [], scalar_prefetch = 0 : i64, scratch_operands = 2 : i64, tpu.core_type = #tpu.core_type<tc>} {
    %c0 = arith.constant 0 : index
    %c0_0 = arith.constant 0 : index
    %0 = vector.load %arg3[%c0, %c0_0] : memref<3x256xf32, #tpu.memory_space<vmem>>, vector<3x256xf32>
    %1 = vector.extract_strided_slice %0 {offsets = [0, 0], sizes = [1, 256], strides = [1, 1]} : vector<3x256xf32> to vector<1x256xf32>
    %2 = vector.extract_strided_slice %0 {offsets = [1, 0], sizes = [1, 256], strides = [1, 1]} : vector<3x256xf32> to vector<1x256xf32>
    %3 = vector.extract_strided_slice %0 {offsets = [2, 0], sizes = [1, 128], strides = [1, 1]} : vector<3x256xf32> to vector<1x128xf32>
    %4 = vector.extract_strided_slice %0 {offsets = [2, 128], sizes = [1, 32], strides = [1, 1]} : vector<3x256xf32> to vector<1x32xf32>
    %5 = vector.extract_strided_slice %0 {offsets = [2, 160], sizes = [1, 1], strides = [1, 1]} : vector<3x256xf32> to vector<1x1xf32>
    %c0_1 = arith.constant 0 : index
    %c0_2 = arith.constant 0 : index
    %6 = vector.load %arg1[%c0_1, %c0_2] : memref<64x256xbf16, #tpu.memory_space<vmem>>, vector<64x256xbf16>
    %c0_3 = arith.constant 0 : index
    %c0_4 = arith.constant 0 : index
    %7 = vector.load %arg2[%c0_3, %c0_4] : memref<96x128xbf16, #tpu.memory_space<vmem>>, vector<96x128xbf16>
    %8 = vector.shape_cast %3 : vector<1x128xf32> to vector<1x128xf32>
    %9 = vector.broadcast %8 : vector<1x128xf32> to vector<8x128xf32>
    %c0_5 = arith.constant 0 : index
    %c0_6 = arith.constant 0 : index
    %c0_7 = arith.constant 0 : index
    %10 = vector.load %arg0[%c0_5, %c0_6, %c0_7] : memref<16x8x1xf32, #tpu.memory_space<vmem>>, vector<16x8x1xf32>
    %11 = vector.shape_cast %1 : vector<1x256xf32> to vector<1x1x256xf32>
    %12 = vector.broadcast %10 : vector<16x8x1xf32> to vector<16x8x256xf32>
    %13 = vector.broadcast %11 : vector<1x1x256xf32> to vector<16x8x256xf32>
    %14 = arith.mulf %12, %13 : vector<16x8x256xf32>
    %15 = vector.shape_cast %2 : vector<1x256xf32> to vector<1x1x256xf32>
    %16 = vector.broadcast %15 : vector<1x1x256xf32> to vector<16x8x256xf32>
    %17 = arith.addf %14, %16 : vector<16x8x256xf32>
    %c0_8 = arith.constant 0 : index
    %c0_9 = arith.constant 0 : index
    %c0_10 = arith.constant 0 : index
    %18 = vector.load %arg5[%c0_8, %c0_9, %c0_10] : memref<16x8x256xf32, #tpu.memory_space<vmem>>, vector<16x8x256xf32>
    tpu.vector_store %arg5[%c0_8, %c0_9, %c0_10], %17 {strides = array<i32>} : memref<16x8x256xf32, #tpu.memory_space<vmem>>, vector<16x8x256xf32>,
    %cst = arith.constant 0.000000e+00 : f32
    %19 = vector.broadcast %cst : f32 to vector<8x64xf32>
    %cst_11 = arith.constant 0.000000e+00 : f32
    %20 = vector.broadcast %cst_11 : f32 to vector<8x32xf32>
    %c0_i32 = arith.constant 0 : i32
    %21 = arith.index_cast %c0_i32 : i32 to index
    %c0_12 = arith.constant 0 : index
    %c0_13 = arith.constant 0 : index
    %22 = vector.load %arg5[%21, %c0_12, %c0_13] : memref<16x8x256xf32, #tpu.memory_space<vmem>>, vector<1x8x256xf32>
    %23 = vector.shape_cast %22 : vector<1x8x256xf32> to vector<8x256xf32>
    %24 = arith.truncf %19 : vector<8x64xf32> to vector<8x64xbf16>
    %cst_14 = arith.constant dense<0.000000e+00> : vector<8x256xf32>
    %25 = tpu.matmul %24, %6, %cst_14 {dimension_numbers = #tpu.dot_dimension_numbers<[1], [0], [0], [1], [0, 0, 1, 1], [], []>} : vector<8x64xbf16>, vector<64x256xbf16>, vector<8x256xf32> -> vector<8x256xf32>
    %26 = arith.addf %23, %25 : vector<8x256xf32>
    %27 = vector.extract_strided_slice %26 {offsets = [0, 0], sizes = [8, 192], strides = [1, 1]} : vector<8x256xf32> to vector<8x192xf32>
    %28 = arith.negf %27 : vector<8x192xf32>
    %29 = math.exp %28 : vector<8x192xf32>
    %cst_15 = arith.constant 1.000000e+00 : f32
    %30 = vector.broadcast %cst_15 : f32 to vector<8x192xf32>
    %31 = arith.addf %30, %29 : vector<8x192xf32>
    %32 = arith.divf %30, %31 : vector<8x192xf32>
    %33 = vector.extract_strided_slice %32 {offsets = [0, 0], sizes = [8, 64], strides = [1, 1]} : vector<8x192xf32> to vector<8x64xf32>
    %34 = vector.extract_strided_slice %32 {offsets = [0, 64], sizes = [8, 64], strides = [1, 1]} : vector<8x192xf32> to vector<8x64xf32>
    %35 = vector.extract_strided_slice %32 {offsets = [0, 128], sizes = [8, 64], strides = [1, 1]} : vector<8x192xf32> to vector<8x64xf32>
    %36 = vector.extract_strided_slice %26 {offsets = [0, 192], sizes = [8, 64], strides = [1, 1]} : vector<8x256xf32> to vector<8x64xf32>
    %37 = math.tanh %36 : vector<8x64xf32>
    %38 = arith.mulf %34, %19 : vector<8x64xf32>
    %39 = arith.mulf %33, %37 : vector<8x64xf32>
    %40 = arith.addf %38, %39 : vector<8x64xf32>
    %41 = math.tanh %40 : vector<8x64xf32>
    %42 = arith.mulf %35, %41 : vector<8x64xf32>
    %43 = tpu.concatenate %42, %20 in 1 : vector<8x64xf32>, vector<8x32xf32> -> vector<8x96xf32>
    %44 = arith.truncf %43 : vector<8x96xf32> to vector<8x96xbf16>
    %cst_16 = arith.constant dense<0.000000e+00> : vector<8x128xf32>
    %45 = tpu.matmul %44, %7, %cst_16 {dimension_numbers = #tpu.dot_dimension_numbers<[1], [0], [0], [1], [0, 0, 1, 1], [], []>} : vector<8x96xbf16>, vector<96x128xbf16>, vector<8x128xf32> -> vector<8x128xf32>
    %46 = arith.addf %45, %9 : vector<8x128xf32>
    %47 = vector.extract_strided_slice %46 {offsets = [0, 0], sizes = [8, 96], strides = [1, 1]} : vector<8x128xf32> to vector<8x96xf32>
    %48 = arith.negf %47 : vector<8x96xf32>
    %49 = math.exp %48 : vector<8x96xf32>
    %cst_17 = arith.constant 1.000000e+00 : f32
    %50 = vector.broadcast %cst_17 : f32 to vector<8x96xf32>
    %51 = arith.addf %50, %49 : vector<8x96xf32>
    %52 = arith.divf %50, %51 : vector<8x96xf32>
    %53 = vector.extract_strided_slice %52 {offsets = [0, 0], sizes = [8, 32], strides = [1, 1]} : vector<8x96xf32> to vector<8x32xf32>
    %54 = vector.extract_strided_slice %52 {offsets = [0, 32], sizes = [8, 32], strides = [1, 1]} : vector<8x96xf32> to vector<8x32xf32>
    %55 = vector.extract_strided_slice %52 {offsets = [0, 64], sizes = [8, 32], strides = [1, 1]} : vector<8x96xf32> to vector<8x32xf32>
    %56 = vector.extract_strided_slice %46 {offsets = [0, 96], sizes = [8, 32], strides = [1, 1]} : vector<8x128xf32> to vector<8x32xf32>
    %57 = math.tanh %56 : vector<8x32xf32>
    %58 = arith.mulf %54, %20 : vector<8x32xf32>
    %59 = arith.mulf %53, %57 : vector<8x32xf32>
    %60 = arith.addf %58, %59 : vector<8x32xf32>
    %61 = math.tanh %60 : vector<8x32xf32>
    %62 = arith.mulf %55, %61 : vector<8x32xf32>
    %63 = arith.index_cast %c0_i32 : i32 to index
    %c0_18 = arith.constant 0 : index
    %c0_19 = arith.constant 0 : index
    %64 = vector.load %arg6[%63, %c0_18, %c0_19] : memref<16x8x32xf32, #tpu.memory_space<vmem>>, vector<1x8x32xf32>
    %65 = vector.shape_cast %64 : vector<1x8x32xf32> to vector<8x32xf32>
    %66 = vector.shape_cast %62 : vector<8x32xf32> to vector<1x8x32xf32>
    tpu.vector_store %arg6[%63, %c0_18, %c0_19], %66 {strides = array<i32>} : memref<16x8x32xf32, #tpu.memory_space<vmem>>, vector<1x8x32xf32>,
    %c1_i32 = arith.constant 1 : i32
    %67 = arith.index_cast %c1_i32 : i32 to index
    %c0_20 = arith.constant 0 : index
    %c0_21 = arith.constant 0 : index
    %68 = vector.load %arg5[%67, %c0_20, %c0_21] : memref<16x8x256xf32, #tpu.memory_space<vmem>>, vector<1x8x256xf32>
    %69 = vector.shape_cast %68 : vector<1x8x256xf32> to vector<8x256xf32>
    %70 = arith.truncf %42 : vector<8x64xf32> to vector<8x64xbf16>
    %cst_22 = arith.constant dense<0.000000e+00> : vector<8x256xf32>
    %71 = tpu.matmul %70, %6, %cst_22 {dimension_numbers = #tpu.dot_dimension_numbers<[1], [0], [0], [1], [0, 0, 1, 1], [], []>} : vector<8x64xbf16>, vector<64x256xbf16>, vector<8x256xf32> -> vector<8x256xf32>
    %72 = arith.addf %69, %71 : vector<8x256xf32>
    %73 = vector.extract_strided_slice %72 {offsets = [0, 0], sizes = [8, 192], strides = [1, 1]} : vector<8x256xf32> to vector<8x192xf32>
    %74 = arith.negf %73 : vector<8x192xf32>
    %75 = math.exp %74 : vector<8x192xf32>
    %cst_23 = arith.constant 1.000000e+00 : f32
    %76 = vector.broadcast %cst_23 : f32 to vector<8x192xf32>
    %77 = arith.addf %76, %75 : vector<8x192xf32>
    %78 = arith.divf %76, %77 : vector<8x192xf32>
    %79 = vector.extract_strided_slice %78 {offsets = [0, 0], sizes = [8, 64], strides = [1, 1]} : vector<8x192xf32> to vector<8x64xf32>
    %80 = vector.extract_strided_slice %78 {offsets = [0, 64], sizes = [8, 64], strides = [1, 1]} : vector<8x192xf32> to vector<8x64xf32>
    %81 = vector.extract_strided_slice %78 {offsets = [0, 128], sizes = [8, 64], strides = [1, 1]} : vector<8x192xf32> to vector<8x64xf32>
    %82 = vector.extract_strided_slice %72 {offsets = [0, 192], sizes = [8, 64], strides = [1, 1]} : vector<8x256xf32> to vector<8x64xf32>
    %83 = math.tanh %82 : vector<8x64xf32>
    %84 = arith.mulf %80, %40 : vector<8x64xf32>
    %85 = arith.mulf %79, %83 : vector<8x64xf32>
    %86 = arith.addf %84, %85 : vector<8x64xf32>
    %87 = math.tanh %86 : vector<8x64xf32>
    %88 = arith.mulf %81, %87 : vector<8x64xf32>
    %89 = tpu.concatenate %88, %62 in 1 : vector<8x64xf32>, vector<8x32xf32> -> vector<8x96xf32>
    %90 = arith.truncf %89 : vector<8x96xf32> to vector<8x96xbf16>
    %cst_24 = arith.constant dense<0.000000e+00> : vector<8x128xf32>
    %91 = tpu.matmul %90, %7, %cst_24 {dimension_numbers = #tpu.dot_dimension_numbers<[1], [0], [0], [1], [0, 0, 1, 1], [], []>} : vector<8x96xbf16>, vector<96x128xbf16>, vector<8x128xf32> -> vector<8x128xf32>
    %92 = arith.addf %91, %9 : vector<8x128xf32>
    %93 = vector.extract_strided_slice %92 {offsets = [0, 0], sizes = [8, 96], strides = [1, 1]} : vector<8x128xf32> to vector<8x96xf32>
    %94 = arith.negf %93 : vector<8x96xf32>
    %95 = math.exp %94 : vector<8x96xf32>
    %cst_25 = arith.constant 1.000000e+00 : f32
    %96 = vector.broadcast %cst_25 : f32 to vector<8x96xf32>
    %97 = arith.addf %96, %95 : vector<8x96xf32>
    %98 = arith.divf %96, %97 : vector<8x96xf32>
    %99 = vector.extract_strided_slice %98 {offsets = [0, 0], sizes = [8, 32], strides = [1, 1]} : vector<8x96xf32> to vector<8x32xf32>
    %100 = vector.extract_strided_slice %98 {offsets = [0, 32], sizes = [8, 32], strides = [1, 1]} : vector<8x96xf32> to vector<8x32xf32>
    %101 = vector.extract_strided_slice %98 {offsets = [0, 64], sizes = [8, 32], strides = [1, 1]} : vector<8x96xf32> to vector<8x32xf32>
    %102 = vector.extract_strided_slice %92 {offsets = [0, 96], sizes = [8, 32], strides = [1, 1]} : vector<8x128xf32> to vector<8x32xf32>
    %103 = math.tanh %102 : vector<8x32xf32>
    %104 = arith.mulf %100, %60 : vector<8x32xf32>
    %105 = arith.mulf %99, %103 : vector<8x32xf32>
    %106 = arith.addf %104, %105 : vector<8x32xf32>
    %107 = math.tanh %106 : vector<8x32xf32>
    %108 = arith.mulf %101, %107 : vector<8x32xf32>
    %109 = arith.index_cast %c1_i32 : i32 to index
    %c0_26 = arith.constant 0 : index
    %c0_27 = arith.constant 0 : index
    %110 = vector.load %arg6[%109, %c0_26, %c0_27] : memref<16x8x32xf32, #tpu.memory_space<vmem>>, vector<1x8x32xf32>
    %111 = vector.shape_cast %110 : vector<1x8x32xf32> to vector<8x32xf32>
    %112 = vector.shape_cast %108 : vector<8x32xf32> to vector<1x8x32xf32>
    tpu.vector_store %arg6[%109, %c0_26, %c0_27], %112 {strides = array<i32>} : memref<16x8x32xf32, #tpu.memory_space<vmem>>, vector<1x8x32xf32>,
    %c2_i32 = arith.constant 2 : i32
    %113 = arith.index_cast %c2_i32 : i32 to index
    %c0_28 = arith.constant 0 : index
    %c0_29 = arith.constant 0 : index
    %114 = vector.load %arg5[%113, %c0_28, %c0_29] : memref<16x8x256xf32, #tpu.memory_space<vmem>>, vector<1x8x256xf32>
    %115 = vector.shape_cast %114 : vector<1x8x256xf32> to vector<8x256xf32>
    %116 = arith.truncf %88 : vector<8x64xf32> to vector<8x64xbf16>
    %cst_30 = arith.constant dense<0.000000e+00> : vector<8x256xf32>
    %117 = tpu.matmul %116, %6, %cst_30 {dimension_numbers = #tpu.dot_dimension_numbers<[1], [0], [0], [1], [0, 0, 1, 1], [], []>} : vector<8x64xbf16>, vector<64x256xbf16>, vector<8x256xf32> -> vector<8x256xf32>
    %118 = arith.addf %115, %117 : vector<8x256xf32>
    %119 = vector.extract_strided_slice %118 {offsets = [0, 0], sizes = [8, 192], strides = [1, 1]} : vector<8x256xf32> to vector<8x192xf32>
    %120 = arith.negf %119 : vector<8x192xf32>
    %121 = math.exp %120 : vector<8x192xf32>
    %cst_31 = arith.constant 1.000000e+00 : f32
    %122 = vector.broadcast %cst_31 : f32 to vector<8x192xf32>
    %123 = arith.addf %122, %121 : vector<8x192xf32>
    %124 = arith.divf %122, %123 : vector<8x192xf32>
    %125 = vector.extract_strided_slice %124 {offsets = [0, 0], sizes = [8, 64], strides = [1, 1]} : vector<8x192xf32> to vector<8x64xf32>
    %126 = vector.extract_strided_slice %124 {offsets = [0, 64], sizes = [8, 64], strides = [1, 1]} : vector<8x192xf32> to vector<8x64xf32>
    %127 = vector.extract_strided_slice %124 {offsets = [0, 128], sizes = [8, 64], strides = [1, 1]} : vector<8x192xf32> to vector<8x64xf32>
    %128 = vector.extract_strided_slice %118 {offsets = [0, 192], sizes = [8, 64], strides = [1, 1]} : vector<8x256xf32> to vector<8x64xf32>
    %129 = math.tanh %128 : vector<8x64xf32>
    %130 = arith.mulf %126, %86 : vector<8x64xf32>
    %131 = arith.mulf %125, %129 : vector<8x64xf32>
    %132 = arith.addf %130, %131 : vector<8x64xf32>
    %133 = math.tanh %132 : vector<8x64xf32>
    %134 = arith.mulf %127, %133 : vector<8x64xf32>
    %135 = tpu.concatenate %134, %108 in 1 : vector<8x64xf32>, vector<8x32xf32> -> vector<8x96xf32>
    %136 = arith.truncf %135 : vector<8x96xf32> to vector<8x96xbf16>
    %cst_32 = arith.constant dense<0.000000e+00> : vector<8x128xf32>
    %137 = tpu.matmul %136, %7, %cst_32 {dimension_numbers = #tpu.dot_dimension_numbers<[1], [0], [0], [1], [0, 0, 1, 1], [], []>} : vector<8x96xbf16>, vector<96x128xbf16>, vector<8x128xf32> -> vector<8x128xf32>
    %138 = arith.addf %137, %9 : vector<8x128xf32>
    %139 = vector.extract_strided_slice %138 {offsets = [0, 0], sizes = [8, 96], strides = [1, 1]} : vector<8x128xf32> to vector<8x96xf32>
    %140 = arith.negf %139 : vector<8x96xf32>
    %141 = math.exp %140 : vector<8x96xf32>
    %cst_33 = arith.constant 1.000000e+00 : f32
    %142 = vector.broadcast %cst_33 : f32 to vector<8x96xf32>
    %143 = arith.addf %142, %141 : vector<8x96xf32>
    %144 = arith.divf %142, %143 : vector<8x96xf32>
    %145 = vector.extract_strided_slice %144 {offsets = [0, 0], sizes = [8, 32], strides = [1, 1]} : vector<8x96xf32> to vector<8x32xf32>
    %146 = vector.extract_strided_slice %144 {offsets = [0, 32], sizes = [8, 32], strides = [1, 1]} : vector<8x96xf32> to vector<8x32xf32>
    %147 = vector.extract_strided_slice %144 {offsets = [0, 64], sizes = [8, 32], strides = [1, 1]} : vector<8x96xf32> to vector<8x32xf32>
    %148 = vector.extract_strided_slice %138 {offsets = [0, 96], sizes = [8, 32], strides = [1, 1]} : vector<8x128xf32> to vector<8x32xf32>
    %149 = math.tanh %148 : vector<8x32xf32>
    %150 = arith.mulf %146, %106 : vector<8x32xf32>
    %151 = arith.mulf %145, %149 : vector<8x32xf32>
    %152 = arith.addf %150, %151 : vector<8x32xf32>
    %153 = math.tanh %152 : vector<8x32xf32>
    %154 = arith.mulf %147, %153 : vector<8x32xf32>
    %155 = arith.index_cast %c2_i32 : i32 to index
    %c0_34 = arith.constant 0 : index
    %c0_35 = arith.constant 0 : index
    %156 = vector.load %arg6[%155, %c0_34, %c0_35] : memref<16x8x32xf32, #tpu.memory_space<vmem>>, vector<1x8x32xf32>
    %157 = vector.shape_cast %156 : vector<1x8x32xf32> to vector<8x32xf32>
    %158 = vector.shape_cast %154 : vector<8x32xf32> to vector<1x8x32xf32>
    tpu.vector_store %arg6[%155, %c0_34, %c0_35], %158 {strides = array<i32>} : memref<16x8x32xf32, #tpu.memory_space<vmem>>, vector<1x8x32xf32>,
    %c3_i32 = arith.constant 3 : i32
    %159 = arith.index_cast %c3_i32 : i32 to index
    %c0_36 = arith.constant 0 : index
    %c0_37 = arith.constant 0 : index
    %160 = vector.load %arg5[%159, %c0_36, %c0_37] : memref<16x8x256xf32, #tpu.memory_space<vmem>>, vector<1x8x256xf32>
    %161 = vector.shape_cast %160 : vector<1x8x256xf32> to vector<8x256xf32>
    %162 = arith.truncf %134 : vector<8x64xf32> to vector<8x64xbf16>
    %cst_38 = arith.constant dense<0.000000e+00> : vector<8x256xf32>
    %163 = tpu.matmul %162, %6, %cst_38 {dimension_numbers = #tpu.dot_dimension_numbers<[1], [0], [0], [1], [0, 0, 1, 1], [], []>} : vector<8x64xbf16>, vector<64x256xbf16>, vector<8x256xf32> -> vector<8x256xf32>
    %164 = arith.addf %161, %163 : vector<8x256xf32>
    %165 = vector.extract_strided_slice %164 {offsets = [0, 0], sizes = [8, 192], strides = [1, 1]} : vector<8x256xf32> to vector<8x192xf32>
    %166 = arith.negf %165 : vector<8x192xf32>
    %167 = math.exp %166 : vector<8x192xf32>
    %cst_39 = arith.constant 1.000000e+00 : f32
    %168 = vector.broadcast %cst_39 : f32 to vector<8x192xf32>
    %169 = arith.addf %168, %167 : vector<8x192xf32>
    %170 = arith.divf %168, %169 : vector<8x192xf32>
    %171 = vector.extract_strided_slice %170 {offsets = [0, 0], sizes = [8, 64], strides = [1, 1]} : vector<8x192xf32> to vector<8x64xf32>
    %172 = vector.extract_strided_slice %170 {offsets = [0, 64], sizes = [8, 64], strides = [1, 1]} : vector<8x192xf32> to vector<8x64xf32>
    %173 = vector.extract_strided_slice %170 {offsets = [0, 128], sizes = [8, 64], strides = [1, 1]} : vector<8x192xf32> to vector<8x64xf32>
    %174 = vector.extract_strided_slice %164 {offsets = [0, 192], sizes = [8, 64], strides = [1, 1]} : vector<8x256xf32> to vector<8x64xf32>
    %175 = math.tanh %174 : vector<8x64xf32>
    %176 = arith.mulf %172, %132 : vector<8x64xf32>
    %177 = arith.mulf %171, %175 : vector<8x64xf32>
    %178 = arith.addf %176, %177 : vector<8x64xf32>
    %179 = math.tanh %178 : vector<8x64xf32>
    %180 = arith.mulf %173, %179 : vector<8x64xf32>
    %181 = tpu.concatenate %180, %154 in 1 : vector<8x64xf32>, vector<8x32xf32> -> vector<8x96xf32>
    %182 = arith.truncf %181 : vector<8x96xf32> to vector<8x96xbf16>
    %cst_40 = arith.constant dense<0.000000e+00> : vector<8x128xf32>
    %183 = tpu.matmul %182, %7, %cst_40 {dimension_numbers = #tpu.dot_dimension_numbers<[1], [0], [0], [1], [0, 0, 1, 1], [], []>} : vector<8x96xbf16>, vector<96x128xbf16>, vector<8x128xf32> -> vector<8x128xf32>
    %184 = arith.addf %183, %9 : vector<8x128xf32>
    %185 = vector.extract_strided_slice %184 {offsets = [0, 0], sizes = [8, 96], strides = [1, 1]} : vector<8x128xf32> to vector<8x96xf32>
    %186 = arith.negf %185 : vector<8x96xf32>
    %187 = math.exp %186 : vector<8x96xf32>
    %cst_41 = arith.constant 1.000000e+00 : f32
    %188 = vector.broadcast %cst_41 : f32 to vector<8x96xf32>
    %189 = arith.addf %188, %187 : vector<8x96xf32>
    %190 = arith.divf %188, %189 : vector<8x96xf32>
    %191 = vector.extract_strided_slice %190 {offsets = [0, 0], sizes = [8, 32], strides = [1, 1]} : vector<8x96xf32> to vector<8x32xf32>
    %192 = vector.extract_strided_slice %190 {offsets = [0, 32], sizes = [8, 32], strides = [1, 1]} : vector<8x96xf32> to vector<8x32xf32>
    %193 = vector.extract_strided_slice %190 {offsets = [0, 64], sizes = [8, 32], strides = [1, 1]} : vector<8x96xf32> to vector<8x32xf32>
    %194 = vector.extract_strided_slice %184 {offsets = [0, 96], sizes = [8, 32], strides = [1, 1]} : vector<8x128xf32> to vector<8x32xf32>
    %195 = math.tanh %194 : vector<8x32xf32>
    %196 = arith.mulf %192, %152 : vector<8x32xf32>
    %197 = arith.mulf %191, %195 : vector<8x32xf32>
    %198 = arith.addf %196, %197 : vector<8x32xf32>
    %199 = math.tanh %198 : vector<8x32xf32>
    %200 = arith.mulf %193, %199 : vector<8x32xf32>
    %201 = arith.index_cast %c3_i32 : i32 to index
    %c0_42 = arith.constant 0 : index
    %c0_43 = arith.constant 0 : index
    %202 = vector.load %arg6[%201, %c0_42, %c0_43] : memref<16x8x32xf32, #tpu.memory_space<vmem>>, vector<1x8x32xf32>
    %203 = vector.shape_cast %202 : vector<1x8x32xf32> to vector<8x32xf32>
    %204 = vector.shape_cast %200 : vector<8x32xf32> to vector<1x8x32xf32>
    tpu.vector_store %arg6[%201, %c0_42, %c0_43], %204 {strides = array<i32>} : memref<16x8x32xf32, #tpu.memory_space<vmem>>, vector<1x8x32xf32>,
    %c4_i32 = arith.constant 4 : i32
    %205 = arith.index_cast %c4_i32 : i32 to index
    %c0_44 = arith.constant 0 : index
    %c0_45 = arith.constant 0 : index
    %206 = vector.load %arg5[%205, %c0_44, %c0_45] : memref<16x8x256xf32, #tpu.memory_space<vmem>>, vector<1x8x256xf32>
    %207 = vector.shape_cast %206 : vector<1x8x256xf32> to vector<8x256xf32>
    %208 = arith.truncf %180 : vector<8x64xf32> to vector<8x64xbf16>
    %cst_46 = arith.constant dense<0.000000e+00> : vector<8x256xf32>
    %209 = tpu.matmul %208, %6, %cst_46 {dimension_numbers = #tpu.dot_dimension_numbers<[1], [0], [0], [1], [0, 0, 1, 1], [], []>} : vector<8x64xbf16>, vector<64x256xbf16>, vector<8x256xf32> -> vector<8x256xf32>
    %210 = arith.addf %207, %209 : vector<8x256xf32>
    %211 = vector.extract_strided_slice %210 {offsets = [0, 0], sizes = [8, 192], strides = [1, 1]} : vector<8x256xf32> to vector<8x192xf32>
    %212 = arith.negf %211 : vector<8x192xf32>
    %213 = math.exp %212 : vector<8x192xf32>
    %cst_47 = arith.constant 1.000000e+00 : f32
    %214 = vector.broadcast %cst_47 : f32 to vector<8x192xf32>
    %215 = arith.addf %214, %213 : vector<8x192xf32>
    %216 = arith.divf %214, %215 : vector<8x192xf32>
    %217 = vector.extract_strided_slice %216 {offsets = [0, 0], sizes = [8, 64], strides = [1, 1]} : vector<8x192xf32> to vector<8x64xf32>
    %218 = vector.extract_strided_slice %216 {offsets = [0, 64], sizes = [8, 64], strides = [1, 1]} : vector<8x192xf32> to vector<8x64xf32>
    %219 = vector.extract_strided_slice %216 {offsets = [0, 128], sizes = [8, 64], strides = [1, 1]} : vector<8x192xf32> to vector<8x64xf32>
    %220 = vector.extract_strided_slice %210 {offsets = [0, 192], sizes = [8, 64], strides = [1, 1]} : vector<8x256xf32> to vector<8x64xf32>
    %221 = math.tanh %220 : vector<8x64xf32>
    %222 = arith.mulf %218, %178 : vector<8x64xf32>
    %223 = arith.mulf %217, %221 : vector<8x64xf32>
    %224 = arith.addf %222, %223 : vector<8x64xf32>
    %225 = math.tanh %224 : vector<8x64xf32>
    %226 = arith.mulf %219, %225 : vector<8x64xf32>
    %227 = tpu.concatenate %226, %200 in 1 : vector<8x64xf32>, vector<8x32xf32> -> vector<8x96xf32>
    %228 = arith.truncf %227 : vector<8x96xf32> to vector<8x96xbf16>
    %cst_48 = arith.constant dense<0.000000e+00> : vector<8x128xf32>
    %229 = tpu.matmul %228, %7, %cst_48 {dimension_numbers = #tpu.dot_dimension_numbers<[1], [0], [0], [1], [0, 0, 1, 1], [], []>} : vector<8x96xbf16>, vector<96x128xbf16>, vector<8x128xf32> -> vector<8x128xf32>
    %230 = arith.addf %229, %9 : vector<8x128xf32>
    %231 = vector.extract_strided_slice %230 {offsets = [0, 0], sizes = [8, 96], strides = [1, 1]} : vector<8x128xf32> to vector<8x96xf32>
    %232 = arith.negf %231 : vector<8x96xf32>
    %233 = math.exp %232 : vector<8x96xf32>
    %cst_49 = arith.constant 1.000000e+00 : f32
    %234 = vector.broadcast %cst_49 : f32 to vector<8x96xf32>
    %235 = arith.addf %234, %233 : vector<8x96xf32>
    %236 = arith.divf %234, %235 : vector<8x96xf32>
    %237 = vector.extract_strided_slice %236 {offsets = [0, 0], sizes = [8, 32], strides = [1, 1]} : vector<8x96xf32> to vector<8x32xf32>
    %238 = vector.extract_strided_slice %236 {offsets = [0, 32], sizes = [8, 32], strides = [1, 1]} : vector<8x96xf32> to vector<8x32xf32>
    %239 = vector.extract_strided_slice %236 {offsets = [0, 64], sizes = [8, 32], strides = [1, 1]} : vector<8x96xf32> to vector<8x32xf32>
    %240 = vector.extract_strided_slice %230 {offsets = [0, 96], sizes = [8, 32], strides = [1, 1]} : vector<8x128xf32> to vector<8x32xf32>
    %241 = math.tanh %240 : vector<8x32xf32>
    %242 = arith.mulf %238, %198 : vector<8x32xf32>
    %243 = arith.mulf %237, %241 : vector<8x32xf32>
    %244 = arith.addf %242, %243 : vector<8x32xf32>
    %245 = math.tanh %244 : vector<8x32xf32>
    %246 = arith.mulf %239, %245 : vector<8x32xf32>
    %247 = arith.index_cast %c4_i32 : i32 to index
    %c0_50 = arith.constant 0 : index
    %c0_51 = arith.constant 0 : index
    %248 = vector.load %arg6[%247, %c0_50, %c0_51] : memref<16x8x32xf32, #tpu.memory_space<vmem>>, vector<1x8x32xf32>
    %249 = vector.shape_cast %248 : vector<1x8x32xf32> to vector<8x32xf32>
    %250 = vector.shape_cast %246 : vector<8x32xf32> to vector<1x8x32xf32>
    tpu.vector_store %arg6[%247, %c0_50, %c0_51], %250 {strides = array<i32>} : memref<16x8x32xf32, #tpu.memory_space<vmem>>, vector<1x8x32xf32>,
    %c5_i32 = arith.constant 5 : i32
    %251 = arith.index_cast %c5_i32 : i32 to index
    %c0_52 = arith.constant 0 : index
    %c0_53 = arith.constant 0 : index
    %252 = vector.load %arg5[%251, %c0_52, %c0_53] : memref<16x8x256xf32, #tpu.memory_space<vmem>>, vector<1x8x256xf32>
    %253 = vector.shape_cast %252 : vector<1x8x256xf32> to vector<8x256xf32>
    %254 = arith.truncf %226 : vector<8x64xf32> to vector<8x64xbf16>
    %cst_54 = arith.constant dense<0.000000e+00> : vector<8x256xf32>
    %255 = tpu.matmul %254, %6, %cst_54 {dimension_numbers = #tpu.dot_dimension_numbers<[1], [0], [0], [1], [0, 0, 1, 1], [], []>} : vector<8x64xbf16>, vector<64x256xbf16>, vector<8x256xf32> -> vector<8x256xf32>
    %256 = arith.addf %253, %255 : vector<8x256xf32>
    %257 = vector.extract_strided_slice %256 {offsets = [0, 0], sizes = [8, 192], strides = [1, 1]} : vector<8x256xf32> to vector<8x192xf32>
    %258 = arith.negf %257 : vector<8x192xf32>
    %259 = math.exp %258 : vector<8x192xf32>
    %cst_55 = arith.constant 1.000000e+00 : f32
    %260 = vector.broadcast %cst_55 : f32 to vector<8x192xf32>
    %261 = arith.addf %260, %259 : vector<8x192xf32>
    %262 = arith.divf %260, %261 : vector<8x192xf32>
    %263 = vector.extract_strided_slice %262 {offsets = [0, 0], sizes = [8, 64], strides = [1, 1]} : vector<8x192xf32> to vector<8x64xf32>
    %264 = vector.extract_strided_slice %262 {offsets = [0, 64], sizes = [8, 64], strides = [1, 1]} : vector<8x192xf32> to vector<8x64xf32>
    %265 = vector.extract_strided_slice %262 {offsets = [0, 128], sizes = [8, 64], strides = [1, 1]} : vector<8x192xf32> to vector<8x64xf32>
    %266 = vector.extract_strided_slice %256 {offsets = [0, 192], sizes = [8, 64], strides = [1, 1]} : vector<8x256xf32> to vector<8x64xf32>
    %267 = math.tanh %266 : vector<8x64xf32>
    %268 = arith.mulf %264, %224 : vector<8x64xf32>
    %269 = arith.mulf %263, %267 : vector<8x64xf32>
    %270 = arith.addf %268, %269 : vector<8x64xf32>
    %271 = math.tanh %270 : vector<8x64xf32>
    %272 = arith.mulf %265, %271 : vector<8x64xf32>
    %273 = tpu.concatenate %272, %246 in 1 : vector<8x64xf32>, vector<8x32xf32> -> vector<8x96xf32>
    %274 = arith.truncf %273 : vector<8x96xf32> to vector<8x96xbf16>
    %cst_56 = arith.constant dense<0.000000e+00> : vector<8x128xf32>
    %275 = tpu.matmul %274, %7, %cst_56 {dimension_numbers = #tpu.dot_dimension_numbers<[1], [0], [0], [1], [0, 0, 1, 1], [], []>} : vector<8x96xbf16>, vector<96x128xbf16>, vector<8x128xf32> -> vector<8x128xf32>
    %276 = arith.addf %275, %9 : vector<8x128xf32>
    %277 = vector.extract_strided_slice %276 {offsets = [0, 0], sizes = [8, 96], strides = [1, 1]} : vector<8x128xf32> to vector<8x96xf32>
    %278 = arith.negf %277 : vector<8x96xf32>
    %279 = math.exp %278 : vector<8x96xf32>
    %cst_57 = arith.constant 1.000000e+00 : f32
    %280 = vector.broadcast %cst_57 : f32 to vector<8x96xf32>
    %281 = arith.addf %280, %279 : vector<8x96xf32>
    %282 = arith.divf %280, %281 : vector<8x96xf32>
    %283 = vector.extract_strided_slice %282 {offsets = [0, 0], sizes = [8, 32], strides = [1, 1]} : vector<8x96xf32> to vector<8x32xf32>
    %284 = vector.extract_strided_slice %282 {offsets = [0, 32], sizes = [8, 32], strides = [1, 1]} : vector<8x96xf32> to vector<8x32xf32>
    %285 = vector.extract_strided_slice %282 {offsets = [0, 64], sizes = [8, 32], strides = [1, 1]} : vector<8x96xf32> to vector<8x32xf32>
    %286 = vector.extract_strided_slice %276 {offsets = [0, 96], sizes = [8, 32], strides = [1, 1]} : vector<8x128xf32> to vector<8x32xf32>
    %287 = math.tanh %286 : vector<8x32xf32>
    %288 = arith.mulf %284, %244 : vector<8x32xf32>
    %289 = arith.mulf %283, %287 : vector<8x32xf32>
    %290 = arith.addf %288, %289 : vector<8x32xf32>
    %291 = math.tanh %290 : vector<8x32xf32>
    %292 = arith.mulf %285, %291 : vector<8x32xf32>
    %293 = arith.index_cast %c5_i32 : i32 to index
    %c0_58 = arith.constant 0 : index
    %c0_59 = arith.constant 0 : index
    %294 = vector.load %arg6[%293, %c0_58, %c0_59] : memref<16x8x32xf32, #tpu.memory_space<vmem>>, vector<1x8x32xf32>
    %295 = vector.shape_cast %294 : vector<1x8x32xf32> to vector<8x32xf32>
    %296 = vector.shape_cast %292 : vector<8x32xf32> to vector<1x8x32xf32>
    tpu.vector_store %arg6[%293, %c0_58, %c0_59], %296 {strides = array<i32>} : memref<16x8x32xf32, #tpu.memory_space<vmem>>, vector<1x8x32xf32>,
    %c6_i32 = arith.constant 6 : i32
    %297 = arith.index_cast %c6_i32 : i32 to index
    %c0_60 = arith.constant 0 : index
    %c0_61 = arith.constant 0 : index
    %298 = vector.load %arg5[%297, %c0_60, %c0_61] : memref<16x8x256xf32, #tpu.memory_space<vmem>>, vector<1x8x256xf32>
    %299 = vector.shape_cast %298 : vector<1x8x256xf32> to vector<8x256xf32>
    %300 = arith.truncf %272 : vector<8x64xf32> to vector<8x64xbf16>
    %cst_62 = arith.constant dense<0.000000e+00> : vector<8x256xf32>
    %301 = tpu.matmul %300, %6, %cst_62 {dimension_numbers = #tpu.dot_dimension_numbers<[1], [0], [0], [1], [0, 0, 1, 1], [], []>} : vector<8x64xbf16>, vector<64x256xbf16>, vector<8x256xf32> -> vector<8x256xf32>
    %302 = arith.addf %299, %301 : vector<8x256xf32>
    %303 = vector.extract_strided_slice %302 {offsets = [0, 0], sizes = [8, 192], strides = [1, 1]} : vector<8x256xf32> to vector<8x192xf32>
    %304 = arith.negf %303 : vector<8x192xf32>
    %305 = math.exp %304 : vector<8x192xf32>
    %cst_63 = arith.constant 1.000000e+00 : f32
    %306 = vector.broadcast %cst_63 : f32 to vector<8x192xf32>
    %307 = arith.addf %306, %305 : vector<8x192xf32>
    %308 = arith.divf %306, %307 : vector<8x192xf32>
    %309 = vector.extract_strided_slice %308 {offsets = [0, 0], sizes = [8, 64], strides = [1, 1]} : vector<8x192xf32> to vector<8x64xf32>
    %310 = vector.extract_strided_slice %308 {offsets = [0, 64], sizes = [8, 64], strides = [1, 1]} : vector<8x192xf32> to vector<8x64xf32>
    %311 = vector.extract_strided_slice %308 {offsets = [0, 128], sizes = [8, 64], strides = [1, 1]} : vector<8x192xf32> to vector<8x64xf32>
    %312 = vector.extract_strided_slice %302 {offsets = [0, 192], sizes = [8, 64], strides = [1, 1]} : vector<8x256xf32> to vector<8x64xf32>
    %313 = math.tanh %312 : vector<8x64xf32>
    %314 = arith.mulf %310, %270 : vector<8x64xf32>
    %315 = arith.mulf %309, %313 : vector<8x64xf32>
    %316 = arith.addf %314, %315 : vector<8x64xf32>
    %317 = math.tanh %316 : vector<8x64xf32>
    %318 = arith.mulf %311, %317 : vector<8x64xf32>
    %319 = tpu.concatenate %318, %292 in 1 : vector<8x64xf32>, vector<8x32xf32> -> vector<8x96xf32>
    %320 = arith.truncf %319 : vector<8x96xf32> to vector<8x96xbf16>
    %cst_64 = arith.constant dense<0.000000e+00> : vector<8x128xf32>
    %321 = tpu.matmul %320, %7, %cst_64 {dimension_numbers = #tpu.dot_dimension_numbers<[1], [0], [0], [1], [0, 0, 1, 1], [], []>} : vector<8x96xbf16>, vector<96x128xbf16>, vector<8x128xf32> -> vector<8x128xf32>
    %322 = arith.addf %321, %9 : vector<8x128xf32>
    %323 = vector.extract_strided_slice %322 {offsets = [0, 0], sizes = [8, 96], strides = [1, 1]} : vector<8x128xf32> to vector<8x96xf32>
    %324 = arith.negf %323 : vector<8x96xf32>
    %325 = math.exp %324 : vector<8x96xf32>
    %cst_65 = arith.constant 1.000000e+00 : f32
    %326 = vector.broadcast %cst_65 : f32 to vector<8x96xf32>
    %327 = arith.addf %326, %325 : vector<8x96xf32>
    %328 = arith.divf %326, %327 : vector<8x96xf32>
    %329 = vector.extract_strided_slice %328 {offsets = [0, 0], sizes = [8, 32], strides = [1, 1]} : vector<8x96xf32> to vector<8x32xf32>
    %330 = vector.extract_strided_slice %328 {offsets = [0, 32], sizes = [8, 32], strides = [1, 1]} : vector<8x96xf32> to vector<8x32xf32>
    %331 = vector.extract_strided_slice %328 {offsets = [0, 64], sizes = [8, 32], strides = [1, 1]} : vector<8x96xf32> to vector<8x32xf32>
    %332 = vector.extract_strided_slice %322 {offsets = [0, 96], sizes = [8, 32], strides = [1, 1]} : vector<8x128xf32> to vector<8x32xf32>
    %333 = math.tanh %332 : vector<8x32xf32>
    %334 = arith.mulf %330, %290 : vector<8x32xf32>
    %335 = arith.mulf %329, %333 : vector<8x32xf32>
    %336 = arith.addf %334, %335 : vector<8x32xf32>
    %337 = math.tanh %336 : vector<8x32xf32>
    %338 = arith.mulf %331, %337 : vector<8x32xf32>
    %339 = arith.index_cast %c6_i32 : i32 to index
    %c0_66 = arith.constant 0 : index
    %c0_67 = arith.constant 0 : index
    %340 = vector.load %arg6[%339, %c0_66, %c0_67] : memref<16x8x32xf32, #tpu.memory_space<vmem>>, vector<1x8x32xf32>
    %341 = vector.shape_cast %340 : vector<1x8x32xf32> to vector<8x32xf32>
    %342 = vector.shape_cast %338 : vector<8x32xf32> to vector<1x8x32xf32>
    tpu.vector_store %arg6[%339, %c0_66, %c0_67], %342 {strides = array<i32>} : memref<16x8x32xf32, #tpu.memory_space<vmem>>, vector<1x8x32xf32>,
    %c7_i32 = arith.constant 7 : i32
    %343 = arith.index_cast %c7_i32 : i32 to index
    %c0_68 = arith.constant 0 : index
    %c0_69 = arith.constant 0 : index
    %344 = vector.load %arg5[%343, %c0_68, %c0_69] : memref<16x8x256xf32, #tpu.memory_space<vmem>>, vector<1x8x256xf32>
    %345 = vector.shape_cast %344 : vector<1x8x256xf32> to vector<8x256xf32>
    %346 = arith.truncf %318 : vector<8x64xf32> to vector<8x64xbf16>
    %cst_70 = arith.constant dense<0.000000e+00> : vector<8x256xf32>
    %347 = tpu.matmul %346, %6, %cst_70 {dimension_numbers = #tpu.dot_dimension_numbers<[1], [0], [0], [1], [0, 0, 1, 1], [], []>} : vector<8x64xbf16>, vector<64x256xbf16>, vector<8x256xf32> -> vector<8x256xf32>
    %348 = arith.addf %345, %347 : vector<8x256xf32>
    %349 = vector.extract_strided_slice %348 {offsets = [0, 0], sizes = [8, 192], strides = [1, 1]} : vector<8x256xf32> to vector<8x192xf32>
    %350 = arith.negf %349 : vector<8x192xf32>
    %351 = math.exp %350 : vector<8x192xf32>
    %cst_71 = arith.constant 1.000000e+00 : f32
    %352 = vector.broadcast %cst_71 : f32 to vector<8x192xf32>
    %353 = arith.addf %352, %351 : vector<8x192xf32>
    %354 = arith.divf %352, %353 : vector<8x192xf32>
    %355 = vector.extract_strided_slice %354 {offsets = [0, 0], sizes = [8, 64], strides = [1, 1]} : vector<8x192xf32> to vector<8x64xf32>
    %356 = vector.extract_strided_slice %354 {offsets = [0, 64], sizes = [8, 64], strides = [1, 1]} : vector<8x192xf32> to vector<8x64xf32>
    %357 = vector.extract_strided_slice %354 {offsets = [0, 128], sizes = [8, 64], strides = [1, 1]} : vector<8x192xf32> to vector<8x64xf32>
    %358 = vector.extract_strided_slice %348 {offsets = [0, 192], sizes = [8, 64], strides = [1, 1]} : vector<8x256xf32> to vector<8x64xf32>
    %359 = math.tanh %358 : vector<8x64xf32>
    %360 = arith.mulf %356, %316 : vector<8x64xf32>
    %361 = arith.mulf %355, %359 : vector<8x64xf32>
    %362 = arith.addf %360, %361 : vector<8x64xf32>
    %363 = math.tanh %362 : vector<8x64xf32>
    %364 = arith.mulf %357, %363 : vector<8x64xf32>
    %365 = tpu.concatenate %364, %338 in 1 : vector<8x64xf32>, vector<8x32xf32> -> vector<8x96xf32>
    %366 = arith.truncf %365 : vector<8x96xf32> to vector<8x96xbf16>
    %cst_72 = arith.constant dense<0.000000e+00> : vector<8x128xf32>
    %367 = tpu.matmul %366, %7, %cst_72 {dimension_numbers = #tpu.dot_dimension_numbers<[1], [0], [0], [1], [0, 0, 1, 1], [], []>} : vector<8x96xbf16>, vector<96x128xbf16>, vector<8x128xf32> -> vector<8x128xf32>
    %368 = arith.addf %367, %9 : vector<8x128xf32>
    %369 = vector.extract_strided_slice %368 {offsets = [0, 0], sizes = [8, 96], strides = [1, 1]} : vector<8x128xf32> to vector<8x96xf32>
    %370 = arith.negf %369 : vector<8x96xf32>
    %371 = math.exp %370 : vector<8x96xf32>
    %cst_73 = arith.constant 1.000000e+00 : f32
    %372 = vector.broadcast %cst_73 : f32 to vector<8x96xf32>
    %373 = arith.addf %372, %371 : vector<8x96xf32>
    %374 = arith.divf %372, %373 : vector<8x96xf32>
    %375 = vector.extract_strided_slice %374 {offsets = [0, 0], sizes = [8, 32], strides = [1, 1]} : vector<8x96xf32> to vector<8x32xf32>
    %376 = vector.extract_strided_slice %374 {offsets = [0, 32], sizes = [8, 32], strides = [1, 1]} : vector<8x96xf32> to vector<8x32xf32>
    %377 = vector.extract_strided_slice %374 {offsets = [0, 64], sizes = [8, 32], strides = [1, 1]} : vector<8x96xf32> to vector<8x32xf32>
    %378 = vector.extract_strided_slice %368 {offsets = [0, 96], sizes = [8, 32], strides = [1, 1]} : vector<8x128xf32> to vector<8x32xf32>
    %379 = math.tanh %378 : vector<8x32xf32>
    %380 = arith.mulf %376, %336 : vector<8x32xf32>
    %381 = arith.mulf %375, %379 : vector<8x32xf32>
    %382 = arith.addf %380, %381 : vector<8x32xf32>
    %383 = math.tanh %382 : vector<8x32xf32>
    %384 = arith.mulf %377, %383 : vector<8x32xf32>
    %385 = arith.index_cast %c7_i32 : i32 to index
    %c0_74 = arith.constant 0 : index
    %c0_75 = arith.constant 0 : index
    %386 = vector.load %arg6[%385, %c0_74, %c0_75] : memref<16x8x32xf32, #tpu.memory_space<vmem>>, vector<1x8x32xf32>
    %387 = vector.shape_cast %386 : vector<1x8x32xf32> to vector<8x32xf32>
    %388 = vector.shape_cast %384 : vector<8x32xf32> to vector<1x8x32xf32>
    tpu.vector_store %arg6[%385, %c0_74, %c0_75], %388 {strides = array<i32>} : memref<16x8x32xf32, #tpu.memory_space<vmem>>, vector<1x8x32xf32>,
    %c8_i32 = arith.constant 8 : i32
    %389 = arith.index_cast %c8_i32 : i32 to index
    %c0_76 = arith.constant 0 : index
    %c0_77 = arith.constant 0 : index
    %390 = vector.load %arg5[%389, %c0_76, %c0_77] : memref<16x8x256xf32, #tpu.memory_space<vmem>>, vector<1x8x256xf32>
    %391 = vector.shape_cast %390 : vector<1x8x256xf32> to vector<8x256xf32>
    %392 = arith.truncf %364 : vector<8x64xf32> to vector<8x64xbf16>
    %cst_78 = arith.constant dense<0.000000e+00> : vector<8x256xf32>
    %393 = tpu.matmul %392, %6, %cst_78 {dimension_numbers = #tpu.dot_dimension_numbers<[1], [0], [0], [1], [0, 0, 1, 1], [], []>} : vector<8x64xbf16>, vector<64x256xbf16>, vector<8x256xf32> -> vector<8x256xf32>
    %394 = arith.addf %391, %393 : vector<8x256xf32>
    %395 = vector.extract_strided_slice %394 {offsets = [0, 0], sizes = [8, 192], strides = [1, 1]} : vector<8x256xf32> to vector<8x192xf32>
    %396 = arith.negf %395 : vector<8x192xf32>
    %397 = math.exp %396 : vector<8x192xf32>
    %cst_79 = arith.constant 1.000000e+00 : f32
    %398 = vector.broadcast %cst_79 : f32 to vector<8x192xf32>
    %399 = arith.addf %398, %397 : vector<8x192xf32>
    %400 = arith.divf %398, %399 : vector<8x192xf32>
    %401 = vector.extract_strided_slice %400 {offsets = [0, 0], sizes = [8, 64], strides = [1, 1]} : vector<8x192xf32> to vector<8x64xf32>
    %402 = vector.extract_strided_slice %400 {offsets = [0, 64], sizes = [8, 64], strides = [1, 1]} : vector<8x192xf32> to vector<8x64xf32>
    %403 = vector.extract_strided_slice %400 {offsets = [0, 128], sizes = [8, 64], strides = [1, 1]} : vector<8x192xf32> to vector<8x64xf32>
    %404 = vector.extract_strided_slice %394 {offsets = [0, 192], sizes = [8, 64], strides = [1, 1]} : vector<8x256xf32> to vector<8x64xf32>
    %405 = math.tanh %404 : vector<8x64xf32>
    %406 = arith.mulf %402, %362 : vector<8x64xf32>
    %407 = arith.mulf %401, %405 : vector<8x64xf32>
    %408 = arith.addf %406, %407 : vector<8x64xf32>
    %409 = math.tanh %408 : vector<8x64xf32>
    %410 = arith.mulf %403, %409 : vector<8x64xf32>
    %411 = tpu.concatenate %410, %384 in 1 : vector<8x64xf32>, vector<8x32xf32> -> vector<8x96xf32>
    %412 = arith.truncf %411 : vector<8x96xf32> to vector<8x96xbf16>
    %cst_80 = arith.constant dense<0.000000e+00> : vector<8x128xf32>
    %413 = tpu.matmul %412, %7, %cst_80 {dimension_numbers = #tpu.dot_dimension_numbers<[1], [0], [0], [1], [0, 0, 1, 1], [], []>} : vector<8x96xbf16>, vector<96x128xbf16>, vector<8x128xf32> -> vector<8x128xf32>
    %414 = arith.addf %413, %9 : vector<8x128xf32>
    %415 = vector.extract_strided_slice %414 {offsets = [0, 0], sizes = [8, 96], strides = [1, 1]} : vector<8x128xf32> to vector<8x96xf32>
    %416 = arith.negf %415 : vector<8x96xf32>
    %417 = math.exp %416 : vector<8x96xf32>
    %cst_81 = arith.constant 1.000000e+00 : f32
    %418 = vector.broadcast %cst_81 : f32 to vector<8x96xf32>
    %419 = arith.addf %418, %417 : vector<8x96xf32>
    %420 = arith.divf %418, %419 : vector<8x96xf32>
    %421 = vector.extract_strided_slice %420 {offsets = [0, 0], sizes = [8, 32], strides = [1, 1]} : vector<8x96xf32> to vector<8x32xf32>
    %422 = vector.extract_strided_slice %420 {offsets = [0, 32], sizes = [8, 32], strides = [1, 1]} : vector<8x96xf32> to vector<8x32xf32>
    %423 = vector.extract_strided_slice %420 {offsets = [0, 64], sizes = [8, 32], strides = [1, 1]} : vector<8x96xf32> to vector<8x32xf32>
    %424 = vector.extract_strided_slice %414 {offsets = [0, 96], sizes = [8, 32], strides = [1, 1]} : vector<8x128xf32> to vector<8x32xf32>
    %425 = math.tanh %424 : vector<8x32xf32>
    %426 = arith.mulf %422, %382 : vector<8x32xf32>
    %427 = arith.mulf %421, %425 : vector<8x32xf32>
    %428 = arith.addf %426, %427 : vector<8x32xf32>
    %429 = math.tanh %428 : vector<8x32xf32>
    %430 = arith.mulf %423, %429 : vector<8x32xf32>
    %431 = arith.index_cast %c8_i32 : i32 to index
    %c0_82 = arith.constant 0 : index
    %c0_83 = arith.constant 0 : index
    %432 = vector.load %arg6[%431, %c0_82, %c0_83] : memref<16x8x32xf32, #tpu.memory_space<vmem>>, vector<1x8x32xf32>
    %433 = vector.shape_cast %432 : vector<1x8x32xf32> to vector<8x32xf32>
    %434 = vector.shape_cast %430 : vector<8x32xf32> to vector<1x8x32xf32>
    tpu.vector_store %arg6[%431, %c0_82, %c0_83], %434 {strides = array<i32>} : memref<16x8x32xf32, #tpu.memory_space<vmem>>, vector<1x8x32xf32>,
    %c9_i32 = arith.constant 9 : i32
    %435 = arith.index_cast %c9_i32 : i32 to index
    %c0_84 = arith.constant 0 : index
    %c0_85 = arith.constant 0 : index
    %436 = vector.load %arg5[%435, %c0_84, %c0_85] : memref<16x8x256xf32, #tpu.memory_space<vmem>>, vector<1x8x256xf32>
    %437 = vector.shape_cast %436 : vector<1x8x256xf32> to vector<8x256xf32>
    %438 = arith.truncf %410 : vector<8x64xf32> to vector<8x64xbf16>
    %cst_86 = arith.constant dense<0.000000e+00> : vector<8x256xf32>
    %439 = tpu.matmul %438, %6, %cst_86 {dimension_numbers = #tpu.dot_dimension_numbers<[1], [0], [0], [1], [0, 0, 1, 1], [], []>} : vector<8x64xbf16>, vector<64x256xbf16>, vector<8x256xf32> -> vector<8x256xf32>
    %440 = arith.addf %437, %439 : vector<8x256xf32>
    %441 = vector.extract_strided_slice %440 {offsets = [0, 0], sizes = [8, 192], strides = [1, 1]} : vector<8x256xf32> to vector<8x192xf32>
    %442 = arith.negf %441 : vector<8x192xf32>
    %443 = math.exp %442 : vector<8x192xf32>
    %cst_87 = arith.constant 1.000000e+00 : f32
    %444 = vector.broadcast %cst_87 : f32 to vector<8x192xf32>
    %445 = arith.addf %444, %443 : vector<8x192xf32>
    %446 = arith.divf %444, %445 : vector<8x192xf32>
    %447 = vector.extract_strided_slice %446 {offsets = [0, 0], sizes = [8, 64], strides = [1, 1]} : vector<8x192xf32> to vector<8x64xf32>
    %448 = vector.extract_strided_slice %446 {offsets = [0, 64], sizes = [8, 64], strides = [1, 1]} : vector<8x192xf32> to vector<8x64xf32>
    %449 = vector.extract_strided_slice %446 {offsets = [0, 128], sizes = [8, 64], strides = [1, 1]} : vector<8x192xf32> to vector<8x64xf32>
    %450 = vector.extract_strided_slice %440 {offsets = [0, 192], sizes = [8, 64], strides = [1, 1]} : vector<8x256xf32> to vector<8x64xf32>
    %451 = math.tanh %450 : vector<8x64xf32>
    %452 = arith.mulf %448, %408 : vector<8x64xf32>
    %453 = arith.mulf %447, %451 : vector<8x64xf32>
    %454 = arith.addf %452, %453 : vector<8x64xf32>
    %455 = math.tanh %454 : vector<8x64xf32>
    %456 = arith.mulf %449, %455 : vector<8x64xf32>
    %457 = tpu.concatenate %456, %430 in 1 : vector<8x64xf32>, vector<8x32xf32> -> vector<8x96xf32>
    %458 = arith.truncf %457 : vector<8x96xf32> to vector<8x96xbf16>
    %cst_88 = arith.constant dense<0.000000e+00> : vector<8x128xf32>
    %459 = tpu.matmul %458, %7, %cst_88 {dimension_numbers = #tpu.dot_dimension_numbers<[1], [0], [0], [1], [0, 0, 1, 1], [], []>} : vector<8x96xbf16>, vector<96x128xbf16>, vector<8x128xf32> -> vector<8x128xf32>
    %460 = arith.addf %459, %9 : vector<8x128xf32>
    %461 = vector.extract_strided_slice %460 {offsets = [0, 0], sizes = [8, 96], strides = [1, 1]} : vector<8x128xf32> to vector<8x96xf32>
    %462 = arith.negf %461 : vector<8x96xf32>
    %463 = math.exp %462 : vector<8x96xf32>
    %cst_89 = arith.constant 1.000000e+00 : f32
    %464 = vector.broadcast %cst_89 : f32 to vector<8x96xf32>
    %465 = arith.addf %464, %463 : vector<8x96xf32>
    %466 = arith.divf %464, %465 : vector<8x96xf32>
    %467 = vector.extract_strided_slice %466 {offsets = [0, 0], sizes = [8, 32], strides = [1, 1]} : vector<8x96xf32> to vector<8x32xf32>
    %468 = vector.extract_strided_slice %466 {offsets = [0, 32], sizes = [8, 32], strides = [1, 1]} : vector<8x96xf32> to vector<8x32xf32>
    %469 = vector.extract_strided_slice %466 {offsets = [0, 64], sizes = [8, 32], strides = [1, 1]} : vector<8x96xf32> to vector<8x32xf32>
    %470 = vector.extract_strided_slice %460 {offsets = [0, 96], sizes = [8, 32], strides = [1, 1]} : vector<8x128xf32> to vector<8x32xf32>
    %471 = math.tanh %470 : vector<8x32xf32>
    %472 = arith.mulf %468, %428 : vector<8x32xf32>
    %473 = arith.mulf %467, %471 : vector<8x32xf32>
    %474 = arith.addf %472, %473 : vector<8x32xf32>
    %475 = math.tanh %474 : vector<8x32xf32>
    %476 = arith.mulf %469, %475 : vector<8x32xf32>
    %477 = arith.index_cast %c9_i32 : i32 to index
    %c0_90 = arith.constant 0 : index
    %c0_91 = arith.constant 0 : index
    %478 = vector.load %arg6[%477, %c0_90, %c0_91] : memref<16x8x32xf32, #tpu.memory_space<vmem>>, vector<1x8x32xf32>
    %479 = vector.shape_cast %478 : vector<1x8x32xf32> to vector<8x32xf32>
    %480 = vector.shape_cast %476 : vector<8x32xf32> to vector<1x8x32xf32>
    tpu.vector_store %arg6[%477, %c0_90, %c0_91], %480 {strides = array<i32>} : memref<16x8x32xf32, #tpu.memory_space<vmem>>, vector<1x8x32xf32>,
    %c10_i32 = arith.constant 10 : i32
    %481 = arith.index_cast %c10_i32 : i32 to index
    %c0_92 = arith.constant 0 : index
    %c0_93 = arith.constant 0 : index
    %482 = vector.load %arg5[%481, %c0_92, %c0_93] : memref<16x8x256xf32, #tpu.memory_space<vmem>>, vector<1x8x256xf32>
    %483 = vector.shape_cast %482 : vector<1x8x256xf32> to vector<8x256xf32>
    %484 = arith.truncf %456 : vector<8x64xf32> to vector<8x64xbf16>
    %cst_94 = arith.constant dense<0.000000e+00> : vector<8x256xf32>
    %485 = tpu.matmul %484, %6, %cst_94 {dimension_numbers = #tpu.dot_dimension_numbers<[1], [0], [0], [1], [0, 0, 1, 1], [], []>} : vector<8x64xbf16>, vector<64x256xbf16>, vector<8x256xf32> -> vector<8x256xf32>
    %486 = arith.addf %483, %485 : vector<8x256xf32>
    %487 = vector.extract_strided_slice %486 {offsets = [0, 0], sizes = [8, 192], strides = [1, 1]} : vector<8x256xf32> to vector<8x192xf32>
    %488 = arith.negf %487 : vector<8x192xf32>
    %489 = math.exp %488 : vector<8x192xf32>
    %cst_95 = arith.constant 1.000000e+00 : f32
    %490 = vector.broadcast %cst_95 : f32 to vector<8x192xf32>
    %491 = arith.addf %490, %489 : vector<8x192xf32>
    %492 = arith.divf %490, %491 : vector<8x192xf32>
    %493 = vector.extract_strided_slice %492 {offsets = [0, 0], sizes = [8, 64], strides = [1, 1]} : vector<8x192xf32> to vector<8x64xf32>
    %494 = vector.extract_strided_slice %492 {offsets = [0, 64], sizes = [8, 64], strides = [1, 1]} : vector<8x192xf32> to vector<8x64xf32>
    %495 = vector.extract_strided_slice %492 {offsets = [0, 128], sizes = [8, 64], strides = [1, 1]} : vector<8x192xf32> to vector<8x64xf32>
    %496 = vector.extract_strided_slice %486 {offsets = [0, 192], sizes = [8, 64], strides = [1, 1]} : vector<8x256xf32> to vector<8x64xf32>
    %497 = math.tanh %496 : vector<8x64xf32>
    %498 = arith.mulf %494, %454 : vector<8x64xf32>
    %499 = arith.mulf %493, %497 : vector<8x64xf32>
    %500 = arith.addf %498, %499 : vector<8x64xf32>
    %501 = math.tanh %500 : vector<8x64xf32>
    %502 = arith.mulf %495, %501 : vector<8x64xf32>
    %503 = tpu.concatenate %502, %476 in 1 : vector<8x64xf32>, vector<8x32xf32> -> vector<8x96xf32>
    %504 = arith.truncf %503 : vector<8x96xf32> to vector<8x96xbf16>
    %cst_96 = arith.constant dense<0.000000e+00> : vector<8x128xf32>
    %505 = tpu.matmul %504, %7, %cst_96 {dimension_numbers = #tpu.dot_dimension_numbers<[1], [0], [0], [1], [0, 0, 1, 1], [], []>} : vector<8x96xbf16>, vector<96x128xbf16>, vector<8x128xf32> -> vector<8x128xf32>
    %506 = arith.addf %505, %9 : vector<8x128xf32>
    %507 = vector.extract_strided_slice %506 {offsets = [0, 0], sizes = [8, 96], strides = [1, 1]} : vector<8x128xf32> to vector<8x96xf32>
    %508 = arith.negf %507 : vector<8x96xf32>
    %509 = math.exp %508 : vector<8x96xf32>
    %cst_97 = arith.constant 1.000000e+00 : f32
    %510 = vector.broadcast %cst_97 : f32 to vector<8x96xf32>
    %511 = arith.addf %510, %509 : vector<8x96xf32>
    %512 = arith.divf %510, %511 : vector<8x96xf32>
    %513 = vector.extract_strided_slice %512 {offsets = [0, 0], sizes = [8, 32], strides = [1, 1]} : vector<8x96xf32> to vector<8x32xf32>
    %514 = vector.extract_strided_slice %512 {offsets = [0, 32], sizes = [8, 32], strides = [1, 1]} : vector<8x96xf32> to vector<8x32xf32>
    %515 = vector.extract_strided_slice %512 {offsets = [0, 64], sizes = [8, 32], strides = [1, 1]} : vector<8x96xf32> to vector<8x32xf32>
    %516 = vector.extract_strided_slice %506 {offsets = [0, 96], sizes = [8, 32], strides = [1, 1]} : vector<8x128xf32> to vector<8x32xf32>
    %517 = math.tanh %516 : vector<8x32xf32>
    %518 = arith.mulf %514, %474 : vector<8x32xf32>
    %519 = arith.mulf %513, %517 : vector<8x32xf32>
    %520 = arith.addf %518, %519 : vector<8x32xf32>
    %521 = math.tanh %520 : vector<8x32xf32>
    %522 = arith.mulf %515, %521 : vector<8x32xf32>
    %523 = arith.index_cast %c10_i32 : i32 to index
    %c0_98 = arith.constant 0 : index
    %c0_99 = arith.constant 0 : index
    %524 = vector.load %arg6[%523, %c0_98, %c0_99] : memref<16x8x32xf32, #tpu.memory_space<vmem>>, vector<1x8x32xf32>
    %525 = vector.shape_cast %524 : vector<1x8x32xf32> to vector<8x32xf32>
    %526 = vector.shape_cast %522 : vector<8x32xf32> to vector<1x8x32xf32>
    tpu.vector_store %arg6[%523, %c0_98, %c0_99], %526 {strides = array<i32>} : memref<16x8x32xf32, #tpu.memory_space<vmem>>, vector<1x8x32xf32>,
    %c11_i32 = arith.constant 11 : i32
    %527 = arith.index_cast %c11_i32 : i32 to index
    %c0_100 = arith.constant 0 : index
    %c0_101 = arith.constant 0 : index
    %528 = vector.load %arg5[%527, %c0_100, %c0_101] : memref<16x8x256xf32, #tpu.memory_space<vmem>>, vector<1x8x256xf32>
    %529 = vector.shape_cast %528 : vector<1x8x256xf32> to vector<8x256xf32>
    %530 = arith.truncf %502 : vector<8x64xf32> to vector<8x64xbf16>
    %cst_102 = arith.constant dense<0.000000e+00> : vector<8x256xf32>
    %531 = tpu.matmul %530, %6, %cst_102 {dimension_numbers = #tpu.dot_dimension_numbers<[1], [0], [0], [1], [0, 0, 1, 1], [], []>} : vector<8x64xbf16>, vector<64x256xbf16>, vector<8x256xf32> -> vector<8x256xf32>
    %532 = arith.addf %529, %531 : vector<8x256xf32>
    %533 = vector.extract_strided_slice %532 {offsets = [0, 0], sizes = [8, 192], strides = [1, 1]} : vector<8x256xf32> to vector<8x192xf32>
    %534 = arith.negf %533 : vector<8x192xf32>
    %535 = math.exp %534 : vector<8x192xf32>
    %cst_103 = arith.constant 1.000000e+00 : f32
    %536 = vector.broadcast %cst_103 : f32 to vector<8x192xf32>
    %537 = arith.addf %536, %535 : vector<8x192xf32>
    %538 = arith.divf %536, %537 : vector<8x192xf32>
    %539 = vector.extract_strided_slice %538 {offsets = [0, 0], sizes = [8, 64], strides = [1, 1]} : vector<8x192xf32> to vector<8x64xf32>
    %540 = vector.extract_strided_slice %538 {offsets = [0, 64], sizes = [8, 64], strides = [1, 1]} : vector<8x192xf32> to vector<8x64xf32>
    %541 = vector.extract_strided_slice %538 {offsets = [0, 128], sizes = [8, 64], strides = [1, 1]} : vector<8x192xf32> to vector<8x64xf32>
    %542 = vector.extract_strided_slice %532 {offsets = [0, 192], sizes = [8, 64], strides = [1, 1]} : vector<8x256xf32> to vector<8x64xf32>
    %543 = math.tanh %542 : vector<8x64xf32>
    %544 = arith.mulf %540, %500 : vector<8x64xf32>
    %545 = arith.mulf %539, %543 : vector<8x64xf32>
    %546 = arith.addf %544, %545 : vector<8x64xf32>
    %547 = math.tanh %546 : vector<8x64xf32>
    %548 = arith.mulf %541, %547 : vector<8x64xf32>
    %549 = tpu.concatenate %548, %522 in 1 : vector<8x64xf32>, vector<8x32xf32> -> vector<8x96xf32>
    %550 = arith.truncf %549 : vector<8x96xf32> to vector<8x96xbf16>
    %cst_104 = arith.constant dense<0.000000e+00> : vector<8x128xf32>
    %551 = tpu.matmul %550, %7, %cst_104 {dimension_numbers = #tpu.dot_dimension_numbers<[1], [0], [0], [1], [0, 0, 1, 1], [], []>} : vector<8x96xbf16>, vector<96x128xbf16>, vector<8x128xf32> -> vector<8x128xf32>
    %552 = arith.addf %551, %9 : vector<8x128xf32>
    %553 = vector.extract_strided_slice %552 {offsets = [0, 0], sizes = [8, 96], strides = [1, 1]} : vector<8x128xf32> to vector<8x96xf32>
    %554 = arith.negf %553 : vector<8x96xf32>
    %555 = math.exp %554 : vector<8x96xf32>
    %cst_105 = arith.constant 1.000000e+00 : f32
    %556 = vector.broadcast %cst_105 : f32 to vector<8x96xf32>
    %557 = arith.addf %556, %555 : vector<8x96xf32>
    %558 = arith.divf %556, %557 : vector<8x96xf32>
    %559 = vector.extract_strided_slice %558 {offsets = [0, 0], sizes = [8, 32], strides = [1, 1]} : vector<8x96xf32> to vector<8x32xf32>
    %560 = vector.extract_strided_slice %558 {offsets = [0, 32], sizes = [8, 32], strides = [1, 1]} : vector<8x96xf32> to vector<8x32xf32>
    %561 = vector.extract_strided_slice %558 {offsets = [0, 64], sizes = [8, 32], strides = [1, 1]} : vector<8x96xf32> to vector<8x32xf32>
    %562 = vector.extract_strided_slice %552 {offsets = [0, 96], sizes = [8, 32], strides = [1, 1]} : vector<8x128xf32> to vector<8x32xf32>
    %563 = math.tanh %562 : vector<8x32xf32>
    %564 = arith.mulf %560, %520 : vector<8x32xf32>
    %565 = arith.mulf %559, %563 : vector<8x32xf32>
    %566 = arith.addf %564, %565 : vector<8x32xf32>
    %567 = math.tanh %566 : vector<8x32xf32>
    %568 = arith.mulf %561, %567 : vector<8x32xf32>
    %569 = arith.index_cast %c11_i32 : i32 to index
    %c0_106 = arith.constant 0 : index
    %c0_107 = arith.constant 0 : index
    %570 = vector.load %arg6[%569, %c0_106, %c0_107] : memref<16x8x32xf32, #tpu.memory_space<vmem>>, vector<1x8x32xf32>
    %571 = vector.shape_cast %570 : vector<1x8x32xf32> to vector<8x32xf32>
    %572 = vector.shape_cast %568 : vector<8x32xf32> to vector<1x8x32xf32>
    tpu.vector_store %arg6[%569, %c0_106, %c0_107], %572 {strides = array<i32>} : memref<16x8x32xf32, #tpu.memory_space<vmem>>, vector<1x8x32xf32>,
    %c12_i32 = arith.constant 12 : i32
    %573 = arith.index_cast %c12_i32 : i32 to index
    %c0_108 = arith.constant 0 : index
    %c0_109 = arith.constant 0 : index
    %574 = vector.load %arg5[%573, %c0_108, %c0_109] : memref<16x8x256xf32, #tpu.memory_space<vmem>>, vector<1x8x256xf32>
    %575 = vector.shape_cast %574 : vector<1x8x256xf32> to vector<8x256xf32>
    %576 = arith.truncf %548 : vector<8x64xf32> to vector<8x64xbf16>
    %cst_110 = arith.constant dense<0.000000e+00> : vector<8x256xf32>
    %577 = tpu.matmul %576, %6, %cst_110 {dimension_numbers = #tpu.dot_dimension_numbers<[1], [0], [0], [1], [0, 0, 1, 1], [], []>} : vector<8x64xbf16>, vector<64x256xbf16>, vector<8x256xf32> -> vector<8x256xf32>
    %578 = arith.addf %575, %577 : vector<8x256xf32>
    %579 = vector.extract_strided_slice %578 {offsets = [0, 0], sizes = [8, 192], strides = [1, 1]} : vector<8x256xf32> to vector<8x192xf32>
    %580 = arith.negf %579 : vector<8x192xf32>
    %581 = math.exp %580 : vector<8x192xf32>
    %cst_111 = arith.constant 1.000000e+00 : f32
    %582 = vector.broadcast %cst_111 : f32 to vector<8x192xf32>
    %583 = arith.addf %582, %581 : vector<8x192xf32>
    %584 = arith.divf %582, %583 : vector<8x192xf32>
    %585 = vector.extract_strided_slice %584 {offsets = [0, 0], sizes = [8, 64], strides = [1, 1]} : vector<8x192xf32> to vector<8x64xf32>
    %586 = vector.extract_strided_slice %584 {offsets = [0, 64], sizes = [8, 64], strides = [1, 1]} : vector<8x192xf32> to vector<8x64xf32>
    %587 = vector.extract_strided_slice %584 {offsets = [0, 128], sizes = [8, 64], strides = [1, 1]} : vector<8x192xf32> to vector<8x64xf32>
    %588 = vector.extract_strided_slice %578 {offsets = [0, 192], sizes = [8, 64], strides = [1, 1]} : vector<8x256xf32> to vector<8x64xf32>
    %589 = math.tanh %588 : vector<8x64xf32>
    %590 = arith.mulf %586, %546 : vector<8x64xf32>
    %591 = arith.mulf %585, %589 : vector<8x64xf32>
    %592 = arith.addf %590, %591 : vector<8x64xf32>
    %593 = math.tanh %592 : vector<8x64xf32>
    %594 = arith.mulf %587, %593 : vector<8x64xf32>
    %595 = tpu.concatenate %594, %568 in 1 : vector<8x64xf32>, vector<8x32xf32> -> vector<8x96xf32>
    %596 = arith.truncf %595 : vector<8x96xf32> to vector<8x96xbf16>
    %cst_112 = arith.constant dense<0.000000e+00> : vector<8x128xf32>
    %597 = tpu.matmul %596, %7, %cst_112 {dimension_numbers = #tpu.dot_dimension_numbers<[1], [0], [0], [1], [0, 0, 1, 1], [], []>} : vector<8x96xbf16>, vector<96x128xbf16>, vector<8x128xf32> -> vector<8x128xf32>
    %598 = arith.addf %597, %9 : vector<8x128xf32>
    %599 = vector.extract_strided_slice %598 {offsets = [0, 0], sizes = [8, 96], strides = [1, 1]} : vector<8x128xf32> to vector<8x96xf32>
    %600 = arith.negf %599 : vector<8x96xf32>
    %601 = math.exp %600 : vector<8x96xf32>
    %cst_113 = arith.constant 1.000000e+00 : f32
    %602 = vector.broadcast %cst_113 : f32 to vector<8x96xf32>
    %603 = arith.addf %602, %601 : vector<8x96xf32>
    %604 = arith.divf %602, %603 : vector<8x96xf32>
    %605 = vector.extract_strided_slice %604 {offsets = [0, 0], sizes = [8, 32], strides = [1, 1]} : vector<8x96xf32> to vector<8x32xf32>
    %606 = vector.extract_strided_slice %604 {offsets = [0, 32], sizes = [8, 32], strides = [1, 1]} : vector<8x96xf32> to vector<8x32xf32>
    %607 = vector.extract_strided_slice %604 {offsets = [0, 64], sizes = [8, 32], strides = [1, 1]} : vector<8x96xf32> to vector<8x32xf32>
    %608 = vector.extract_strided_slice %598 {offsets = [0, 96], sizes = [8, 32], strides = [1, 1]} : vector<8x128xf32> to vector<8x32xf32>
    %609 = math.tanh %608 : vector<8x32xf32>
    %610 = arith.mulf %606, %566 : vector<8x32xf32>
    %611 = arith.mulf %605, %609 : vector<8x32xf32>
    %612 = arith.addf %610, %611 : vector<8x32xf32>
    %613 = math.tanh %612 : vector<8x32xf32>
    %614 = arith.mulf %607, %613 : vector<8x32xf32>
    %615 = arith.index_cast %c12_i32 : i32 to index
    %c0_114 = arith.constant 0 : index
    %c0_115 = arith.constant 0 : index
    %616 = vector.load %arg6[%615, %c0_114, %c0_115] : memref<16x8x32xf32, #tpu.memory_space<vmem>>, vector<1x8x32xf32>
    %617 = vector.shape_cast %616 : vector<1x8x32xf32> to vector<8x32xf32>
    %618 = vector.shape_cast %614 : vector<8x32xf32> to vector<1x8x32xf32>
    tpu.vector_store %arg6[%615, %c0_114, %c0_115], %618 {strides = array<i32>} : memref<16x8x32xf32, #tpu.memory_space<vmem>>, vector<1x8x32xf32>,
    %c13_i32 = arith.constant 13 : i32
    %619 = arith.index_cast %c13_i32 : i32 to index
    %c0_116 = arith.constant 0 : index
    %c0_117 = arith.constant 0 : index
    %620 = vector.load %arg5[%619, %c0_116, %c0_117] : memref<16x8x256xf32, #tpu.memory_space<vmem>>, vector<1x8x256xf32>
    %621 = vector.shape_cast %620 : vector<1x8x256xf32> to vector<8x256xf32>
    %622 = arith.truncf %594 : vector<8x64xf32> to vector<8x64xbf16>
    %cst_118 = arith.constant dense<0.000000e+00> : vector<8x256xf32>
    %623 = tpu.matmul %622, %6, %cst_118 {dimension_numbers = #tpu.dot_dimension_numbers<[1], [0], [0], [1], [0, 0, 1, 1], [], []>} : vector<8x64xbf16>, vector<64x256xbf16>, vector<8x256xf32> -> vector<8x256xf32>
    %624 = arith.addf %621, %623 : vector<8x256xf32>
    %625 = vector.extract_strided_slice %624 {offsets = [0, 0], sizes = [8, 192], strides = [1, 1]} : vector<8x256xf32> to vector<8x192xf32>
    %626 = arith.negf %625 : vector<8x192xf32>
    %627 = math.exp %626 : vector<8x192xf32>
    %cst_119 = arith.constant 1.000000e+00 : f32
    %628 = vector.broadcast %cst_119 : f32 to vector<8x192xf32>
    %629 = arith.addf %628, %627 : vector<8x192xf32>
    %630 = arith.divf %628, %629 : vector<8x192xf32>
    %631 = vector.extract_strided_slice %630 {offsets = [0, 0], sizes = [8, 64], strides = [1, 1]} : vector<8x192xf32> to vector<8x64xf32>
    %632 = vector.extract_strided_slice %630 {offsets = [0, 64], sizes = [8, 64], strides = [1, 1]} : vector<8x192xf32> to vector<8x64xf32>
    %633 = vector.extract_strided_slice %630 {offsets = [0, 128], sizes = [8, 64], strides = [1, 1]} : vector<8x192xf32> to vector<8x64xf32>
    %634 = vector.extract_strided_slice %624 {offsets = [0, 192], sizes = [8, 64], strides = [1, 1]} : vector<8x256xf32> to vector<8x64xf32>
    %635 = math.tanh %634 : vector<8x64xf32>
    %636 = arith.mulf %632, %592 : vector<8x64xf32>
    %637 = arith.mulf %631, %635 : vector<8x64xf32>
    %638 = arith.addf %636, %637 : vector<8x64xf32>
    %639 = math.tanh %638 : vector<8x64xf32>
    %640 = arith.mulf %633, %639 : vector<8x64xf32>
    %641 = tpu.concatenate %640, %614 in 1 : vector<8x64xf32>, vector<8x32xf32> -> vector<8x96xf32>
    %642 = arith.truncf %641 : vector<8x96xf32> to vector<8x96xbf16>
    %cst_120 = arith.constant dense<0.000000e+00> : vector<8x128xf32>
    %643 = tpu.matmul %642, %7, %cst_120 {dimension_numbers = #tpu.dot_dimension_numbers<[1], [0], [0], [1], [0, 0, 1, 1], [], []>} : vector<8x96xbf16>, vector<96x128xbf16>, vector<8x128xf32> -> vector<8x128xf32>
    %644 = arith.addf %643, %9 : vector<8x128xf32>
    %645 = vector.extract_strided_slice %644 {offsets = [0, 0], sizes = [8, 96], strides = [1, 1]} : vector<8x128xf32> to vector<8x96xf32>
    %646 = arith.negf %645 : vector<8x96xf32>
    %647 = math.exp %646 : vector<8x96xf32>
    %cst_121 = arith.constant 1.000000e+00 : f32
    %648 = vector.broadcast %cst_121 : f32 to vector<8x96xf32>
    %649 = arith.addf %648, %647 : vector<8x96xf32>
    %650 = arith.divf %648, %649 : vector<8x96xf32>
    %651 = vector.extract_strided_slice %650 {offsets = [0, 0], sizes = [8, 32], strides = [1, 1]} : vector<8x96xf32> to vector<8x32xf32>
    %652 = vector.extract_strided_slice %650 {offsets = [0, 32], sizes = [8, 32], strides = [1, 1]} : vector<8x96xf32> to vector<8x32xf32>
    %653 = vector.extract_strided_slice %650 {offsets = [0, 64], sizes = [8, 32], strides = [1, 1]} : vector<8x96xf32> to vector<8x32xf32>
    %654 = vector.extract_strided_slice %644 {offsets = [0, 96], sizes = [8, 32], strides = [1, 1]} : vector<8x128xf32> to vector<8x32xf32>
    %655 = math.tanh %654 : vector<8x32xf32>
    %656 = arith.mulf %652, %612 : vector<8x32xf32>
    %657 = arith.mulf %651, %655 : vector<8x32xf32>
    %658 = arith.addf %656, %657 : vector<8x32xf32>
    %659 = math.tanh %658 : vector<8x32xf32>
    %660 = arith.mulf %653, %659 : vector<8x32xf32>
    %661 = arith.index_cast %c13_i32 : i32 to index
    %c0_122 = arith.constant 0 : index
    %c0_123 = arith.constant 0 : index
    %662 = vector.load %arg6[%661, %c0_122, %c0_123] : memref<16x8x32xf32, #tpu.memory_space<vmem>>, vector<1x8x32xf32>
    %663 = vector.shape_cast %662 : vector<1x8x32xf32> to vector<8x32xf32>
    %664 = vector.shape_cast %660 : vector<8x32xf32> to vector<1x8x32xf32>
    tpu.vector_store %arg6[%661, %c0_122, %c0_123], %664 {strides = array<i32>} : memref<16x8x32xf32, #tpu.memory_space<vmem>>, vector<1x8x32xf32>,
    %c14_i32 = arith.constant 14 : i32
    %665 = arith.index_cast %c14_i32 : i32 to index
    %c0_124 = arith.constant 0 : index
    %c0_125 = arith.constant 0 : index
    %666 = vector.load %arg5[%665, %c0_124, %c0_125] : memref<16x8x256xf32, #tpu.memory_space<vmem>>, vector<1x8x256xf32>
    %667 = vector.shape_cast %666 : vector<1x8x256xf32> to vector<8x256xf32>
    %668 = arith.truncf %640 : vector<8x64xf32> to vector<8x64xbf16>
    %cst_126 = arith.constant dense<0.000000e+00> : vector<8x256xf32>
    %669 = tpu.matmul %668, %6, %cst_126 {dimension_numbers = #tpu.dot_dimension_numbers<[1], [0], [0], [1], [0, 0, 1, 1], [], []>} : vector<8x64xbf16>, vector<64x256xbf16>, vector<8x256xf32> -> vector<8x256xf32>
    %670 = arith.addf %667, %669 : vector<8x256xf32>
    %671 = vector.extract_strided_slice %670 {offsets = [0, 0], sizes = [8, 192], strides = [1, 1]} : vector<8x256xf32> to vector<8x192xf32>
    %672 = arith.negf %671 : vector<8x192xf32>
    %673 = math.exp %672 : vector<8x192xf32>
    %cst_127 = arith.constant 1.000000e+00 : f32
    %674 = vector.broadcast %cst_127 : f32 to vector<8x192xf32>
    %675 = arith.addf %674, %673 : vector<8x192xf32>
    %676 = arith.divf %674, %675 : vector<8x192xf32>
    %677 = vector.extract_strided_slice %676 {offsets = [0, 0], sizes = [8, 64], strides = [1, 1]} : vector<8x192xf32> to vector<8x64xf32>
    %678 = vector.extract_strided_slice %676 {offsets = [0, 64], sizes = [8, 64], strides = [1, 1]} : vector<8x192xf32> to vector<8x64xf32>
    %679 = vector.extract_strided_slice %676 {offsets = [0, 128], sizes = [8, 64], strides = [1, 1]} : vector<8x192xf32> to vector<8x64xf32>
    %680 = vector.extract_strided_slice %670 {offsets = [0, 192], sizes = [8, 64], strides = [1, 1]} : vector<8x256xf32> to vector<8x64xf32>
    %681 = math.tanh %680 : vector<8x64xf32>
    %682 = arith.mulf %678, %638 : vector<8x64xf32>
    %683 = arith.mulf %677, %681 : vector<8x64xf32>
    %684 = arith.addf %682, %683 : vector<8x64xf32>
    %685 = math.tanh %684 : vector<8x64xf32>
    %686 = arith.mulf %679, %685 : vector<8x64xf32>
    %687 = tpu.concatenate %686, %660 in 1 : vector<8x64xf32>, vector<8x32xf32> -> vector<8x96xf32>
    %688 = arith.truncf %687 : vector<8x96xf32> to vector<8x96xbf16>
    %cst_128 = arith.constant dense<0.000000e+00> : vector<8x128xf32>
    %689 = tpu.matmul %688, %7, %cst_128 {dimension_numbers = #tpu.dot_dimension_numbers<[1], [0], [0], [1], [0, 0, 1, 1], [], []>} : vector<8x96xbf16>, vector<96x128xbf16>, vector<8x128xf32> -> vector<8x128xf32>
    %690 = arith.addf %689, %9 : vector<8x128xf32>
    %691 = vector.extract_strided_slice %690 {offsets = [0, 0], sizes = [8, 96], strides = [1, 1]} : vector<8x128xf32> to vector<8x96xf32>
    %692 = arith.negf %691 : vector<8x96xf32>
    %693 = math.exp %692 : vector<8x96xf32>
    %cst_129 = arith.constant 1.000000e+00 : f32
    %694 = vector.broadcast %cst_129 : f32 to vector<8x96xf32>
    %695 = arith.addf %694, %693 : vector<8x96xf32>
    %696 = arith.divf %694, %695 : vector<8x96xf32>
    %697 = vector.extract_strided_slice %696 {offsets = [0, 0], sizes = [8, 32], strides = [1, 1]} : vector<8x96xf32> to vector<8x32xf32>
    %698 = vector.extract_strided_slice %696 {offsets = [0, 32], sizes = [8, 32], strides = [1, 1]} : vector<8x96xf32> to vector<8x32xf32>
    %699 = vector.extract_strided_slice %696 {offsets = [0, 64], sizes = [8, 32], strides = [1, 1]} : vector<8x96xf32> to vector<8x32xf32>
    %700 = vector.extract_strided_slice %690 {offsets = [0, 96], sizes = [8, 32], strides = [1, 1]} : vector<8x128xf32> to vector<8x32xf32>
    %701 = math.tanh %700 : vector<8x32xf32>
    %702 = arith.mulf %698, %658 : vector<8x32xf32>
    %703 = arith.mulf %697, %701 : vector<8x32xf32>
    %704 = arith.addf %702, %703 : vector<8x32xf32>
    %705 = math.tanh %704 : vector<8x32xf32>
    %706 = arith.mulf %699, %705 : vector<8x32xf32>
    %707 = arith.index_cast %c14_i32 : i32 to index
    %c0_130 = arith.constant 0 : index
    %c0_131 = arith.constant 0 : index
    %708 = vector.load %arg6[%707, %c0_130, %c0_131] : memref<16x8x32xf32, #tpu.memory_space<vmem>>, vector<1x8x32xf32>
    %709 = vector.shape_cast %708 : vector<1x8x32xf32> to vector<8x32xf32>
    %710 = vector.shape_cast %706 : vector<8x32xf32> to vector<1x8x32xf32>
    tpu.vector_store %arg6[%707, %c0_130, %c0_131], %710 {strides = array<i32>} : memref<16x8x32xf32, #tpu.memory_space<vmem>>, vector<1x8x32xf32>,
    %c15_i32 = arith.constant 15 : i32
    %711 = arith.index_cast %c15_i32 : i32 to index
    %c0_132 = arith.constant 0 : index
    %c0_133 = arith.constant 0 : index
    %712 = vector.load %arg5[%711, %c0_132, %c0_133] : memref<16x8x256xf32, #tpu.memory_space<vmem>>, vector<1x8x256xf32>
    %713 = vector.shape_cast %712 : vector<1x8x256xf32> to vector<8x256xf32>
    %714 = arith.truncf %686 : vector<8x64xf32> to vector<8x64xbf16>
    %cst_134 = arith.constant dense<0.000000e+00> : vector<8x256xf32>
    %715 = tpu.matmul %714, %6, %cst_134 {dimension_numbers = #tpu.dot_dimension_numbers<[1], [0], [0], [1], [0, 0, 1, 1], [], []>} : vector<8x64xbf16>, vector<64x256xbf16>, vector<8x256xf32> -> vector<8x256xf32>
    %716 = arith.addf %713, %715 : vector<8x256xf32>
    %717 = vector.extract_strided_slice %716 {offsets = [0, 0], sizes = [8, 192], strides = [1, 1]} : vector<8x256xf32> to vector<8x192xf32>
    %718 = arith.negf %717 : vector<8x192xf32>
    %719 = math.exp %718 : vector<8x192xf32>
    %cst_135 = arith.constant 1.000000e+00 : f32
    %720 = vector.broadcast %cst_135 : f32 to vector<8x192xf32>
    %721 = arith.addf %720, %719 : vector<8x192xf32>
    %722 = arith.divf %720, %721 : vector<8x192xf32>
    %723 = vector.extract_strided_slice %722 {offsets = [0, 0], sizes = [8, 64], strides = [1, 1]} : vector<8x192xf32> to vector<8x64xf32>
    %724 = vector.extract_strided_slice %722 {offsets = [0, 64], sizes = [8, 64], strides = [1, 1]} : vector<8x192xf32> to vector<8x64xf32>
    %725 = vector.extract_strided_slice %722 {offsets = [0, 128], sizes = [8, 64], strides = [1, 1]} : vector<8x192xf32> to vector<8x64xf32>
    %726 = vector.extract_strided_slice %716 {offsets = [0, 192], sizes = [8, 64], strides = [1, 1]} : vector<8x256xf32> to vector<8x64xf32>
    %727 = math.tanh %726 : vector<8x64xf32>
    %728 = arith.mulf %724, %684 : vector<8x64xf32>
    %729 = arith.mulf %723, %727 : vector<8x64xf32>
    %730 = arith.addf %728, %729 : vector<8x64xf32>
    %731 = math.tanh %730 : vector<8x64xf32>
    %732 = arith.mulf %725, %731 : vector<8x64xf32>
    %733 = tpu.concatenate %732, %706 in 1 : vector<8x64xf32>, vector<8x32xf32> -> vector<8x96xf32>
    %734 = arith.truncf %733 : vector<8x96xf32> to vector<8x96xbf16>
    %cst_136 = arith.constant dense<0.000000e+00> : vector<8x128xf32>
    %735 = tpu.matmul %734, %7, %cst_136 {dimension_numbers = #tpu.dot_dimension_numbers<[1], [0], [0], [1], [0, 0, 1, 1], [], []>} : vector<8x96xbf16>, vector<96x128xbf16>, vector<8x128xf32> -> vector<8x128xf32>
    %736 = arith.addf %735, %9 : vector<8x128xf32>
    %737 = vector.extract_strided_slice %736 {offsets = [0, 0], sizes = [8, 96], strides = [1, 1]} : vector<8x128xf32> to vector<8x96xf32>
    %738 = arith.negf %737 : vector<8x96xf32>
    %739 = math.exp %738 : vector<8x96xf32>
    %cst_137 = arith.constant 1.000000e+00 : f32
    %740 = vector.broadcast %cst_137 : f32 to vector<8x96xf32>
    %741 = arith.addf %740, %739 : vector<8x96xf32>
    %742 = arith.divf %740, %741 : vector<8x96xf32>
    %743 = vector.extract_strided_slice %742 {offsets = [0, 0], sizes = [8, 32], strides = [1, 1]} : vector<8x96xf32> to vector<8x32xf32>
    %744 = vector.extract_strided_slice %742 {offsets = [0, 32], sizes = [8, 32], strides = [1, 1]} : vector<8x96xf32> to vector<8x32xf32>
    %745 = vector.extract_strided_slice %742 {offsets = [0, 64], sizes = [8, 32], strides = [1, 1]} : vector<8x96xf32> to vector<8x32xf32>
    %746 = vector.extract_strided_slice %736 {offsets = [0, 96], sizes = [8, 32], strides = [1, 1]} : vector<8x128xf32> to vector<8x32xf32>
    %747 = math.tanh %746 : vector<8x32xf32>
    %748 = arith.mulf %744, %704 : vector<8x32xf32>
    %749 = arith.mulf %743, %747 : vector<8x32xf32>
    %750 = arith.addf %748, %749 : vector<8x32xf32>
    %751 = math.tanh %750 : vector<8x32xf32>
    %752 = arith.mulf %745, %751 : vector<8x32xf32>
    %753 = arith.index_cast %c15_i32 : i32 to index
    %c0_138 = arith.constant 0 : index
    %c0_139 = arith.constant 0 : index
    %754 = vector.load %arg6[%753, %c0_138, %c0_139] : memref<16x8x32xf32, #tpu.memory_space<vmem>>, vector<1x8x32xf32>
    %755 = vector.shape_cast %754 : vector<1x8x32xf32> to vector<8x32xf32>
    %756 = vector.shape_cast %752 : vector<8x32xf32> to vector<1x8x32xf32>
    tpu.vector_store %arg6[%753, %c0_138, %c0_139], %756 {strides = array<i32>} : memref<16x8x32xf32, #tpu.memory_space<vmem>>, vector<1x8x32xf32>,
    %c16_i32 = arith.constant 16 : i32
    %c0_140 = arith.constant 0 : index
    %c0_141 = arith.constant 0 : index
    %c0_142 = arith.constant 0 : index
    %757 = vector.load %arg6[%c0_140, %c0_141, %c0_142] : memref<16x8x32xf32, #tpu.memory_space<vmem>>, vector<16x8x32xf32>
    %758 = vector.shape_cast %4 : vector<1x32xf32> to vector<1x1x32xf32>
    %759 = vector.broadcast %758 : vector<1x1x32xf32> to vector<16x8x32xf32>
    %760 = arith.mulf %757, %759 : vector<16x8x32xf32>
    %cst_143 = arith.constant dense<0.000000e+00> : vector<16x8xf32>
    %761 = vector.multi_reduction <add>, %760, %cst_143 [2] : vector<16x8x32xf32> to vector<16x8xf32>
    %762 = vector.broadcast %5 : vector<1x1xf32> to vector<16x8xf32>
    %763 = arith.addf %761, %762 : vector<16x8xf32>
    %c0_144 = arith.constant 0 : index
    %c0_145 = arith.constant 0 : index
    %764 = vector.load %arg4[%c0_144, %c0_145] : memref<16x8xf32, #tpu.memory_space<vmem>>, vector<16x8xf32>
    tpu.vector_store %arg4[%c0_144, %c0_145], %763 {strides = array<i32>} : memref<16x8xf32, #tpu.memory_space<vmem>>, vector<16x8xf32>,
    return
  }
}

</mosaic_0001>

<bundles_post_ra>
// kernel: lstm_simulator_forward.1
= control target key start
LH: loop header
LB: loop body
LE: loop exit
PB: predicated region body
PF: predicated region fallthrough
CT: control target
= control target key end

     0   :  { %v3889_v1 = vmov 0   ;;  %v39_v10 = vlaneseq  ;;  %s3890_s9 = smov 64   ;;  %v3891_v44 = vmov 0.0   ;;  %vm3892_vm0 = vmmov 0   ;;  %s3893_s24 = smov 32   ;;  %s5110_s1 = inlined_call_operand.vmem [shape: bf16[64,256], index: 1, kind: input, shape index: {}]   ;;  %s5111_s0 = inlined_call_operand.vmem [shape: f32[16,8,1], index: 0, kind: input, shape index: {}]   ;;  %s5112_s3 = inlined_call_operand.vmem [shape: f32[3,256], index: 3, kind: input, shape index: {}]   ;;  %s5113_s2 = inlined_call_operand.vmem [shape: bf16[96,128], index: 2, kind: input, shape index: {}]   ;;  %s5114_s4 = inlined_call_operand.vmem [shape: f32[16,8], index: 4, kind: output, shape index: {}]  }
   0x1   :  { %v3923_v0 = vld [vmem:[%s5110_s1 + $0x4] ss:$8 sps:$4 sm:$0xff]   ;;  %350 = vmatprep.mubr.bf16.mxu0 %v3889_v1  ;;  %3520 = vset.pattern.permute.xlu0 %v3889_v1  ;;  %v3930_v2 = vld [vmem:[%s5110_s1] ss:$8 sps:$4 sm:$0xff]   ;;  %v3937_v3 = vld [vmem:[%s5110_s1 + $0x14] ss:$8 sps:$4 sm:$0xff]  }
   0x2   :  { %3521 = vset.pattern.permute.xlu1 %v3889_v1  ;;  %318 = vmatprep.subr.bf16.mxu0 %v3923_v0  ;;  %v3943_v4 = vld [vmem:[%s5110_s1 + $0x10] ss:$8 sps:$4 sm:$0xff]   ;;  %v3949_v5 = vld [vmem:[%s5110_s1 + $0x24] ss:$8 sps:$4 sm:$0xff]   ;;  %v3958_v7 = vld [vmem:[%s5110_s1 + $0x20] ss:$8 sps:$4 sm:$0xff]  }
   0x3   :  { %319 = vmatpush1.bf16.msra.mxu0 %v3930_v2  ;;  %v43_v6 = vld [vmem:[%s5111_s0] sm:$0xff]  ;;  %v3964_v8 = vld [vmem:[%s5110_s1 + $0x34] ss:$8 sps:$4 sm:$0xff]   ;;  %v3970_v9 = vld [vmem:[%s5110_s1 + $0x30] ss:$8 sps:$4 sm:$0xff]   ;;  %v3986_v11 = vshrl.u32 %v39_v10, 7  ;;  %3256 = vmatprep.subr.bf16.mxu1 %v3891_v44 }
   0x4   :  { %320 = vmatprep.subr.bf16.mxu0 %v3937_v3  ;;  %61 = vperm.xlu0 %3520, %v43_v6   ;;  %v3992_v13 = vld [vmem:[%s5112_s3] sm:$0x77]  ;;  %v44_v30 = vld [vmem:[%s5111_s0 + $0x8] sm:$0xff]  ;;  %v4035_v47 = vld [vmem:[%s5113_s2 + $0x10] sm:$0xff]   ;;  %vm314_vm1 = vcmask 523264   ;;  %vm429_vm2 = vcmask 785408  }
   0x5   :  { %v146_v12 = vsub.s32 4, %v3986_v11  ;;  %v196_v15 = vsub.s32 5, %v3986_v11  ;;  %v142_v16 = vsub.s32 0, %v3986_v11  ;;  %v192_v20 = vsub.s32 1, %v3986_v11  ;;  %v4022_v45 = vld [vmem:[%s5113_s2] sm:$0xff]   ;;  %v4028_v46 = vld [vmem:[%s5113_s2 + $0x8] sm:$0xff]   ;;  %3268 = vmatprep.mubr.msk.bf16.mxu1 %vm3892_vm0, %v3891_v44 }
   0x6   :  { %3257 = vmatpush3.bf16.msra.mxu1 %v4022_v45  ;;  %v4042_v48 = vld [vmem:[%s5113_s2 + $0x18] sm:$0xff]   ;;  %v4049_v49 = vld [vmem:[%s5113_s2 + $0x20] sm:$0xff]   ;;  %v4059_v53 = vld [vmem:[%s5113_s2 + $0x28] sm:$0xff]   ;;  %v41_v6 = vsub.s32 2, %v3986_v11  ;;  %s3894_s11 = smov 96   ;;  %vm501_vm3 = vcmask 261120  }
   0x7   :  { %321 = vmatpush1.bf16.msra.mxu0 %v3943_v4  ;;  %v147_v14 = vrot.slane %v3992_v13, %v146_v12  ;;  %v197_v18 = vrot.slane %v3992_v13, %v196_v15  ;;  %v143_v31 = vrot.slane %v3992_v13, %v142_v16  ;;  %v193_v33 = vrot.slane %v3992_v13, %v192_v20 }
   0x8   :  { %322 = vmatprep.subr.bf16.mxu0 %v3949_v5  ;;  %3258 = vmatprep.subr.bf16.mxu1 %v3891_v44  ;;  %v4098_v15 = vrot.slane %v3992_v13, %v41_v6  ;;  %vm3021_vm4 = vcmask 1041409   ;;  %vm3023_vm5 = vcmask 1042434   ;;  %vm3025_vm6 = vcmask 1043459  }
   0x9   :  { %v3997_v17 = vrot.slane %v147_v14, %v142_v16  ;;  %v4002_v22 = vrot.slane %v197_v18, %v192_v20  ;;  %v4010_v32 = vrot.slane %v143_v31, %v142_v16  ;;  %v4014_v35 = vrot.slane %v193_v33, %v192_v20 }
   0xa   :  { %3259 = vmatpush3.bf16.msra.mxu1 %v4028_v46  ;;  %vm3027_vm7 = vcmask 1044484   ;;  %vm3029_vm8 = vcmask 1045509   ;;  %vm3031_vm9 = vcmask 1046534   ;;  %vm3033_vm10 = vcmask 1047559  }
   0xb   :  { %323 = vmatpush1.bf16.msra.mxu0 %v3958_v7  ;;  %3260 = vmatprep.subr.bf16.mxu1 %v3891_v44  ;;  %vm3044_vm11 = vcmask 64512  }
   0xc   :  { %324 = vmatprep.subr.bf16.mxu0 %v3964_v8 }
   0xe   :  { %3261 = vmatpush3.bf16.msra.mxu1 %v4035_v47 }
   0xf   :  { %325 = vmatpush1.bf16.msra.mxu0 %v3970_v9  ;;  %3262 = vmatprep.subr.bf16.mxu1 %v3891_v44 }
  0x10   :  { %510 = vmatprep.subr.bf16.mxu0 %v3923_v0 }
  0x12   :  { %351 = vmatmul.mubr.bf16.vlgmr.msra.gmra.mrb[0].mxu0 %v3889_v1  ;;  %3263 = vmatpush3.bf16.msra.mxu1 %v4042_v48 }
  0x13   :  { %511 = vmatpush1.bf16.msra.mxu0 %v3930_v2  ;;  %542 = vmatprep.mubr.bf16.mxu0 %v3889_v1 }
  0x14   :  { %512 = vmatprep.subr.bf16.mxu0 %v3937_v3  ;;  %3264 = vmatprep.subr.bf16.mxu1 %v3891_v44 }
  0x16   :  { %3265 = vmatpush3.bf16.msra.mxu1 %v4049_v49 }
  0x17   :  { %513 = vmatpush1.bf16.msra.mxu0 %v3943_v4  ;;  %3266 = vmatprep.subr.bf16.mxu1 %v3891_v44 }
  0x18   :  { %514 = vmatprep.subr.bf16.mxu0 %v3949_v5 }
  0x1a   :  { %3267 = vmatpush3.bf16.msra.mxu1 %v4059_v53 }
  0x1b   :  { %515 = vmatpush1.bf16.msra.mxu0 %v3958_v7  ;;  %3272 = vmatprep.subr.bf16.mxu1 %v3891_v44 }
  0x1c   :  { %516 = vmatprep.subr.bf16.mxu0 %v3964_v8 }
  0x1f   :  { %517 = vmatpush1.bf16.msra.mxu0 %v3970_v9 }
  0x20   :  { %665 = vmatprep.subr.bf16.mxu0 %v3923_v0 }
  0x83   :  { %v62_v19 = vpop.permute.xlu0 %61 }
  0x84   :  { %v159_v21 = vmul.f32 %v3997_v17, %v62_v19  ;;  %v158_v34 = vmul.f32 %v4010_v32, %v62_v19 }
  0x86   :  { %v209_v23 = vadd.f32 %v4002_v22, %v159_v21  ;;  %v208_v36 = vadd.f32 %v4014_v35, %v158_v34 }
  0xe5   :  { %v352_v24 = vpop.f32.mrb[0].mxu0 }
  0xe6   :  { %v354_v25 = vpop.f32.mrb[1].mxu0  ;;  %v359_v37 = vadd.f32 %v352_v24, %v208_v36 }
  0xe7   :  { %v360_v26 = vadd.f32 %v354_v25, %v209_v23  ;;  %v356_v27 = vpop.f32.mrb[2].mxu0 }
  0xe8   :  { %v357_v28 = vpop.f32.mrb[3].mxu0  ;;  %v3059_v38 = vmul.f32 -1.442695, %v359_v37 }
  0xe9   :  { %3540 = vtanh.f32 %v360_v26  ;;  %v3060_v55 = vmul.f32 -1.442695, %v360_v26 }
  0xea   :  { %3542 = vpow2.f32 %v3059_v38 }
  0xf3   :  { %v3541_v29 = vpop.eup %3540 }
  0xf4   :  { %376 = vrot.lane.b32.xlu0 %v3541_v29, %s3890_s9  ;;  %v3543_v39 = vpop.eup %3542 }
  0xf5   :  { %v367_v40 = vadd.f32 1.0, %v3543_v39 }
  0xf7   :  { %3544 = vrcp.f32 %v367_v40 }
  0xf8   :  { %66 = vperm.xlu0 %3520, %v44_v30  }
 0x101   :  { %v3545_v41 = vpop.eup %3544 }
 0x102   :  { %v374_v50 = vmul.f32 0.0, %v3545_v41 }
 0x166   :  { %v377_v42 = vpop.permute.xlu0 %376 }
 0x167   :  { %v379_v43 = vmul.f32 %v3545_v41, %v377_v42 }
 0x169   :  { %381 = vrot.lane.b32.xlu1 %v379_v43, %s3890_s9 }
 0x177   :  { %v67_v12 = vpop.permute.xlu0 %66 }
 0x178   :  { %v161_v14 = vmul.f32 %v3997_v17, %v67_v12  ;;  %v160_v30 = vmul.f32 %v4010_v32, %v67_v12 }
 0x17a   :  { %v211_v21 = vadd.f32 %v4002_v22, %v161_v14  ;;  %v210_v31 = vadd.f32 %v4014_v35, %v160_v30 }
 0x1db   :  { %v382_v51 = vpop.permute.xlu1 %381 }
 0x1dc   :  { %v4054_v52 = vadd.f32 %v382_v51, %v374_v50 }
 0x1de   :  { %3546 = vtanh.f32 %v4054_v52 }
 0x1df   :  { %3548 = vpow2.f32 %v3060_v55 }
 0x1e8   :  { %v3547_v54 = vpop.eup %3546 }
 0x1e9   :  { %387 = vrot.lane.b32.xlu1 %v3547_v54, %s3890_s9  ;;  %v3549_v56 = vpop.eup %3548 }
 0x1ea   :  { %v368_v57 = vadd.f32 1.0, %v3549_v56 }
 0x1ec   :  { %3550 = vrcp.f32 %v368_v57 }
 0x1f6   :  { %v3551_v58 = vpop.eup %3550 }
 0x25b   :  { %v388_v59 = vpop.permute.xlu1 %387 }
 0x25c   :  { %v390_v60 = vmul.f32 %v3551_v58, %v388_v59 }
 0x25e   :  { %v391_v61 = vsel %vm314_vm1, %v390_v60, 0.0  ;;  %v506_v62 = vpack.c.bf16 %v390_v60, %v390_v60 }
 0x25f   :  { %v392_v63 = vpack.c.bf16 %v391_v61, %v391_v61 }
 0x260   :  { %3069 = vmatmul.mubr.msk.bf16.vlgmr.msra.gmra.mrb[4].mxu0 %vm314_vm1, %v506_v62  ;;  %v45_v62 = vld [vmem:[%s5111_s0 + $0x10] sm:$0xff] }
 0x261   :  { %3269 = vmatmul.mubr.msk.bf16.vlgmr.msra.gmra.mrb[0].mxu1 %vm429_vm2, %v392_v63  ;;  %666 = vmatpush1.bf16.msra.mxu0 %v3930_v2 }
 0x262   :  { %3273 = vmatpush3.bf16.msra.mxu1 %v4022_v45  ;;  %667 = vmatprep.subr.bf16.mxu0 %v3937_v3 }
 0x263   :  { %3274 = vmatprep.subr.bf16.mxu1 %v3891_v44  ;;  %697 = vmatprep.mubr.bf16.mxu0 %v3889_v1 }
 0x264   :  { %3284 = vmatprep.mubr.msk.bf16.mxu1 %vm3892_vm0, %v3891_v44 }
 0x265   :  { %668 = vmatpush1.bf16.msra.mxu0 %v3943_v4 }
 0x266   :  { %3275 = vmatpush3.bf16.msra.mxu1 %v4028_v46  ;;  %669 = vmatprep.subr.bf16.mxu0 %v3949_v5 }
 0x267   :  { %3276 = vmatprep.subr.bf16.mxu1 %v3891_v44 }
 0x269   :  { %670 = vmatpush1.bf16.msra.mxu0 %v3958_v7 }
 0x26a   :  { %3277 = vmatpush3.bf16.msra.mxu1 %v4035_v47  ;;  %671 = vmatprep.subr.bf16.mxu0 %v3964_v8 }
 0x26b   :  { %3278 = vmatprep.subr.bf16.mxu1 %v3891_v44 }
 0x26d   :  { %672 = vmatpush1.bf16.msra.mxu0 %v3970_v9 }
 0x26e   :  { %3279 = vmatpush3.bf16.msra.mxu1 %v4042_v48  ;;  %3288 = vmatprep.subr.bf16.mxu0 %v3891_v44 }
 0x26f   :  { %3280 = vmatprep.subr.bf16.mxu1 %v3891_v44 }
 0x272   :  { %3281 = vmatpush3.bf16.msra.mxu1 %v4049_v49 }
 0x273   :  { %3282 = vmatprep.subr.bf16.mxu1 %v3891_v44 }
 0x276   :  { %3283 = vmatpush3.bf16.msra.mxu1 %v4059_v53 }
 0x277   :  { %820 = vmatprep.subr.bf16.mxu1 %v3923_v0 }
 0x333   :  { %v544_v16 = vpop.f32.mrb[4].mxu0 }
 0x334   :  { %v467_v18 = vpop.f32.mrb[0].mxu1  ;;  %v546_v19 = vpop.f32.mrb[5].mxu0  ;;  %v551_v33 = vadd.f32 %v544_v16, %v210_v31 }
 0x335   :  { %v468_v20 = vadd.f32 %v467_v18, %v4098_v15  ;;  %v3270_v23 = vpop.f32.mrb[1].mxu1  ;;  %v548_v24 = vpop.f32.mrb[6].mxu0  ;;  %v552_v27 = vadd.f32 %v546_v19, %v211_v21 }
 0x336   :  { %v470_v25 = vpop.f32.mrb[2].mxu1  ;;  %v549_v26 = vpop.f32.mrb[7].mxu0  ;;  %v3070_v36 = vmul.f32 -1.442695, %v551_v33 }
 0x337   :  { %3552 = vtanh.f32 %v468_v20  ;;  %v3271_v28 = vpop.f32.mrb[3].mxu1  ;;  %v3068_v34 = vmul.f32 -1.442695, %v468_v20  ;;  %v3071_v12 = vmul.f32 -1.442695, %v552_v27 }
 0x338   :  { %3554 = vtanh.f32 %v552_v27 }
 0x339   :  { %3556 = vpow2.f32 %v3068_v34 }
 0x33a   :  { %3558 = vpow2.f32 %v3070_v36 }
 0x341   :  { %v3553_v29 = vpop.eup %3552 }
 0x342   :  { %482 = vrot.lane.b32.xlu1 %v3553_v29, %s3893_s24  ;;  %v3555_v13 = vpop.eup %3554 }
 0x343   :  { %568 = vrot.lane.b32.xlu0 %v3555_v13, %s3890_s9  ;;  %v3557_v37 = vpop.eup %3556 }
 0x344   :  { %v476_v38 = vadd.f32 1.0, %v3557_v37  ;;  %v3559_v39 = vpop.eup %3558 }
 0x345   :  { %v559_v40 = vadd.f32 1.0, %v3559_v39 }
 0x346   :  { %3560 = vrcp.f32 %v476_v38 }
 0x347   :  { %3562 = vrcp.f32 %v559_v40 }
 0x350   :  { %v3561_v41 = vpop.eup %3560 }
 0x351   :  { %v3563_v50 = vpop.eup %3562  ;;  %v480_v55 = vmul.f32 0.0, %v3561_v41 }
 0x352   :  { %v566_v58 = vmul.f32 %v3563_v50, %v4054_v52 }
 0x3b4   :  { %v483_v42 = vpop.permute.xlu1 %482 }
 0x3b5   :  { %v485_v43 = vmul.f32 %v3561_v41, %v483_v42  ;;  %v569_v51 = vpop.permute.xlu0 %568 }
 0x3b6   :  { %v571_v54 = vmul.f32 %v3563_v50, %v569_v51 }
 0x3b7   :  { %487 = vrot.lane.b32.xlu1 %v485_v43, %s3893_s24 }
 0x3b8   :  { %573 = vrot.lane.b32.xlu0 %v571_v54, %s3890_s9 }
 0x429   :  { %v488_v56 = vpop.permute.xlu1 %487 }
 0x42a   :  { %v4108_v57 = vadd.f32 %v488_v56, %v480_v55  ;;  %v574_v59 = vpop.permute.xlu0 %573 }
 0x42b   :  { %v4112_v60 = vadd.f32 %v574_v59, %v566_v58 }
 0x42c   :  { %3564 = vtanh.f32 %v4108_v57 }
 0x42d   :  { %3566 = vtanh.f32 %v4112_v60 }
 0x42e   :  { %3568 = vpow2.f32 %v3071_v12 }
 0x436   :  { %v3565_v61 = vpop.eup %3564 }
 0x437   :  { %493 = vrot.lane.b32.xlu1 %v3565_v61, %s3893_s24  ;;  %v3567_v63 = vpop.eup %3566 }
 0x438   :  { %579 = vrot.lane.b32.xlu0 %v3567_v63, %s3890_s9  ;;  %v3569_v52 = vpop.eup %3568 }
 0x439   :  { %v560_v14 = vadd.f32 1.0, %v3569_v52 }
 0x43b   :  { %71 = vperm.xlu1 %3521, %v45_v62   ;;  %3570 = vrcp.f32 %v560_v14 }
 0x445   :  { %v3571_v19 = vpop.eup %3570 }
 0x4a9   :  { %v494_v16 = vpop.permute.xlu1 %493 }
 0x4aa   :  { %v4120_v18 = vmul.f32 %v3561_v41, %v494_v16  ;;  %v580_v20 = vpop.permute.xlu0 %579 }
 0x4ab   :  { %v582_v21 = vmul.f32 %v3571_v19, %v580_v20 }
 0x4ad   :  { %v661_v23 = vpack.c.bf16 %v582_v21, %v582_v21  ;;  %v583_v24 = vsel %vm314_vm1, %v582_v21, %v4120_v18 }
 0x4ae   :  { %v584_v25 = vpack.c.bf16 %v583_v24, %v583_v24 }
 0x4af   :  { %3074 = vmatmul.mubr.msk.bf16.vlgmr.msra.gmra.mrb[8].mxu0 %vm314_vm1, %v661_v23 }
 0x4b0   :  { %3285 = vmatmul.mubr.msk.bf16.vlgmr.msra.gmra.mrb[4].mxu1 %vm429_vm2, %v584_v25  ;;  %3289 = vmatpush3.bf16.msra.mxu0 %v4022_v45 }
 0x4b1   :  { %3290 = vmatprep.subr.bf16.mxu0 %v3891_v44  ;;  %821 = vmatpush1.bf16.msra.mxu1 %v3930_v2 }
 0x4b2   :  { %822 = vmatprep.subr.bf16.mxu1 %v3937_v3  ;;  %852 = vmatprep.mubr.bf16.mxu1 %v3889_v1 }
 0x4b3   :  { %3300 = vmatprep.mubr.msk.bf16.mxu0 %vm3892_vm0, %v3891_v44 }
 0x4b4   :  { %3291 = vmatpush3.bf16.msra.mxu0 %v4028_v46 }
 0x4b5   :  { %3292 = vmatprep.subr.bf16.mxu0 %v3891_v44  ;;  %823 = vmatpush1.bf16.msra.mxu1 %v3943_v4 }
 0x4b6   :  { %824 = vmatprep.subr.bf16.mxu1 %v3949_v5 }
 0x4b8   :  { %3293 = vmatpush3.bf16.msra.mxu0 %v4035_v47 }
 0x4b9   :  { %3294 = vmatprep.subr.bf16.mxu0 %v3891_v44  ;;  %825 = vmatpush1.bf16.msra.mxu1 %v3958_v7 }
 0x4ba   :  { %826 = vmatprep.subr.bf16.mxu1 %v3964_v8  ;;  %v72_v26 = vpop.permute.xlu1 %71 }
 0x4bb   :  { %v163_v27 = vmul.f32 %v3997_v17, %v72_v26  ;;  %v162_v42 = vmul.f32 %v4010_v32, %v72_v26  ;;  %v46_v26 = vld [vmem:[%s5111_s0 + $0x18] sm:$0xff] }
 0x4bc   :  { %3295 = vmatpush3.bf16.msra.mxu0 %v4042_v48 }
 0x4bd   :  { %3296 = vmatprep.subr.bf16.mxu0 %v3891_v44  ;;  %827 = vmatpush1.bf16.msra.mxu1 %v3970_v9  ;;  %v213_v29 = vadd.f32 %v4002_v22, %v163_v27  ;;  %v212_v43 = vadd.f32 %v4014_v35, %v162_v42 }
 0x4be   :  { %3304 = vmatprep.subr.bf16.mxu1 %v3891_v44 }
 0x4c0   :  { %3297 = vmatpush3.bf16.msra.mxu0 %v4049_v49 }
 0x4c1   :  { %3298 = vmatprep.subr.bf16.mxu0 %v3891_v44 }
 0x4c4   :  { %3299 = vmatpush3.bf16.msra.mxu0 %v4059_v53 }
 0x4c5   :  { %975 = vmatprep.subr.bf16.mxu0 %v3923_v0 }
 0x582   :  { %v699_v28 = vpop.f32.mrb[8].mxu0 }
 0x583   :  { %v622_v13 = vpop.f32.mrb[4].mxu1  ;;  %v701_v30 = vpop.f32.mrb[9].mxu0  ;;  %v706_v50 = vadd.f32 %v699_v28, %v212_v43 }
 0x584   :  { %v623_v31 = vadd.f32 %v622_v13, %v4098_v15  ;;  %v3286_v33 = vpop.f32.mrb[5].mxu1  ;;  %v703_v34 = vpop.f32.mrb[10].mxu0  ;;  %v707_v38 = vadd.f32 %v701_v30, %v213_v29 }
 0x585   :  { %v625_v36 = vpop.f32.mrb[6].mxu1  ;;  %v704_v37 = vpop.f32.mrb[11].mxu0  ;;  %v3075_v54 = vmul.f32 -1.442695, %v706_v50 }
 0x586   :  { %3572 = vtanh.f32 %v623_v31  ;;  %v3287_v39 = vpop.f32.mrb[7].mxu1  ;;  %v3073_v51 = vmul.f32 -1.442695, %v623_v31  ;;  %v3076_v27 = vmul.f32 -1.442695, %v707_v38 }
 0x587   :  { %3574 = vtanh.f32 %v707_v38 }
 0x588   :  { %3576 = vpow2.f32 %v3073_v51 }
 0x589   :  { %3578 = vpow2.f32 %v3075_v54 }
 0x590   :  { %v3573_v40 = vpop.eup %3572 }
 0x591   :  { %637 = vrot.lane.b32.xlu0 %v3573_v40, %s3893_s24  ;;  %v3575_v41 = vpop.eup %3574 }
 0x592   :  { %723 = vrot.lane.b32.xlu1 %v3575_v41, %s3890_s9  ;;  %v3577_v55 = vpop.eup %3576 }
 0x593   :  { %v631_v56 = vadd.f32 1.0, %v3577_v55  ;;  %v3579_v58 = vpop.eup %3578 }
 0x594   :  { %v714_v59 = vadd.f32 1.0, %v3579_v58 }
 0x595   :  { %3580 = vrcp.f32 %v631_v56 }
 0x596   :  { %3582 = vrcp.f32 %v714_v59 }
 0x59f   :  { %v3581_v61 = vpop.eup %3580 }
 0x5a0   :  { %v3583_v12 = vpop.eup %3582  ;;  %v635_v16 = vmul.f32 %v3581_v61, %v4108_v57 }
 0x5a1   :  { %v721_v21 = vmul.f32 %v3583_v12, %v4112_v60 }
 0x603   :  { %v638_v62 = vpop.permute.xlu0 %637 }
 0x604   :  { %v640_v63 = vmul.f32 %v3581_v61, %v638_v62  ;;  %v724_v52 = vpop.permute.xlu1 %723 }
 0x605   :  { %v726_v14 = vmul.f32 %v3583_v12, %v724_v52 }
 0x606   :  { %642 = vrot.lane.b32.xlu0 %v640_v63, %s3893_s24 }
 0x607   :  { %728 = vrot.lane.b32.xlu1 %v726_v14, %s3890_s9 }
 0x678   :  { %v643_v19 = vpop.permute.xlu0 %642 }
 0x679   :  { %v4159_v20 = vadd.f32 %v643_v19, %v635_v16  ;;  %v729_v23 = vpop.permute.xlu1 %728 }
 0x67a   :  { %v4163_v24 = vadd.f32 %v729_v23, %v721_v21 }
 0x67b   :  { %3584 = vtanh.f32 %v4159_v20 }
 0x67c   :  { %3586 = vtanh.f32 %v4163_v24 }
 0x67d   :  { %3588 = vpow2.f32 %v3076_v27 }
 0x685   :  { %v3585_v25 = vpop.eup %3584 }
 0x686   :  { %648 = vrot.lane.b32.xlu0 %v3585_v25, %s3893_s24  ;;  %v3587_v57 = vpop.eup %3586 }
 0x687   :  { %734 = vrot.lane.b32.xlu1 %v3587_v57, %s3890_s9  ;;  %v3589_v60 = vpop.eup %3588 }
 0x688   :  { %v715_v28 = vadd.f32 1.0, %v3589_v60 }
 0x68a   :  { %76 = vperm.xlu0 %3520, %v46_v26   ;;  %3590 = vrcp.f32 %v715_v28 }
 0x694   :  { %v3591_v30 = vpop.eup %3590 }
 0x6f8   :  { %v649_v29 = vpop.permute.xlu0 %648 }
 0x6f9   :  { %v4171_v13 = vmul.f32 %v3581_v61, %v649_v29  ;;  %v735_v31 = vpop.permute.xlu1 %734 }
 0x6fa   :  { %v737_v33 = vmul.f32 %v3591_v30, %v735_v31 }
 0x6fc   :  { %v816_v34 = vpack.c.bf16 %v737_v33, %v737_v33  ;;  %v738_v36 = vsel %vm314_vm1, %v737_v33, %v4171_v13 }
 0x6fd   :  { %v739_v37 = vpack.c.bf16 %v738_v36, %v738_v36 }
 0x6fe   :  { %3079 = vmatmul.mubr.msk.bf16.vlgmr.msra.gmra.mrb[8].mxu1 %vm314_vm1, %v816_v34 }
 0x6ff   :  { %3301 = vmatmul.mubr.msk.bf16.vlgmr.msra.gmra.mrb[12].mxu0 %vm429_vm2, %v739_v37  ;;  %3305 = vmatpush3.bf16.msra.mxu1 %v4022_v45 }
 0x700   :  { %3306 = vmatprep.subr.bf16.mxu1 %v3891_v44  ;;  %976 = vmatpush1.bf16.msra.mxu0 %v3930_v2 }
 0x701   :  { %977 = vmatprep.subr.bf16.mxu0 %v3937_v3  ;;  %1007 = vmatprep.mubr.bf16.mxu0 %v3889_v1 }
 0x702   :  { %3316 = vmatprep.mubr.msk.bf16.mxu1 %vm3892_vm0, %v3891_v44 }
 0x703   :  { %3307 = vmatpush3.bf16.msra.mxu1 %v4028_v46 }
 0x704   :  { %3308 = vmatprep.subr.bf16.mxu1 %v3891_v44  ;;  %978 = vmatpush1.bf16.msra.mxu0 %v3943_v4 }
 0x705   :  { %979 = vmatprep.subr.bf16.mxu0 %v3949_v5 }
 0x707   :  { %3309 = vmatpush3.bf16.msra.mxu1 %v4035_v47 }
 0x708   :  { %3310 = vmatprep.subr.bf16.mxu1 %v3891_v44  ;;  %980 = vmatpush1.bf16.msra.mxu0 %v3958_v7 }
 0x709   :  { %981 = vmatprep.subr.bf16.mxu0 %v3964_v8  ;;  %v77_v38 = vpop.permute.xlu0 %76 }
 0x70a   :  { %v165_v39 = vmul.f32 %v3997_v17, %v77_v38  ;;  %v164_v63 = vmul.f32 %v4010_v32, %v77_v38 }
 0x70b   :  { %3311 = vmatpush3.bf16.msra.mxu1 %v4042_v48 }
 0x70c   :  { %3312 = vmatprep.subr.bf16.mxu1 %v3891_v44  ;;  %982 = vmatpush1.bf16.msra.mxu0 %v3970_v9  ;;  %v215_v50 = vadd.f32 %v4002_v22, %v165_v39  ;;  %v214_v12 = vadd.f32 %v4014_v35, %v164_v63  ;;  %v47_v39 = vld [vmem:[%s5111_s0 + $0x20] sm:$0xff] }
 0x70d   :  { %3320 = vmatprep.subr.bf16.mxu0 %v3891_v44 }
 0x70f   :  { %3313 = vmatpush3.bf16.msra.mxu1 %v4049_v49 }
 0x710   :  { %3314 = vmatprep.subr.bf16.mxu1 %v3891_v44 }
 0x713   :  { %3315 = vmatpush3.bf16.msra.mxu1 %v4059_v53 }
 0x714   :  { %1130 = vmatprep.subr.bf16.mxu1 %v3923_v0 }
 0x7d1   :  { %v854_v40 = vpop.f32.mrb[8].mxu1 }
 0x7d2   :  { %v777_v41 = vpop.f32.mrb[12].mxu0  ;;  %v856_v42 = vpop.f32.mrb[9].mxu1  ;;  %v861_v52 = vadd.f32 %v854_v40, %v214_v12 }
 0x7d3   :  { %v778_v43 = vadd.f32 %v777_v41, %v4098_v15  ;;  %v3302_v51 = vpop.f32.mrb[13].mxu0  ;;  %v858_v54 = vpop.f32.mrb[10].mxu1  ;;  %v862_v58 = vadd.f32 %v856_v42, %v215_v50 }
 0x7d4   :  { %v780_v55 = vpop.f32.mrb[14].mxu0  ;;  %v859_v56 = vpop.f32.mrb[11].mxu1  ;;  %v3080_v16 = vmul.f32 -1.442695, %v861_v52 }
 0x7d5   :  { %3592 = vtanh.f32 %v778_v43  ;;  %v3303_v59 = vpop.f32.mrb[15].mxu0  ;;  %v3078_v14 = vmul.f32 -1.442695, %v778_v43  ;;  %v3081_v40 = vmul.f32 -1.442695, %v862_v58 }
 0x7d6   :  { %3594 = vtanh.f32 %v862_v58 }
 0x7d7   :  { %3596 = vpow2.f32 %v3078_v14 }
 0x7d8   :  { %3598 = vpow2.f32 %v3080_v16 }
 0x7df   :  { %v3593_v61 = vpop.eup %3592 }
 0x7e0   :  { %792 = vrot.lane.b32.xlu1 %v3593_v61, %s3893_s24  ;;  %v3595_v62 = vpop.eup %3594 }
 0x7e1   :  { %878 = vrot.lane.b32.xlu0 %v3595_v62, %s3890_s9  ;;  %v3597_v19 = vpop.eup %3596 }
 0x7e2   :  { %v786_v21 = vadd.f32 1.0, %v3597_v19  ;;  %v3599_v23 = vpop.eup %3598 }
 0x7e3   :  { %v869_v25 = vadd.f32 1.0, %v3599_v23 }
 0x7e4   :  { %3600 = vrcp.f32 %v786_v21 }
 0x7e5   :  { %3602 = vrcp.f32 %v869_v25 }
 0x7ee   :  { %v3601_v26 = vpop.eup %3600 }
 0x7ef   :  { %v3603_v60 = vpop.eup %3602  ;;  %v790_v30 = vmul.f32 %v3601_v26, %v4159_v20 }
 0x7f0   :  { %v876_v34 = vmul.f32 %v3603_v60, %v4163_v24 }
 0x852   :  { %v793_v57 = vpop.permute.xlu1 %792 }
 0x853   :  { %v795_v27 = vmul.f32 %v3601_v26, %v793_v57  ;;  %v879_v28 = vpop.permute.xlu0 %878 }
 0x854   :  { %v881_v29 = vmul.f32 %v3603_v60, %v879_v28 }
 0x855   :  { %797 = vrot.lane.b32.xlu1 %v795_v27, %s3893_s24 }
 0x856   :  { %883 = vrot.lane.b32.xlu0 %v881_v29, %s3890_s9 }
 0x8c7   :  { %v798_v31 = vpop.permute.xlu1 %797 }
 0x8c8   :  { %v4210_v33 = vadd.f32 %v798_v31, %v790_v30  ;;  %v884_v36 = vpop.permute.xlu0 %883 }
 0x8c9   :  { %v4214_v37 = vadd.f32 %v884_v36, %v876_v34 }
 0x8ca   :  { %3604 = vtanh.f32 %v4210_v33 }
 0x8cb   :  { %3606 = vtanh.f32 %v4214_v37 }
 0x8cc   :  { %3608 = vpow2.f32 %v3081_v40 }
 0x8d4   :  { %v3605_v38 = vpop.eup %3604 }
 0x8d5   :  { %803 = vrot.lane.b32.xlu1 %v3605_v38, %s3893_s24  ;;  %v3607_v20 = vpop.eup %3606 }
 0x8d6   :  { %889 = vrot.lane.b32.xlu0 %v3607_v20, %s3890_s9  ;;  %v3609_v41 = vpop.eup %3608 }
 0x8d7   :  { %v870_v24 = vadd.f32 1.0, %v3609_v41 }
 0x8d9   :  { %81 = vperm.xlu1 %3521, %v47_v39   ;;  %3610 = vrcp.f32 %v870_v24 }
 0x8e3   :  { %v3611_v50 = vpop.eup %3610 }
 0x947   :  { %v804_v42 = vpop.permute.xlu1 %803 }
 0x948   :  { %v4222_v43 = vmul.f32 %v3601_v26, %v804_v42  ;;  %v890_v51 = vpop.permute.xlu0 %889 }
 0x949   :  { %v892_v54 = vmul.f32 %v3611_v50, %v890_v51 }
 0x94b   :  { %v893_v55 = vsel %vm314_vm1, %v892_v54, %v4222_v43  ;;  %v971_v56 = vpack.c.bf16 %v892_v54, %v892_v54 }
 0x94c   :  { %v894_v59 = vpack.c.bf16 %v893_v55, %v893_v55 }
 0x94d   :  { %3084 = vmatmul.mubr.msk.bf16.vlgmr.msra.gmra.mrb[16].mxu0 %vm314_vm1, %v971_v56 }
 0x94e   :  { %3317 = vmatmul.mubr.msk.bf16.vlgmr.msra.gmra.mrb[12].mxu1 %vm429_vm2, %v894_v59  ;;  %3321 = vmatpush3.bf16.msra.mxu0 %v4022_v45 }
 0x94f   :  { %3322 = vmatprep.subr.bf16.mxu0 %v3891_v44  ;;  %1131 = vmatpush1.bf16.msra.mxu1 %v3930_v2 }
 0x950   :  { %1132 = vmatprep.subr.bf16.mxu1 %v3937_v3  ;;  %1162 = vmatprep.mubr.bf16.mxu1 %v3889_v1 }
 0x951   :  { %3332 = vmatprep.mubr.msk.bf16.mxu0 %vm3892_vm0, %v3891_v44 }
 0x952   :  { %3323 = vmatpush3.bf16.msra.mxu0 %v4028_v46 }
 0x953   :  { %3324 = vmatprep.subr.bf16.mxu0 %v3891_v44  ;;  %1133 = vmatpush1.bf16.msra.mxu1 %v3943_v4 }
 0x954   :  { %1134 = vmatprep.subr.bf16.mxu1 %v3949_v5 }
 0x956   :  { %3325 = vmatpush3.bf16.msra.mxu0 %v4035_v47 }
 0x957   :  { %3326 = vmatprep.subr.bf16.mxu0 %v3891_v44  ;;  %1135 = vmatpush1.bf16.msra.mxu1 %v3958_v7 }
 0x958   :  { %1136 = vmatprep.subr.bf16.mxu1 %v3964_v8  ;;  %v82_v58 = vpop.permute.xlu1 %81 }
 0x959   :  { %v167_v61 = vmul.f32 %v3997_v17, %v82_v58  ;;  %v166_v27 = vmul.f32 %v4010_v32, %v82_v58 }
 0x95a   :  { %3327 = vmatpush3.bf16.msra.mxu0 %v4042_v48 }
 0x95b   :  { %3328 = vmatprep.subr.bf16.mxu0 %v3891_v44  ;;  %1137 = vmatpush1.bf16.msra.mxu1 %v3970_v9  ;;  %v217_v14 = vadd.f32 %v4002_v22, %v167_v61  ;;  %v216_v60 = vadd.f32 %v4014_v35, %v166_v27  ;;  %v48_v61 = vld [vmem:[%s5111_s0 + $0x28] sm:$0xff] }
 0x95c   :  { %3336 = vmatprep.subr.bf16.mxu1 %v3891_v44 }
 0x95e   :  { %3329 = vmatpush3.bf16.msra.mxu0 %v4049_v49 }
 0x95f   :  { %3330 = vmatprep.subr.bf16.mxu0 %v3891_v44 }
 0x962   :  { %3331 = vmatpush3.bf16.msra.mxu0 %v4059_v53 }
 0x963   :  { %1285 = vmatprep.subr.bf16.mxu0 %v3923_v0 }
 0xa20   :  { %v1009_v62 = vpop.f32.mrb[16].mxu0 }
 0xa21   :  { %v932_v63 = vpop.f32.mrb[12].mxu1  ;;  %v1011_v12 = vpop.f32.mrb[17].mxu0  ;;  %v1016_v28 = vadd.f32 %v1009_v62, %v216_v60 }
 0xa22   :  { %v933_v52 = vadd.f32 %v932_v63, %v4098_v15  ;;  %v3318_v16 = vpop.f32.mrb[13].mxu1  ;;  %v1013_v19 = vpop.f32.mrb[18].mxu0  ;;  %v1017_v25 = vadd.f32 %v1011_v12, %v217_v14 }
 0xa23   :  { %v935_v21 = vpop.f32.mrb[14].mxu1  ;;  %v1014_v23 = vpop.f32.mrb[19].mxu0  ;;  %v3085_v30 = vmul.f32 -1.442695, %v1016_v28 }
 0xa24   :  { %3612 = vtanh.f32 %v933_v52  ;;  %v3319_v26 = vpop.f32.mrb[15].mxu1  ;;  %v3083_v29 = vmul.f32 -1.442695, %v933_v52  ;;  %v3086_v62 = vmul.f32 -1.442695, %v1017_v25 }
 0xa25   :  { %3614 = vtanh.f32 %v1017_v25 }
 0xa26   :  { %3616 = vpow2.f32 %v3083_v29 }
 0xa27   :  { %3618 = vpow2.f32 %v3085_v30 }
 0xa2e   :  { %v3613_v57 = vpop.eup %3612 }
 0xa2f   :  { %947 = vrot.lane.b32.xlu0 %v3613_v57, %s3893_s24  ;;  %v3615_v0 = vpop.eup %3614 }
 0xa30   :  { %1033 = vrot.lane.b32.xlu1 %v3615_v0, %s3890_s9  ;;  %v3617_v31 = vpop.eup %3616 }
 0xa31   :  { %v941_v34 = vadd.f32 1.0, %v3617_v31  ;;  %v3619_v36 = vpop.eup %3618 }
 0xa32   :  { %v1024_v38 = vadd.f32 1.0, %v3619_v36 }
 0xa33   :  { %3620 = vrcp.f32 %v941_v34 }
 0xa34   :  { %3622 = vrcp.f32 %v1024_v38 }
 0xa3d   :  { %v3621_v39 = vpop.eup %3620 }
 0xa3e   :  { %v3623_v41 = vpop.eup %3622  ;;  %v945_v50 = vmul.f32 %v3621_v39, %v4210_v33 }
 0xa3f   :  { %v1031_v55 = vmul.f32 %v3623_v41, %v4214_v37 }
 0xaa1   :  { %v948_v20 = vpop.permute.xlu0 %947 }
 0xaa2   :  { %v950_v40 = vmul.f32 %v3621_v39, %v948_v20  ;;  %v1034_v24 = vpop.permute.xlu1 %1033 }
 0xaa3   :  { %v1036_v42 = vmul.f32 %v3623_v41, %v1034_v24 }
 0xaa4   :  { %952 = vrot.lane.b32.xlu0 %v950_v40, %s3893_s24 }
 0xaa5   :  { %1038 = vrot.lane.b32.xlu1 %v1036_v42, %s3890_s9 }
 0xb16   :  { %v953_v51 = vpop.permute.xlu0 %952 }
 0xb17   :  { %v4261_v54 = vadd.f32 %v953_v51, %v945_v50  ;;  %v1039_v56 = vpop.permute.xlu1 %1038 }
 0xb18   :  { %v4265_v59 = vadd.f32 %v1039_v56, %v1031_v55 }
 0xb19   :  { %3624 = vtanh.f32 %v4261_v54 }
 0xb1a   :  { %3626 = vtanh.f32 %v4265_v59 }
 0xb1b   :  { %3628 = vpow2.f32 %v3086_v62 }
 0xb23   :  { %v3625_v58 = vpop.eup %3624 }
 0xb24   :  { %958 = vrot.lane.b32.xlu0 %v3625_v58, %s3893_s24  ;;  %v3627_v33 = vpop.eup %3626 }
 0xb25   :  { %1044 = vrot.lane.b32.xlu1 %v3627_v33, %s3890_s9  ;;  %v3629_v37 = vpop.eup %3628 }
 0xb26   :  { %v1025_v63 = vadd.f32 1.0, %v3629_v37 }
 0xb28   :  { %86 = vperm.xlu0 %3520, %v48_v61   ;;  %3630 = vrcp.f32 %v1025_v63 }
 0xb32   :  { %v3631_v14 = vpop.eup %3630 }
 0xb96   :  { %v959_v12 = vpop.permute.xlu0 %958 }
 0xb97   :  { %v4273_v52 = vmul.f32 %v3621_v39, %v959_v12  ;;  %v1045_v16 = vpop.permute.xlu1 %1044 }
 0xb98   :  { %v1047_v19 = vmul.f32 %v3631_v14, %v1045_v16 }
 0xb9a   :  { %v1126_v21 = vpack.c.bf16 %v1047_v19, %v1047_v19  ;;  %v1048_v23 = vsel %vm314_vm1, %v1047_v19, %v4273_v52  ;;  %v49_v19 = vld [vmem:[%s5111_s0 + $0x30] sm:$0xff] }
 0xb9b   :  { %v1049_v26 = vpack.c.bf16 %v1048_v23, %v1048_v23 }
 0xb9c   :  { %3089 = vmatmul.mubr.msk.bf16.vlgmr.msra.gmra.mrb[16].mxu1 %vm314_vm1, %v1126_v21 }
 0xb9d   :  { %3333 = vmatmul.mubr.msk.bf16.vlgmr.msra.gmra.mrb[20].mxu0 %vm429_vm2, %v1049_v26  ;;  %3337 = vmatpush3.bf16.msra.mxu1 %v4022_v45 }
 0xb9e   :  { %3338 = vmatprep.subr.bf16.mxu1 %v3891_v44  ;;  %1286 = vmatpush1.bf16.msra.mxu0 %v3930_v2  ;;  %v4304_v2 = vld [vmem:[%s5110_s1 + $0x4] ss:$8 sps:$4 sm:$0xff]  }
 0xb9f   :  { %1287 = vmatprep.subr.bf16.mxu0 %v3937_v3  ;;  %1317 = vmatprep.mubr.bf16.mxu0 %v3889_v1 }
 0xba0   :  { %3348 = vmatprep.mubr.msk.bf16.mxu1 %vm3892_vm0, %v3891_v44 }
 0xba1   :  { %3339 = vmatpush3.bf16.msra.mxu1 %v4028_v46 }
 0xba2   :  { %3340 = vmatprep.subr.bf16.mxu1 %v3891_v44  ;;  %1288 = vmatpush1.bf16.msra.mxu0 %v3943_v4 }
 0xba3   :  { %1289 = vmatprep.subr.bf16.mxu0 %v3949_v5 }
 0xba5   :  { %3341 = vmatpush3.bf16.msra.mxu1 %v4035_v47 }
 0xba6   :  { %3342 = vmatprep.subr.bf16.mxu1 %v3891_v44  ;;  %1290 = vmatpush1.bf16.msra.mxu0 %v3958_v7 }
 0xba7   :  { %1291 = vmatprep.subr.bf16.mxu0 %v3964_v8  ;;  %v87_v3 = vpop.permute.xlu0 %86 }
 0xba8   :  { %v169_v4 = vmul.f32 %v3997_v17, %v87_v3  ;;  %v168_v34 = vmul.f32 %v4010_v32, %v87_v3 }
 0xba9   :  { %3343 = vmatpush3.bf16.msra.mxu1 %v4042_v48 }
 0xbaa   :  { %3344 = vmatprep.subr.bf16.mxu1 %v3891_v44  ;;  %1292 = vmatpush1.bf16.msra.mxu0 %v3970_v9  ;;  %v219_v25 = vadd.f32 %v4002_v22, %v169_v4  ;;  %v218_v36 = vadd.f32 %v4014_v35, %v168_v34 }
 0xbab   :  { %3352 = vmatprep.subr.bf16.mxu0 %v3891_v44 }
 0xbad   :  { %3345 = vmatpush3.bf16.msra.mxu1 %v4049_v49 }
 0xbae   :  { %3346 = vmatprep.subr.bf16.mxu1 %v3891_v44 }
 0xbb1   :  { %3347 = vmatpush3.bf16.msra.mxu1 %v4059_v53 }
 0xbb2   :  { %1440 = vmatprep.subr.bf16.mxu1 %v4304_v2 }
 0xc6f   :  { %v1164_v5 = vpop.f32.mrb[16].mxu1 }
 0xc70   :  { %v1087_v7 = vpop.f32.mrb[20].mxu0  ;;  %v1166_v8 = vpop.f32.mrb[17].mxu1  ;;  %v1171_v38 = vadd.f32 %v1164_v5, %v218_v36 }
 0xc71   :  { %v1088_v9 = vadd.f32 %v1087_v7, %v4098_v15  ;;  %v3334_v57 = vpop.f32.mrb[21].mxu0  ;;  %v1168_v0 = vpop.f32.mrb[18].mxu1  ;;  %v1172_v28 = vadd.f32 %v1166_v8, %v219_v25 }
 0xc72   :  { %v1090_v27 = vpop.f32.mrb[22].mxu0  ;;  %v1169_v60 = vpop.f32.mrb[19].mxu1  ;;  %v3090_v20 = vmul.f32 -1.442695, %v1171_v38  ;;  %v4340_v57 = vld [vmem:[%s5110_s1] ss:$8 sps:$4 sm:$0xff]  }
 0xc73   :  { %3632 = vtanh.f32 %v1088_v9  ;;  %v3335_v29 = vpop.f32.mrb[23].mxu0  ;;  %v3088_v39 = vmul.f32 -1.442695, %v1088_v9  ;;  %v3091_v21 = vmul.f32 -1.442695, %v1172_v28 }
 0xc74   :  { %3634 = vtanh.f32 %v1172_v28  ;;  %v4346_v0 = vld [vmem:[%s5110_s1 + $0x14] ss:$8 sps:$4 sm:$0xff]   ;;  %v4363_v27 = vld [vmem:[%s5110_s1 + $0x24] ss:$8 sps:$4 sm:$0xff]  }
 0xc75   :  { %3636 = vpow2.f32 %v3088_v39  ;;  %v4377_v60 = vld [vmem:[%s5110_s1 + $0x34] ss:$8 sps:$4 sm:$0xff]  }
 0xc76   :  { %3638 = vpow2.f32 %v3090_v20 }
 0xc7d   :  { %v3633_v30 = vpop.eup %3632 }
 0xc7e   :  { %1102 = vrot.lane.b32.xlu1 %v3633_v30, %s3893_s24  ;;  %v3635_v31 = vpop.eup %3634 }
 0xc7f   :  { %1188 = vrot.lane.b32.xlu0 %v3635_v31, %s3890_s9  ;;  %v3637_v40 = vpop.eup %3636 }
 0xc80   :  { %v1096_v41 = vadd.f32 1.0, %v3637_v40  ;;  %v3639_v24 = vpop.eup %3638 }
 0xc81   :  { %v1179_v42 = vadd.f32 1.0, %v3639_v24 }
 0xc82   :  { %3640 = vrcp.f32 %v1096_v41 }
 0xc83   :  { %3642 = vrcp.f32 %v1179_v42 }
 0xc8c   :  { %v3641_v50 = vpop.eup %3640 }
 0xc8d   :  { %v3643_v56 = vpop.eup %3642  ;;  %v1100_v33 = vmul.f32 %v3641_v50, %v4261_v54 }
 0xc8e   :  { %v1186_v63 = vmul.f32 %v3643_v56, %v4265_v59 }
 0xcf0   :  { %v1103_v51 = vpop.permute.xlu1 %1102 }
 0xcf1   :  { %v1105_v55 = vmul.f32 %v3641_v50, %v1103_v51  ;;  %v1189_v58 = vpop.permute.xlu0 %1188 }
 0xcf2   :  { %v1191_v61 = vmul.f32 %v3643_v56, %v1189_v58 }
 0xcf3   :  { %1107 = vrot.lane.b32.xlu1 %v1105_v55, %s3893_s24 }
 0xcf4   :  { %1193 = vrot.lane.b32.xlu0 %v1191_v61, %s3890_s9 }
 0xd65   :  { %v1108_v62 = vpop.permute.xlu1 %1107 }
 0xd66   :  { %v4317_v37 = vadd.f32 %v1108_v62, %v1100_v33  ;;  %v1194_v12 = vpop.permute.xlu0 %1193 }
 0xd67   :  { %v4321_v14 = vadd.f32 %v1194_v12, %v1186_v63 }
 0xd68   :  { %3644 = vtanh.f32 %v4317_v37 }
 0xd69   :  { %3646 = vtanh.f32 %v4321_v14 }
 0xd6a   :  { %3648 = vpow2.f32 %v3091_v21 }
 0xd72   :  { %v3645_v16 = vpop.eup %3644 }
 0xd73   :  { %1113 = vrot.lane.b32.xlu1 %v3645_v16, %s3893_s24  ;;  %v3647_v54 = vpop.eup %3646 }
 0xd74   :  { %1199 = vrot.lane.b32.xlu0 %v3647_v54, %s3890_s9  ;;  %v3649_v23 = vpop.eup %3648 }
 0xd75   :  { %v1180_v59 = vadd.f32 1.0, %v3649_v23 }
 0xd77   :  { %91 = vperm.xlu1 %3521, %v49_v19   ;;  %3650 = vrcp.f32 %v1180_v59 }
 0xd81   :  { %v3651_v4 = vpop.eup %3650 }
 0xde5   :  { %v1114_v26 = vpop.permute.xlu1 %1113 }
 0xde6   :  { %v4329_v3 = vmul.f32 %v3641_v50, %v1114_v26  ;;  %v1200_v5 = vpop.permute.xlu0 %1199 }
 0xde7   :  { %v1202_v7 = vmul.f32 %v3651_v4, %v1200_v5 }
 0xde9   :  { %v1203_v8 = vsel %vm314_vm1, %v1202_v7, %v4329_v3  ;;  %v1281_v9 = vpack.c.bf16 %v1202_v7, %v1202_v7 }
 0xdea   :  { %v1204_v25 = vpack.c.bf16 %v1203_v8, %v1203_v8 }
 0xdeb   :  { %3094 = vmatmul.mubr.msk.bf16.vlgmr.msra.gmra.mrb[24].mxu0 %vm314_vm1, %v1281_v9  ;;  %v50_v9 = vld [vmem:[%s5111_s0 + $0x38] sm:$0xff] }
 0xdec   :  { %3349 = vmatmul.mubr.msk.bf16.vlgmr.msra.gmra.mrb[20].mxu1 %vm429_vm2, %v1204_v25  ;;  %3353 = vmatpush3.bf16.msra.mxu0 %v4022_v45  ;;  %v4357_v45 = vld [vmem:[%s5110_s1 + $0x10] ss:$8 sps:$4 sm:$0xff]  }
 0xded   :  { %3354 = vmatprep.subr.bf16.mxu0 %v3891_v44  ;;  %1441 = vmatpush1.bf16.msra.mxu1 %v4340_v57 }
 0xdee   :  { %1442 = vmatprep.subr.bf16.mxu1 %v4346_v0  ;;  %1472 = vmatprep.mubr.bf16.mxu1 %v3889_v1 }
 0xdef   :  { %3364 = vmatprep.mubr.msk.bf16.mxu0 %vm3892_vm0, %v3891_v44 }
 0xdf0   :  { %3355 = vmatpush3.bf16.msra.mxu0 %v4028_v46  ;;  %v4371_v46 = vld [vmem:[%s5110_s1 + $0x20] ss:$8 sps:$4 sm:$0xff]  }
 0xdf1   :  { %3356 = vmatprep.subr.bf16.mxu0 %v3891_v44  ;;  %1443 = vmatpush1.bf16.msra.mxu1 %v4357_v45 }
 0xdf2   :  { %1444 = vmatprep.subr.bf16.mxu1 %v4363_v27 }
 0xdf4   :  { %3357 = vmatpush3.bf16.msra.mxu0 %v4035_v47  ;;  %v4385_v47 = vld [vmem:[%s5110_s1 + $0x30] ss:$8 sps:$4 sm:$0xff]  }
 0xdf5   :  { %3358 = vmatprep.subr.bf16.mxu0 %v3891_v44  ;;  %1445 = vmatpush1.bf16.msra.mxu1 %v4371_v46 }
 0xdf6   :  { %1446 = vmatprep.subr.bf16.mxu1 %v4377_v60 }
 0xdf8   :  { %3359 = vmatpush3.bf16.msra.mxu0 %v4042_v48  ;;  %v92_v48 = vpop.permute.xlu1 %91 }
 0xdf9   :  { %3360 = vmatprep.subr.bf16.mxu0 %v3891_v44  ;;  %1447 = vmatpush1.bf16.msra.mxu1 %v4385_v47  ;;  %v171_v28 = vmul.f32 %v3997_v17, %v92_v48  ;;  %v170_v42 = vmul.f32 %v4010_v32, %v92_v48 }
 0xdfa   :  { %3368 = vmatprep.subr.bf16.mxu1 %v3891_v44 }
 0xdfb   :  { %v221_v36 = vadd.f32 %v4002_v22, %v171_v28  ;;  %v220_v50 = vadd.f32 %v4014_v35, %v170_v42 }
 0xdfc   :  { %3361 = vmatpush3.bf16.msra.mxu0 %v4049_v49 }
 0xdfd   :  { %3362 = vmatprep.subr.bf16.mxu0 %v3891_v44 }
 0xe00   :  { %3363 = vmatpush3.bf16.msra.mxu0 %v4059_v53 }
 0xe01   :  { %1595 = vmatprep.subr.bf16.mxu0 %v4304_v2 }
 0xebe   :  { %v1319_v29 = vpop.f32.mrb[24].mxu0 }
 0xebf   :  { %v1242_v30 = vpop.f32.mrb[20].mxu1  ;;  %v1321_v31 = vpop.f32.mrb[25].mxu0  ;;  %v1326_v51 = vadd.f32 %v1319_v29, %v220_v50 }
 0xec0   :  { %v1243_v34 = vadd.f32 %v1242_v30, %v4098_v15  ;;  %v3350_v38 = vpop.f32.mrb[21].mxu1  ;;  %v1323_v39 = vpop.f32.mrb[26].mxu0  ;;  %v1327_v40 = vadd.f32 %v1321_v31, %v221_v36 }
 0xec1   :  { %v1245_v20 = vpop.f32.mrb[22].mxu1  ;;  %v1324_v49 = vpop.f32.mrb[27].mxu0  ;;  %v3095_v56 = vmul.f32 -1.442695, %v1326_v51 }
 0xec2   :  { %3652 = vtanh.f32 %v1243_v34  ;;  %v3351_v41 = vpop.f32.mrb[23].mxu1  ;;  %v3093_v55 = vmul.f32 -1.442695, %v1243_v34  ;;  %v3096_v25 = vmul.f32 -1.442695, %v1327_v40  ;;  %v4424_v20 = vld [vmem:[%s5113_s2] sm:$0xff]  }
 0xec3   :  { %3654 = vtanh.f32 %v1327_v40  ;;  %v4436_v49 = vld [vmem:[%s5113_s2 + $0x8] sm:$0xff]   ;;  %v4445_v40 = vld [vmem:[%s5113_s2 + $0x10] sm:$0xff]   ;;  %v4454_v41 = vld [vmem:[%s5113_s2 + $0x18] sm:$0xff]  }
 0xec4   :  { %3656 = vpow2.f32 %v3093_v55 }
 0xec5   :  { %3658 = vpow2.f32 %v3095_v56 }
 0xecc   :  { %v3653_v53 = vpop.eup %3652 }
 0xecd   :  { %1257 = vrot.lane.b32.xlu0 %v3653_v53, %s3893_s24  ;;  %v3655_v24 = vpop.eup %3654  ;;  %v4463_v53 = vld [vmem:[%s5113_s2 + $0x20] sm:$0xff]  }
 0xece   :  { %1343 = vrot.lane.b32.xlu1 %v3655_v24, %s3890_s9  ;;  %v3657_v58 = vpop.eup %3656  ;;  %v4470_v24 = vld [vmem:[%s5113_s2 + $0x28] sm:$0xff]  }
 0xecf   :  { %v1251_v61 = vadd.f32 1.0, %v3657_v58  ;;  %v3659_v33 = vpop.eup %3658 }
 0xed0   :  { %v1334_v62 = vadd.f32 1.0, %v3659_v33 }
 0xed1   :  { %3660 = vrcp.f32 %v1251_v61 }
 0xed2   :  { %3662 = vrcp.f32 %v1334_v62 }
 0xedb   :  { %v3661_v63 = vpop.eup %3660 }
 0xedc   :  { %v3663_v19 = vpop.eup %3662  ;;  %v1255_v23 = vmul.f32 %v3661_v63, %v4317_v37 }
 0xedd   :  { %v1341_v4 = vmul.f32 %v3663_v19, %v4321_v14 }
 0xf3f   :  { %v1258_v12 = vpop.permute.xlu0 %1257 }
 0xf40   :  { %v1260_v16 = vmul.f32 %v3661_v63, %v1258_v12  ;;  %v1344_v54 = vpop.permute.xlu1 %1343 }
 0xf41   :  { %v1346_v21 = vmul.f32 %v3663_v19, %v1344_v54 }
 0xf42   :  { %1262 = vrot.lane.b32.xlu0 %v1260_v16, %s3893_s24 }
 0xf43   :  { %1348 = vrot.lane.b32.xlu1 %v1346_v21, %s3890_s9 }
 0xfb4   :  { %v1263_v59 = vpop.permute.xlu0 %1262 }
 0xfb5   :  { %v4403_v26 = vadd.f32 %v1263_v59, %v1255_v23  ;;  %v1349_v5 = vpop.permute.xlu1 %1348 }
 0xfb6   :  { %v4407_v7 = vadd.f32 %v1349_v5, %v1341_v4 }
 0xfb7   :  { %3664 = vtanh.f32 %v4403_v26 }
 0xfb8   :  { %3666 = vtanh.f32 %v4407_v7 }
 0xfb9   :  { %3668 = vpow2.f32 %v3096_v25 }
 0xfc1   :  { %v3665_v8 = vpop.eup %3664 }
 0xfc2   :  { %1268 = vrot.lane.b32.xlu0 %v3665_v8, %s3893_s24  ;;  %v3667_v37 = vpop.eup %3666 }
 0xfc3   :  { %1354 = vrot.lane.b32.xlu1 %v3667_v37, %s3890_s9  ;;  %v3669_v14 = vpop.eup %3668 }
 0xfc4   :  { %v1335_v48 = vadd.f32 1.0, %v3669_v14 }
 0xfc6   :  { %96 = vperm.xlu0 %3520, %v50_v9   ;;  %3670 = vrcp.f32 %v1335_v48 }
 0xfd0   :  { %v3671_v30 = vpop.eup %3670 }
0x1034   :  { %v1269_v28 = vpop.permute.xlu0 %1268 }
0x1035   :  { %v4415_v29 = vmul.f32 %v3661_v63, %v1269_v28  ;;  %v1355_v31 = vpop.permute.xlu1 %1354 }
0x1036   :  { %v1357_v34 = vmul.f32 %v3671_v30, %v1355_v31 }
0x1038   :  { %v1436_v36 = vpack.c.bf16 %v1357_v34, %v1357_v34  ;;  %v1358_v38 = vsel %vm314_vm1, %v1357_v34, %v4415_v29 }
0x1039   :  { %v1359_v39 = vpack.c.bf16 %v1358_v38, %v1358_v38 }
0x103a   :  { %3099 = vmatmul.mubr.msk.bf16.vlgmr.msra.gmra.mrb[24].mxu1 %vm314_vm1, %v1436_v36 }
0x103b   :  { %3365 = vmatmul.mubr.msk.bf16.vlgmr.msra.gmra.mrb[28].mxu0 %vm429_vm2, %v1359_v39  ;;  %3369 = vmatpush3.bf16.msra.mxu1 %v4424_v20 }
0x103c   :  { %3370 = vmatprep.subr.bf16.mxu1 %v3891_v44  ;;  %1596 = vmatpush1.bf16.msra.mxu0 %v4340_v57 }
0x103d   :  { %1597 = vmatprep.subr.bf16.mxu0 %v4346_v0  ;;  %1627 = vmatprep.mubr.bf16.mxu0 %v3889_v1 }
0x103e   :  { %3380 = vmatprep.mubr.msk.bf16.mxu1 %vm3892_vm0, %v3891_v44 }
0x103f   :  { %3371 = vmatpush3.bf16.msra.mxu1 %v4436_v49 }
0x1040   :  { %3372 = vmatprep.subr.bf16.mxu1 %v3891_v44  ;;  %1598 = vmatpush1.bf16.msra.mxu0 %v4357_v45 }
0x1041   :  { %1599 = vmatprep.subr.bf16.mxu0 %v4363_v27 }
0x1043   :  { %3373 = vmatpush3.bf16.msra.mxu1 %v4445_v40 }
0x1044   :  { %3374 = vmatprep.subr.bf16.mxu1 %v3891_v44  ;;  %1600 = vmatpush1.bf16.msra.mxu0 %v4371_v46 }
0x1045   :  { %1601 = vmatprep.subr.bf16.mxu0 %v4377_v60  ;;  %v97_v42 = vpop.permute.xlu0 %96 }
0x1046   :  { %v173_v50 = vmul.f32 %v3997_v17, %v97_v42  ;;  %v172_v23 = vmul.f32 %v4010_v32, %v97_v42 }
0x1047   :  { %3375 = vmatpush3.bf16.msra.mxu1 %v4454_v41 }
0x1048   :  { %3376 = vmatprep.subr.bf16.mxu1 %v3891_v44  ;;  %1602 = vmatpush1.bf16.msra.mxu0 %v4385_v47  ;;  %v223_v61 = vadd.f32 %v4002_v22, %v173_v50  ;;  %v222_v59 = vadd.f32 %v4014_v35, %v172_v23 }
0x1049   :  { %3384 = vmatprep.subr.bf16.mxu0 %v3891_v44 }
0x104b   :  { %3377 = vmatpush3.bf16.msra.mxu1 %v4463_v53 }
0x104c   :  { %3378 = vmatprep.subr.bf16.mxu1 %v3891_v44 }
0x104f   :  { %3379 = vmatpush3.bf16.msra.mxu1 %v4470_v24 }
0x1050   :  { %1750 = vmatprep.subr.bf16.mxu1 %v4304_v2 }
0x110d   :  { %v1474_v51 = vpop.f32.mrb[24].mxu1 }
0x110e   :  { %v1397_v55 = vpop.f32.mrb[28].mxu0  ;;  %v1476_v56 = vpop.f32.mrb[25].mxu1  ;;  %v1481_v4 = vadd.f32 %v1474_v51, %v222_v59 }
0x110f   :  { %v1398_v58 = vadd.f32 %v1397_v55, %v4098_v15  ;;  %v3366_v33 = vpop.f32.mrb[29].mxu0  ;;  %v1478_v62 = vpop.f32.mrb[26].mxu1  ;;  %v1482_v16 = vadd.f32 %v1476_v56, %v223_v61 }
0x1110   :  { %v1400_v63 = vpop.f32.mrb[30].mxu0  ;;  %v1479_v12 = vpop.f32.mrb[27].mxu1  ;;  %v3100_v8 = vmul.f32 -1.442695, %v1481_v4 }
0x1111   :  { %3672 = vtanh.f32 %v1398_v58  ;;  %v3367_v19 = vpop.f32.mrb[31].mxu0  ;;  %v3098_v5 = vmul.f32 -1.442695, %v1398_v58  ;;  %v51_v58 = vld [vmem:[%s5111_s0 + $0x40] sm:$0xff]  ;;  %v3101_v61 = vmul.f32 -1.442695, %v1482_v16 }
0x1112   :  { %3674 = vtanh.f32 %v1482_v16 }
0x1113   :  { %3676 = vpow2.f32 %v3098_v5 }
0x1114   :  { %3678 = vpow2.f32 %v3100_v8 }
0x111b   :  { %v3673_v54 = vpop.eup %3672 }
0x111c   :  { %1412 = vrot.lane.b32.xlu1 %v3673_v54, %s3893_s24  ;;  %v3675_v21 = vpop.eup %3674 }
0x111d   :  { %1498 = vrot.lane.b32.xlu0 %v3675_v21, %s3890_s9  ;;  %v3677_v9 = vpop.eup %3676 }
0x111e   :  { %v1406_v37 = vadd.f32 1.0, %v3677_v9  ;;  %v3679_v25 = vpop.eup %3678 }
0x111f   :  { %v1489_v14 = vadd.f32 1.0, %v3679_v25 }
0x1120   :  { %3680 = vrcp.f32 %v1406_v37 }
0x1121   :  { %3682 = vrcp.f32 %v1489_v14 }
0x112a   :  { %v3681_v48 = vpop.eup %3680 }
0x112b   :  { %v3683_v31 = vpop.eup %3682  ;;  %v1410_v38 = vmul.f32 %v3681_v48, %v4403_v26 }
0x112c   :  { %v1496_v50 = vmul.f32 %v3683_v31, %v4407_v7 }
0x118e   :  { %v1413_v28 = vpop.permute.xlu1 %1412 }
0x118f   :  { %v1415_v30 = vmul.f32 %v3681_v48, %v1413_v28  ;;  %v1499_v34 = vpop.permute.xlu0 %1498 }
0x1190   :  { %v1501_v36 = vmul.f32 %v3683_v31, %v1499_v34 }
0x1191   :  { %1417 = vrot.lane.b32.xlu1 %v1415_v30, %s3893_s24 }
0x1192   :  { %1503 = vrot.lane.b32.xlu0 %v1501_v36, %s3890_s9 }
0x1203   :  { %v1418_v39 = vpop.permute.xlu1 %1417 }
0x1204   :  { %v4484_v42 = vadd.f32 %v1418_v39, %v1410_v38  ;;  %v1504_v51 = vpop.permute.xlu0 %1503 }
0x1205   :  { %v4488_v55 = vadd.f32 %v1504_v51, %v1496_v50 }
0x1206   :  { %3684 = vtanh.f32 %v4484_v42 }
0x1207   :  { %3686 = vtanh.f32 %v4488_v55 }
0x1208   :  { %3688 = vpow2.f32 %v3101_v61 }
0x1210   :  { %v3685_v56 = vpop.eup %3684 }
0x1211   :  { %1423 = vrot.lane.b32.xlu1 %v3685_v56, %s3893_s24  ;;  %v3687_v26 = vpop.eup %3686 }
0x1212   :  { %1509 = vrot.lane.b32.xlu0 %v3687_v26, %s3890_s9  ;;  %v3689_v33 = vpop.eup %3688 }
0x1213   :  { %v1490_v7 = vadd.f32 1.0, %v3689_v33 }
0x1215   :  { %101 = vperm.xlu1 %3521, %v51_v58   ;;  %3690 = vrcp.f32 %v1490_v7 }
0x121f   :  { %v3691_v12 = vpop.eup %3690 }
0x1283   :  { %v1424_v62 = vpop.permute.xlu1 %1423 }
0x1284   :  { %v4496_v63 = vmul.f32 %v3681_v48, %v1424_v62  ;;  %v1510_v19 = vpop.permute.xlu0 %1509 }
0x1285   :  { %v1512_v54 = vmul.f32 %v3691_v12, %v1510_v19 }
0x1287   :  { %v1513_v21 = vsel %vm314_vm1, %v1512_v54, %v4496_v63  ;;  %v1591_v23 = vpack.c.bf16 %v1512_v54, %v1512_v54 }
0x1288   :  { %v1514_v59 = vpack.c.bf16 %v1513_v21, %v1513_v21 }
0x1289   :  { %3104 = vmatmul.mubr.msk.bf16.vlgmr.msra.gmra.mrb[32].mxu0 %vm314_vm1, %v1591_v23 }
0x128a   :  { %3381 = vmatmul.mubr.msk.bf16.vlgmr.msra.gmra.mrb[28].mxu1 %vm429_vm2, %v1514_v59  ;;  %3385 = vmatpush3.bf16.msra.mxu0 %v4424_v20 }
0x128b   :  { %3386 = vmatprep.subr.bf16.mxu0 %v3891_v44  ;;  %1751 = vmatpush1.bf16.msra.mxu1 %v4340_v57 }
0x128c   :  { %1752 = vmatprep.subr.bf16.mxu1 %v4346_v0  ;;  %1782 = vmatprep.mubr.bf16.mxu1 %v3889_v1 }
0x128d   :  { %3396 = vmatprep.mubr.msk.bf16.mxu0 %vm3892_vm0, %v3891_v44 }
0x128e   :  { %3387 = vmatpush3.bf16.msra.mxu0 %v4436_v49 }
0x128f   :  { %3388 = vmatprep.subr.bf16.mxu0 %v3891_v44  ;;  %1753 = vmatpush1.bf16.msra.mxu1 %v4357_v45 }
0x1290   :  { %1754 = vmatprep.subr.bf16.mxu1 %v4363_v27 }
0x1292   :  { %3389 = vmatpush3.bf16.msra.mxu0 %v4445_v40 }
0x1293   :  { %3390 = vmatprep.subr.bf16.mxu0 %v3891_v44  ;;  %1755 = vmatpush1.bf16.msra.mxu1 %v4371_v46 }
0x1294   :  { %1756 = vmatprep.subr.bf16.mxu1 %v4377_v60  ;;  %v102_v16 = vpop.permute.xlu1 %101 }
0x1295   :  { %v175_v4 = vmul.f32 %v3997_v17, %v102_v16  ;;  %v174_v39 = vmul.f32 %v4010_v32, %v102_v16 }
0x1296   :  { %3391 = vmatpush3.bf16.msra.mxu0 %v4454_v41 }
0x1297   :  { %3392 = vmatprep.subr.bf16.mxu0 %v3891_v44  ;;  %1757 = vmatpush1.bf16.msra.mxu1 %v4385_v47  ;;  %v225_v25 = vadd.f32 %v4002_v22, %v175_v4  ;;  %v224_v50 = vadd.f32 %v4014_v35, %v174_v39 }
0x1298   :  { %3400 = vmatprep.subr.bf16.mxu1 %v3891_v44 }
0x129a   :  { %3393 = vmatpush3.bf16.msra.mxu0 %v4463_v53 }
0x129b   :  { %3394 = vmatprep.subr.bf16.mxu0 %v3891_v44 }
0x129e   :  { %3395 = vmatpush3.bf16.msra.mxu0 %v4470_v24 }
0x129f   :  { %1905 = vmatprep.subr.bf16.mxu0 %v4304_v2 }
0x135c   :  { %v1629_v5 = vpop.f32.mrb[32].mxu0 }
0x135d   :  { %v1552_v8 = vpop.f32.mrb[28].mxu1  ;;  %v1631_v9 = vpop.f32.mrb[33].mxu0  ;;  %v1636_v51 = vadd.f32 %v1629_v5, %v224_v50 }
0x135e   :  { %v1553_v37 = vadd.f32 %v1552_v8, %v4098_v15  ;;  %v3382_v14 = vpop.f32.mrb[29].mxu1  ;;  %v1633_v48 = vpop.f32.mrb[34].mxu0  ;;  %v1637_v31 = vadd.f32 %v1631_v9, %v225_v25  ;;  %v52_v25 = vld [vmem:[%s5111_s0 + $0x48] sm:$0xff] }
0x135f   :  { %v1555_v28 = vpop.f32.mrb[30].mxu1  ;;  %v1634_v30 = vpop.f32.mrb[35].mxu0  ;;  %v3105_v58 = vmul.f32 -1.442695, %v1636_v51 }
0x1360   :  { %3692 = vtanh.f32 %v1553_v37  ;;  %v3383_v34 = vpop.f32.mrb[31].mxu1  ;;  %v3103_v56 = vmul.f32 -1.442695, %v1553_v37  ;;  %v3106_v14 = vmul.f32 -1.442695, %v1637_v31 }
0x1361   :  { %3694 = vtanh.f32 %v1637_v31 }
0x1362   :  { %3696 = vpow2.f32 %v3103_v56 }
0x1363   :  { %3698 = vpow2.f32 %v3105_v58 }
0x136a   :  { %v3693_v36 = vpop.eup %3692 }
0x136b   :  { %1567 = vrot.lane.b32.xlu0 %v3693_v36, %s3893_s24  ;;  %v3695_v38 = vpop.eup %3694 }
0x136c   :  { %1653 = vrot.lane.b32.xlu1 %v3695_v38, %s3890_s9  ;;  %v3697_v26 = vpop.eup %3696 }
0x136d   :  { %v1561_v61 = vadd.f32 1.0, %v3697_v26  ;;  %v3699_v33 = vpop.eup %3698 }
0x136e   :  { %v1644_v7 = vadd.f32 1.0, %v3699_v33 }
0x136f   :  { %3700 = vrcp.f32 %v1561_v61 }
0x1370   :  { %3702 = vrcp.f32 %v1644_v7 }
0x1379   :  { %v3701_v62 = vpop.eup %3700 }
0x137a   :  { %v3703_v54 = vpop.eup %3702  ;;  %v1565_v59 = vmul.f32 %v3701_v62, %v4484_v42 }
0x137b   :  { %v1651_v5 = vmul.f32 %v3703_v54, %v4488_v55 }
0x13dd   :  { %v1568_v12 = vpop.permute.xlu0 %1567 }
0x13de   :  { %v1570_v19 = vmul.f32 %v3701_v62, %v1568_v12  ;;  %v1654_v21 = vpop.permute.xlu1 %1653 }
0x13df   :  { %v1656_v23 = vmul.f32 %v3703_v54, %v1654_v21 }
0x13e0   :  { %1572 = vrot.lane.b32.xlu0 %v1570_v19, %s3893_s24 }
0x13e1   :  { %1658 = vrot.lane.b32.xlu1 %v1656_v23, %s3890_s9 }
0x1452   :  { %v1573_v16 = vpop.permute.xlu0 %1572 }
0x1453   :  { %v4535_v4 = vadd.f32 %v1573_v16, %v1565_v59  ;;  %v1659_v8 = vpop.permute.xlu1 %1658 }
0x1454   :  { %v4539_v9 = vadd.f32 %v1659_v8, %v1651_v5 }
0x1455   :  { %3704 = vtanh.f32 %v4535_v4 }
0x1456   :  { %3706 = vtanh.f32 %v4539_v9 }
0x1457   :  { %3708 = vpow2.f32 %v3106_v14 }
0x145f   :  { %v3705_v37 = vpop.eup %3704 }
0x1460   :  { %1578 = vrot.lane.b32.xlu0 %v3705_v37, %s3893_s24  ;;  %v3707_v42 = vpop.eup %3706 }
0x1461   :  { %1664 = vrot.lane.b32.xlu1 %v3707_v42, %s3890_s9  ;;  %v3709_v55 = vpop.eup %3708 }
0x1462   :  { %v1645_v48 = vadd.f32 1.0, %v3709_v55 }
0x1464   :  { %106 = vperm.xlu0 %3520, %v52_v25   ;;  %3710 = vrcp.f32 %v1645_v48 }
0x146e   :  { %v3711_v34 = vpop.eup %3710 }
0x14d2   :  { %v1579_v28 = vpop.permute.xlu0 %1578 }
0x14d3   :  { %v4547_v30 = vmul.f32 %v3701_v62, %v1579_v28  ;;  %v1665_v36 = vpop.permute.xlu1 %1664 }
0x14d4   :  { %v1667_v38 = vmul.f32 %v3711_v34, %v1665_v36 }
0x14d6   :  { %v1746_v39 = vpack.c.bf16 %v1667_v38, %v1667_v38  ;;  %v1668_v50 = vsel %vm314_vm1, %v1667_v38, %v4547_v30 }
0x14d7   :  { %v1669_v51 = vpack.c.bf16 %v1668_v50, %v1668_v50 }
0x14d8   :  { %3109 = vmatmul.mubr.msk.bf16.vlgmr.msra.gmra.mrb[32].mxu1 %vm314_vm1, %v1746_v39 }
0x14d9   :  { %3397 = vmatmul.mubr.msk.bf16.vlgmr.msra.gmra.mrb[36].mxu0 %vm429_vm2, %v1669_v51  ;;  %3401 = vmatpush3.bf16.msra.mxu1 %v4424_v20 }
0x14da   :  { %3402 = vmatprep.subr.bf16.mxu1 %v3891_v44  ;;  %1906 = vmatpush1.bf16.msra.mxu0 %v4340_v57 }
0x14db   :  { %1907 = vmatprep.subr.bf16.mxu0 %v4346_v0  ;;  %1937 = vmatprep.mubr.bf16.mxu0 %v3889_v1 }
0x14dc   :  { %3412 = vmatprep.mubr.msk.bf16.mxu1 %vm3892_vm0, %v3891_v44 }
0x14dd   :  { %3403 = vmatpush3.bf16.msra.mxu1 %v4436_v49 }
0x14de   :  { %3404 = vmatprep.subr.bf16.mxu1 %v3891_v44  ;;  %1908 = vmatpush1.bf16.msra.mxu0 %v4357_v45 }
0x14df   :  { %1909 = vmatprep.subr.bf16.mxu0 %v4363_v27 }
0x14e1   :  { %3405 = vmatpush3.bf16.msra.mxu1 %v4445_v40 }
0x14e2   :  { %3406 = vmatprep.subr.bf16.mxu1 %v3891_v44  ;;  %1910 = vmatpush1.bf16.msra.mxu0 %v4371_v46 }
0x14e3   :  { %1911 = vmatprep.subr.bf16.mxu0 %v4377_v60  ;;  %v107_v31 = vpop.permute.xlu0 %106 }
0x14e4   :  { %v177_v56 = vmul.f32 %v3997_v17, %v107_v31  ;;  %v176_v5 = vmul.f32 %v4010_v32, %v107_v31 }
0x14e5   :  { %3407 = vmatpush3.bf16.msra.mxu1 %v4454_v41 }
0x14e6   :  { %3408 = vmatprep.subr.bf16.mxu1 %v3891_v44  ;;  %1912 = vmatpush1.bf16.msra.mxu0 %v4385_v47  ;;  %v227_v7 = vadd.f32 %v4002_v22, %v177_v56  ;;  %v226_v8 = vadd.f32 %v4014_v35, %v176_v5 }
0x14e7   :  { %3416 = vmatprep.subr.bf16.mxu0 %v3891_v44 }
0x14e9   :  { %3409 = vmatpush3.bf16.msra.mxu1 %v4463_v53 }
0x14ea   :  { %3410 = vmatprep.subr.bf16.mxu1 %v3891_v44 }
0x14ed   :  { %3411 = vmatpush3.bf16.msra.mxu1 %v4470_v24 }
0x14ee   :  { %2060 = vmatprep.subr.bf16.mxu1 %v4304_v2 }
0x15ab   :  { %v1784_v58 = vpop.f32.mrb[32].mxu1 }
0x15ac   :  { %v1707_v26 = vpop.f32.mrb[36].mxu0  ;;  %v1786_v61 = vpop.f32.mrb[33].mxu1  ;;  %v1791_v37 = vadd.f32 %v1784_v58, %v226_v8 }
0x15ad   :  { %v1708_v33 = vadd.f32 %v1707_v26, %v4098_v15  ;;  %v3398_v62 = vpop.f32.mrb[37].mxu0  ;;  %v1788_v12 = vpop.f32.mrb[34].mxu1  ;;  %v1792_v21 = vadd.f32 %v1786_v61, %v227_v7 }
0x15ae   :  { %v1710_v19 = vpop.f32.mrb[38].mxu0  ;;  %v1789_v54 = vpop.f32.mrb[35].mxu1  ;;  %v3110_v42 = vmul.f32 -1.442695, %v1791_v37  ;;  %v53_v62 = vld [vmem:[%s5111_s0 + $0x50] sm:$0xff] }
0x15af   :  { %3712 = vtanh.f32 %v1708_v33  ;;  %v3399_v23 = vpop.f32.mrb[39].mxu0  ;;  %v3108_v25 = vmul.f32 -1.442695, %v1708_v33  ;;  %v3111_v12 = vmul.f32 -1.442695, %v1792_v21 }
0x15b0   :  { %3714 = vtanh.f32 %v1792_v21 }
0x15b1   :  { %3716 = vpow2.f32 %v3108_v25 }
0x15b2   :  { %3718 = vpow2.f32 %v3110_v42 }
0x15b9   :  { %v3713_v59 = vpop.eup %3712 }
0x15ba   :  { %1722 = vrot.lane.b32.xlu1 %v3713_v59, %s3893_s24  ;;  %v3715_v16 = vpop.eup %3714 }
0x15bb   :  { %1808 = vrot.lane.b32.xlu0 %v3715_v16, %s3890_s9  ;;  %v3717_v14 = vpop.eup %3716 }
0x15bc   :  { %v1716_v55 = vadd.f32 1.0, %v3717_v14  ;;  %v3719_v48 = vpop.eup %3718 }
0x15bd   :  { %v1799_v28 = vadd.f32 1.0, %v3719_v48 }
0x15be   :  { %3720 = vrcp.f32 %v1716_v55 }
0x15bf   :  { %3722 = vrcp.f32 %v1799_v28 }
0x15c8   :  { %v3721_v34 = vpop.eup %3720 }
0x15c9   :  { %v3723_v39 = vpop.eup %3722  ;;  %v1720_v31 = vmul.f32 %v3721_v34, %v4535_v4 }
0x15ca   :  { %v1806_v26 = vmul.f32 %v3723_v39, %v4539_v9 }
0x162c   :  { %v1723_v36 = vpop.permute.xlu1 %1722 }
0x162d   :  { %v1725_v38 = vmul.f32 %v3721_v34, %v1723_v36  ;;  %v1809_v50 = vpop.permute.xlu0 %1808 }
0x162e   :  { %v1811_v51 = vmul.f32 %v3723_v39, %v1809_v50 }
0x162f   :  { %1727 = vrot.lane.b32.xlu1 %v1725_v38, %s3893_s24 }
0x1630   :  { %1813 = vrot.lane.b32.xlu0 %v1811_v51, %s3890_s9 }
0x16a1   :  { %v1728_v56 = vpop.permute.xlu1 %1727 }
0x16a2   :  { %v4586_v58 = vadd.f32 %v1728_v56, %v1720_v31  ;;  %v1814_v61 = vpop.permute.xlu0 %1813 }
0x16a3   :  { %v4590_v33 = vadd.f32 %v1814_v61, %v1806_v26 }
0x16a4   :  { %3724 = vtanh.f32 %v4586_v58 }
0x16a5   :  { %3726 = vtanh.f32 %v4590_v33 }
0x16a6   :  { %3728 = vpow2.f32 %v3111_v12 }
0x16ae   :  { %v3725_v7 = vpop.eup %3724 }
0x16af   :  { %1733 = vrot.lane.b32.xlu1 %v3725_v7, %s3893_s24  ;;  %v3727_v4 = vpop.eup %3726 }
0x16b0   :  { %1819 = vrot.lane.b32.xlu0 %v3727_v4, %s3890_s9  ;;  %v3729_v19 = vpop.eup %3728 }
0x16b1   :  { %v1800_v9 = vadd.f32 1.0, %v3729_v19 }
0x16b3   :  { %111 = vperm.xlu1 %3521, %v53_v62   ;;  %3730 = vrcp.f32 %v1800_v9 }
0x16bd   :  { %v3731_v59 = vpop.eup %3730 }
0x1721   :  { %v1734_v54 = vpop.permute.xlu1 %1733 }
0x1722   :  { %v4598_v23 = vmul.f32 %v3721_v34, %v1734_v54  ;;  %v1820_v16 = vpop.permute.xlu0 %1819 }
0x1723   :  { %v1822_v5 = vmul.f32 %v3731_v59, %v1820_v16 }
0x1725   :  { %v1823_v8 = vsel %vm314_vm1, %v1822_v5, %v4598_v23  ;;  %v1901_v37 = vpack.c.bf16 %v1822_v5, %v1822_v5 }
0x1726   :  { %v1824_v25 = vpack.c.bf16 %v1823_v8, %v1823_v8 }
0x1727   :  { %3114 = vmatmul.mubr.msk.bf16.vlgmr.msra.gmra.mrb[40].mxu0 %vm314_vm1, %v1901_v37 }
0x1728   :  { %3413 = vmatmul.mubr.msk.bf16.vlgmr.msra.gmra.mrb[36].mxu1 %vm429_vm2, %v1824_v25  ;;  %3417 = vmatpush3.bf16.msra.mxu0 %v4424_v20 }
0x1729   :  { %3418 = vmatprep.subr.bf16.mxu0 %v3891_v44  ;;  %2061 = vmatpush1.bf16.msra.mxu1 %v4340_v57 }
0x172a   :  { %2062 = vmatprep.subr.bf16.mxu1 %v4346_v0  ;;  %2092 = vmatprep.mubr.bf16.mxu1 %v3889_v1 }
0x172b   :  { %3428 = vmatprep.mubr.msk.bf16.mxu0 %vm3892_vm0, %v3891_v44 }
0x172c   :  { %3419 = vmatpush3.bf16.msra.mxu0 %v4436_v49 }
0x172d   :  { %3420 = vmatprep.subr.bf16.mxu0 %v3891_v44  ;;  %2063 = vmatpush1.bf16.msra.mxu1 %v4357_v45 }
0x172e   :  { %2064 = vmatprep.subr.bf16.mxu1 %v4363_v27 }
0x1730   :  { %3421 = vmatpush3.bf16.msra.mxu0 %v4445_v40 }
0x1731   :  { %3422 = vmatprep.subr.bf16.mxu0 %v3891_v44  ;;  %2065 = vmatpush1.bf16.msra.mxu1 %v4371_v46 }
0x1732   :  { %2066 = vmatprep.subr.bf16.mxu1 %v4377_v60  ;;  %v112_v21 = vpop.permute.xlu1 %111 }
0x1733   :  { %v179_v42 = vmul.f32 %v3997_v17, %v112_v21  ;;  %v178_v26 = vmul.f32 %v4010_v32, %v112_v21 }
0x1734   :  { %3423 = vmatpush3.bf16.msra.mxu0 %v4454_v41 }
0x1735   :  { %3424 = vmatprep.subr.bf16.mxu0 %v3891_v44  ;;  %2067 = vmatpush1.bf16.msra.mxu1 %v4385_v47  ;;  %v229_v34 = vadd.f32 %v4002_v22, %v179_v42  ;;  %v228_v61 = vadd.f32 %v4014_v35, %v178_v26 }
0x1736   :  { %3432 = vmatprep.subr.bf16.mxu1 %v3891_v44 }
0x1738   :  { %3425 = vmatpush3.bf16.msra.mxu0 %v4463_v53 }
0x1739   :  { %3426 = vmatprep.subr.bf16.mxu0 %v3891_v44 }
0x173c   :  { %3427 = vmatpush3.bf16.msra.mxu0 %v4470_v24 }
0x173d   :  { %2215 = vmatprep.subr.bf16.mxu0 %v4304_v2 }
0x17fa   :  { %v1939_v14 = vpop.f32.mrb[40].mxu0 }
0x17fb   :  { %v1862_v55 = vpop.f32.mrb[36].mxu1  ;;  %v1941_v48 = vpop.f32.mrb[41].mxu0  ;;  %v1946_v7 = vadd.f32 %v1939_v14, %v228_v61 }
0x17fc   :  { %v1863_v28 = vadd.f32 %v1862_v55, %v4098_v15  ;;  %v3414_v36 = vpop.f32.mrb[37].mxu1  ;;  %v1943_v38 = vpop.f32.mrb[42].mxu0  ;;  %v1947_v51 = vadd.f32 %v1941_v48, %v229_v34 }
0x17fd   :  { %v1865_v39 = vpop.f32.mrb[38].mxu1  ;;  %v1944_v50 = vpop.f32.mrb[43].mxu0  ;;  %v3115_v4 = vmul.f32 -1.442695, %v1946_v7  ;;  %v54_v36 = vld [vmem:[%s5111_s0 + $0x58] sm:$0xff] }
0x17fe   :  { %3732 = vtanh.f32 %v1863_v28  ;;  %v3415_v31 = vpop.f32.mrb[39].mxu1  ;;  %v3113_v62 = vmul.f32 -1.442695, %v1863_v28  ;;  %v3116_v38 = vmul.f32 -1.442695, %v1947_v51 }
0x17ff   :  { %3734 = vtanh.f32 %v1947_v51 }
0x1800   :  { %3736 = vpow2.f32 %v3113_v62 }
0x1801   :  { %3738 = vpow2.f32 %v3115_v4 }
0x1808   :  { %v3733_v56 = vpop.eup %3732 }
0x1809   :  { %1877 = vrot.lane.b32.xlu0 %v3733_v56, %s3893_s24  ;;  %v3735_v2 = vpop.eup %3734 }
0x180a   :  { %1963 = vrot.lane.b32.xlu1 %v3735_v2, %s3890_s9  ;;  %v3737_v12 = vpop.eup %3736 }
0x180b   :  { %v1871_v19 = vadd.f32 1.0, %v3737_v12  ;;  %v3739_v9 = vpop.eup %3738 }
0x180c   :  { %v1954_v54 = vadd.f32 1.0, %v3739_v9 }
0x180d   :  { %3740 = vrcp.f32 %v1871_v19 }
0x180e   :  { %3742 = vrcp.f32 %v1954_v54 }
0x1817   :  { %v3741_v59 = vpop.eup %3740 }
0x1818   :  { %v3743_v8 = vpop.eup %3742  ;;  %v1875_v21 = vmul.f32 %v3741_v59, %v4586_v58 }
0x1819   :  { %v1961_v55 = vmul.f32 %v3743_v8, %v4590_v33 }
0x187b   :  { %v1878_v16 = vpop.permute.xlu0 %1877 }
0x187c   :  { %v1880_v5 = vmul.f32 %v3741_v59, %v1878_v16  ;;  %v1964_v37 = vpop.permute.xlu1 %1963 }
0x187d   :  { %v1966_v25 = vmul.f32 %v3743_v8, %v1964_v37 }
0x187e   :  { %1882 = vrot.lane.b32.xlu0 %v1880_v5, %s3893_s24 }
0x187f   :  { %1968 = vrot.lane.b32.xlu1 %v1966_v25, %s3890_s9 }
0x18f0   :  { %v1883_v42 = vpop.permute.xlu0 %1882 }
0x18f1   :  { %v4637_v14 = vadd.f32 %v1883_v42, %v1875_v21  ;;  %v1969_v48 = vpop.permute.xlu1 %1968 }
0x18f2   :  { %v4641_v28 = vadd.f32 %v1969_v48, %v1961_v55 }
0x18f3   :  { %3744 = vtanh.f32 %v4637_v14 }
0x18f4   :  { %3746 = vtanh.f32 %v4641_v28 }
0x18f5   :  { %3748 = vpow2.f32 %v3116_v38 }
0x18fd   :  { %v3745_v34 = vpop.eup %3744 }
0x18fe   :  { %1888 = vrot.lane.b32.xlu0 %v3745_v34, %s3893_s24  ;;  %v3747_v58 = vpop.eup %3746 }
0x18ff   :  { %1974 = vrot.lane.b32.xlu1 %v3747_v58, %s3890_s9  ;;  %v3749_v33 = vpop.eup %3748 }
0x1900   :  { %v1955_v39 = vadd.f32 1.0, %v3749_v33 }
0x1902   :  { %116 = vperm.xlu0 %3520, %v54_v36   ;;  %3750 = vrcp.f32 %v1955_v39 }
0x190c   :  { %v3751_v56 = vpop.eup %3750 }
0x1970   :  { %v1889_v50 = vpop.permute.xlu0 %1888 }
0x1971   :  { %v4649_v31 = vmul.f32 %v3741_v59, %v1889_v50  ;;  %v1975_v2 = vpop.permute.xlu1 %1974 }
0x1972   :  { %v1977_v26 = vmul.f32 %v3751_v56, %v1975_v2 }
0x1974   :  { %v2056_v61 = vpack.c.bf16 %v1977_v26, %v1977_v26  ;;  %v1978_v7 = vsel %vm314_vm1, %v1977_v26, %v4649_v31 }
0x1975   :  { %v1979_v62 = vpack.c.bf16 %v1978_v7, %v1978_v7 }
0x1976   :  { %3119 = vmatmul.mubr.msk.bf16.vlgmr.msra.gmra.mrb[40].mxu1 %vm314_vm1, %v2056_v61 }
0x1977   :  { %3429 = vmatmul.mubr.msk.bf16.vlgmr.msra.gmra.mrb[44].mxu0 %vm429_vm2, %v1979_v62  ;;  %3433 = vmatpush3.bf16.msra.mxu1 %v4424_v20 }
0x1978   :  { %3434 = vmatprep.subr.bf16.mxu1 %v3891_v44  ;;  %2216 = vmatpush1.bf16.msra.mxu0 %v4340_v57  ;;  %v4680_v57 = vld [vmem:[%s5110_s1 + $0x4] ss:$8 sps:$4 sm:$0xff]  }
0x1979   :  { %2217 = vmatprep.subr.bf16.mxu0 %v4346_v0  ;;  %2247 = vmatprep.mubr.bf16.mxu0 %v3889_v1 }
0x197a   :  { %3444 = vmatprep.mubr.msk.bf16.mxu1 %vm3892_vm0, %v3891_v44 }
0x197b   :  { %3435 = vmatpush3.bf16.msra.mxu1 %v4436_v49 }
0x197c   :  { %3436 = vmatprep.subr.bf16.mxu1 %v3891_v44  ;;  %2218 = vmatpush1.bf16.msra.mxu0 %v4357_v45 }
0x197d   :  { %2219 = vmatprep.subr.bf16.mxu0 %v4363_v27 }
0x197f   :  { %3437 = vmatpush3.bf16.msra.mxu1 %v4445_v40 }
0x1980   :  { %3438 = vmatprep.subr.bf16.mxu1 %v3891_v44  ;;  %2220 = vmatpush1.bf16.msra.mxu0 %v4371_v46 }
0x1981   :  { %2221 = vmatprep.subr.bf16.mxu0 %v4377_v60  ;;  %v117_v0 = vpop.permute.xlu0 %116 }
0x1982   :  { %v181_v45 = vmul.f32 %v3997_v17, %v117_v0  ;;  %v180_v8 = vmul.f32 %v4010_v32, %v117_v0 }
0x1983   :  { %3439 = vmatpush3.bf16.msra.mxu1 %v4454_v41 }
0x1984   :  { %3440 = vmatprep.subr.bf16.mxu1 %v3891_v44  ;;  %2222 = vmatpush1.bf16.msra.mxu0 %v4385_v47  ;;  %v231_v51 = vadd.f32 %v4002_v22, %v181_v45  ;;  %v230_v37 = vadd.f32 %v4014_v35, %v180_v8  ;;  %v4739_v8 = vld [vmem:[%s5110_s1 + $0x24] ss:$8 sps:$4 sm:$0xff]  }
0x1985   :  { %3448 = vmatprep.subr.bf16.mxu0 %v3891_v44 }
0x1987   :  { %3441 = vmatpush3.bf16.msra.mxu1 %v4463_v53 }
0x1988   :  { %3442 = vmatprep.subr.bf16.mxu1 %v3891_v44 }
0x198b   :  { %3443 = vmatpush3.bf16.msra.mxu1 %v4470_v24 }
0x198c   :  { %2370 = vmatprep.subr.bf16.mxu1 %v4680_v57 }
0x1a49   :  { %v2094_v27 = vpop.f32.mrb[40].mxu1 }
0x1a4a   :  { %v2017_v46 = vpop.f32.mrb[44].mxu0  ;;  %v2096_v60 = vpop.f32.mrb[41].mxu1  ;;  %v2101_v25 = vadd.f32 %v2094_v27, %v230_v37  ;;  %v55_v27 = vld [vmem:[%s5111_s0 + $0x60] sm:$0xff]  ;;  %v4753_v37 = vld [vmem:[%s5110_s1 + $0x34] ss:$8 sps:$4 sm:$0xff]  }
0x1a4b   :  { %v2018_v47 = vadd.f32 %v2017_v46, %v4098_v15  ;;  %v3430_v4 = vpop.f32.mrb[45].mxu0  ;;  %v2098_v12 = vpop.f32.mrb[42].mxu1  ;;  %v2102_v54 = vadd.f32 %v2096_v60, %v231_v51 }
0x1a4c   :  { %v2020_v19 = vpop.f32.mrb[46].mxu0  ;;  %v2099_v9 = vpop.f32.mrb[43].mxu1  ;;  %v3120_v42 = vmul.f32 -1.442695, %v2101_v25 }
0x1a4d   :  { %3752 = vtanh.f32 %v2018_v47  ;;  %v3431_v59 = vpop.f32.mrb[47].mxu0  ;;  %v3118_v21 = vmul.f32 -1.442695, %v2018_v47  ;;  %v3121_v46 = vmul.f32 -1.442695, %v2102_v54 }
0x1a4e   :  { %3754 = vtanh.f32 %v2102_v54  ;;  %v4716_v54 = vld [vmem:[%s5110_s1] ss:$8 sps:$4 sm:$0xff]  }
0x1a4f   :  { %3756 = vpow2.f32 %v3118_v21 }
0x1a50   :  { %3758 = vpow2.f32 %v3120_v42 }
0x1a57   :  { %v3753_v16 = vpop.eup %3752 }
0x1a58   :  { %2032 = vrot.lane.b32.xlu1 %v3753_v16, %s3893_s24  ;;  %v3755_v5 = vpop.eup %3754 }
0x1a59   :  { %2118 = vrot.lane.b32.xlu0 %v3755_v5, %s3890_s9  ;;  %v3757_v55 = vpop.eup %3756  ;;  %v4722_v5 = vld [vmem:[%s5110_s1 + $0x14] ss:$8 sps:$4 sm:$0xff]  }
0x1a5a   :  { %v2026_v48 = vadd.f32 1.0, %v3757_v55  ;;  %v3759_v34 = vpop.eup %3758 }
0x1a5b   :  { %v2109_v36 = vadd.f32 1.0, %v3759_v34 }
0x1a5c   :  { %3760 = vrcp.f32 %v2026_v48 }
0x1a5d   :  { %3762 = vrcp.f32 %v2109_v36 }
0x1a66   :  { %v3761_v58 = vpop.eup %3760 }
0x1a67   :  { %v3763_v39 = vpop.eup %3762  ;;  %v2030_v2 = vmul.f32 %v3761_v58, %v4637_v14 }
0x1a68   :  { %v2116_v7 = vmul.f32 %v3763_v39, %v4641_v28 }
0x1aca   :  { %v2033_v38 = vpop.permute.xlu1 %2032 }
0x1acb   :  { %v2035_v33 = vmul.f32 %v3761_v58, %v2033_v38  ;;  %v2119_v50 = vpop.permute.xlu0 %2118 }
0x1acc   :  { %v2121_v56 = vmul.f32 %v3763_v39, %v2119_v50 }
0x1acd   :  { %2037 = vrot.lane.b32.xlu1 %v2035_v33, %s3893_s24 }
0x1ace   :  { %2123 = vrot.lane.b32.xlu0 %v2121_v56, %s3890_s9 }
0x1b3f   :  { %v2038_v26 = vpop.permute.xlu1 %2037 }
0x1b40   :  { %v4693_v61 = vadd.f32 %v2038_v26, %v2030_v2  ;;  %v2124_v62 = vpop.permute.xlu0 %2123 }
0x1b41   :  { %v4697_v0 = vadd.f32 %v2124_v62, %v2116_v7 }
0x1b42   :  { %3764 = vtanh.f32 %v4693_v61 }
0x1b43   :  { %3766 = vtanh.f32 %v4697_v0 }
0x1b44   :  { %3768 = vpow2.f32 %v3121_v46 }
0x1b4c   :  { %v3765_v45 = vpop.eup %3764 }
0x1b4d   :  { %2043 = vrot.lane.b32.xlu1 %v3765_v45, %s3893_s24  ;;  %v3767_v14 = vpop.eup %3766 }
0x1b4e   :  { %2129 = vrot.lane.b32.xlu0 %v3767_v14, %s3890_s9  ;;  %v3769_v60 = vpop.eup %3768 }
0x1b4f   :  { %v2110_v28 = vadd.f32 1.0, %v3769_v60 }
0x1b51   :  { %121 = vperm.xlu1 %3521, %v55_v27   ;;  %3770 = vrcp.f32 %v2110_v28 }
0x1b5b   :  { %v3771_v4 = vpop.eup %3770 }
0x1bbf   :  { %v2044_v47 = vpop.permute.xlu1 %2043 }
0x1bc0   :  { %v4705_v51 = vmul.f32 %v3761_v58, %v2044_v47  ;;  %v2130_v12 = vpop.permute.xlu0 %2129 }
0x1bc1   :  { %v2132_v19 = vmul.f32 %v3771_v4, %v2130_v12 }
0x1bc3   :  { %v2133_v9 = vsel %vm314_vm1, %v2132_v19, %v4705_v51  ;;  %v2211_v59 = vpack.c.bf16 %v2132_v19, %v2132_v19 }
0x1bc4   :  { %v2134_v16 = vpack.c.bf16 %v2133_v9, %v2133_v9 }
0x1bc5   :  { %3124 = vmatmul.mubr.msk.bf16.vlgmr.msra.gmra.mrb[48].mxu0 %vm314_vm1, %v2211_v59 }
0x1bc6   :  { %3445 = vmatmul.mubr.msk.bf16.vlgmr.msra.gmra.mrb[44].mxu1 %vm429_vm2, %v2134_v16  ;;  %3449 = vmatpush3.bf16.msra.mxu0 %v4424_v20  ;;  %v4733_v20 = vld [vmem:[%s5110_s1 + $0x10] ss:$8 sps:$4 sm:$0xff]  }
0x1bc7   :  { %3450 = vmatprep.subr.bf16.mxu0 %v3891_v44  ;;  %2371 = vmatpush1.bf16.msra.mxu1 %v4716_v54 }
0x1bc8   :  { %2372 = vmatprep.subr.bf16.mxu1 %v4722_v5  ;;  %2402 = vmatprep.mubr.bf16.mxu1 %v3889_v1 }
0x1bc9   :  { %3460 = vmatprep.mubr.msk.bf16.mxu0 %vm3892_vm0, %v3891_v44 }
0x1bca   :  { %3451 = vmatpush3.bf16.msra.mxu0 %v4436_v49  ;;  %v4747_v49 = vld [vmem:[%s5110_s1 + $0x20] ss:$8 sps:$4 sm:$0xff]  }
0x1bcb   :  { %3452 = vmatprep.subr.bf16.mxu0 %v3891_v44  ;;  %2373 = vmatpush1.bf16.msra.mxu1 %v4733_v20 }
0x1bcc   :  { %2374 = vmatprep.subr.bf16.mxu1 %v4739_v8 }
0x1bce   :  { %3453 = vmatpush3.bf16.msra.mxu0 %v4445_v40  ;;  %v4761_v40 = vld [vmem:[%s5110_s1 + $0x30] ss:$8 sps:$4 sm:$0xff]  }
0x1bcf   :  { %3454 = vmatprep.subr.bf16.mxu0 %v3891_v44  ;;  %2375 = vmatpush1.bf16.msra.mxu1 %v4747_v49 }
0x1bd0   :  { %2376 = vmatprep.subr.bf16.mxu1 %v4753_v37 }
0x1bd2   :  { %3455 = vmatpush3.bf16.msra.mxu0 %v4454_v41  ;;  %v122_v41 = vpop.permute.xlu1 %121 }
0x1bd3   :  { %3456 = vmatprep.subr.bf16.mxu0 %v3891_v44  ;;  %2377 = vmatpush1.bf16.msra.mxu1 %v4761_v40  ;;  %v183_v25 = vmul.f32 %v3997_v17, %v122_v41  ;;  %v182_v56 = vmul.f32 %v4010_v32, %v122_v41 }
0x1bd4   :  { %3464 = vmatprep.subr.bf16.mxu1 %v3891_v44 }
0x1bd5   :  { %v233_v34 = vadd.f32 %v4002_v22, %v183_v25  ;;  %v232_v2 = vadd.f32 %v4014_v35, %v182_v56 }
0x1bd6   :  { %3457 = vmatpush3.bf16.msra.mxu0 %v4463_v53 }
0x1bd7   :  { %3458 = vmatprep.subr.bf16.mxu0 %v3891_v44 }
0x1bda   :  { %3459 = vmatpush3.bf16.msra.mxu0 %v4470_v24 }
0x1bdb   :  { %2525 = vmatprep.subr.bf16.mxu0 %v4680_v57 }
0x1c98   :  { %v2249_v21 = vpop.f32.mrb[48].mxu0 }
0x1c99   :  { %v2172_v42 = vpop.f32.mrb[44].mxu1  ;;  %v2251_v55 = vpop.f32.mrb[49].mxu0  ;;  %v2256_v26 = vadd.f32 %v2249_v21, %v232_v2  ;;  %v4812_v2 = vld [vmem:[%s5113_s2 + $0x8] sm:$0xff]  }
0x1c9a   :  { %v2173_v48 = vadd.f32 %v2172_v42, %v4098_v15  ;;  %v3446_v36 = vpop.f32.mrb[45].mxu1  ;;  %v2253_v58 = vpop.f32.mrb[50].mxu0  ;;  %v2257_v33 = vadd.f32 %v2251_v55, %v233_v34  ;;  %v56_v55 = vld [vmem:[%s5111_s0 + $0x68] sm:$0xff] }
0x1c9b   :  { %v2175_v38 = vpop.f32.mrb[46].mxu1  ;;  %v2254_v53 = vpop.f32.mrb[51].mxu0  ;;  %v3125_v62 = vmul.f32 -1.442695, %v2256_v26  ;;  %v4821_v26 = vld [vmem:[%s5113_s2 + $0x10] sm:$0xff]  }
0x1c9c   :  { %3772 = vtanh.f32 %v2173_v48  ;;  %v3447_v39 = vpop.f32.mrb[47].mxu1  ;;  %v3123_v7 = vmul.f32 -1.442695, %v2173_v48  ;;  %v3126_v48 = vmul.f32 -1.442695, %v2257_v33 }
0x1c9d   :  { %3774 = vtanh.f32 %v2257_v33  ;;  %v4800_v33 = vld [vmem:[%s5113_s2] sm:$0xff]  }
0x1c9e   :  { %3776 = vpow2.f32 %v3123_v7  ;;  %v4830_v7 = vld [vmem:[%s5113_s2 + $0x18] sm:$0xff]  }
0x1c9f   :  { %3778 = vpow2.f32 %v3125_v62  ;;  %v4839_v62 = vld [vmem:[%s5113_s2 + $0x20] sm:$0xff]  }
0x1ca6   :  { %v3773_v24 = vpop.eup %3772 }
0x1ca7   :  { %2187 = vrot.lane.b32.xlu0 %v3773_v24, %s3893_s24  ;;  %v3775_v50 = vpop.eup %3774 }
0x1ca8   :  { %2273 = vrot.lane.b32.xlu1 %v3775_v50, %s3890_s9  ;;  %v3777_v45 = vpop.eup %3776 }
0x1ca9   :  { %v2181_v27 = vadd.f32 1.0, %v3777_v45  ;;  %v3779_v14 = vpop.eup %3778  ;;  %v4846_v45 = vld [vmem:[%s5113_s2 + $0x28] sm:$0xff]  }
0x1caa   :  { %v2264_v46 = vadd.f32 1.0, %v3779_v14 }
0x1cab   :  { %3780 = vrcp.f32 %v2181_v27 }
0x1cac   :  { %3782 = vrcp.f32 %v2264_v46 }
0x1cb5   :  { %v3781_v60 = vpop.eup %3780 }
0x1cb6   :  { %v3783_v4 = vpop.eup %3782  ;;  %v2185_v9 = vmul.f32 %v3781_v60, %v4693_v61 }
0x1cb7   :  { %v2271_v41 = vmul.f32 %v3783_v4, %v4697_v0 }
0x1d19   :  { %v2188_v28 = vpop.permute.xlu0 %2187 }
0x1d1a   :  { %v2190_v47 = vmul.f32 %v3781_v60, %v2188_v28  ;;  %v2274_v12 = vpop.permute.xlu1 %2273 }
0x1d1b   :  { %v2276_v19 = vmul.f32 %v3783_v4, %v2274_v12 }
0x1d1c   :  { %2192 = vrot.lane.b32.xlu0 %v2190_v47, %s3893_s24 }
0x1d1d   :  { %2278 = vrot.lane.b32.xlu1 %v2276_v19, %s3890_s9 }
0x1d8e   :  { %v2193_v59 = vpop.permute.xlu0 %2192 }
0x1d8f   :  { %v4779_v16 = vadd.f32 %v2193_v59, %v2185_v9  ;;  %v2279_v25 = vpop.permute.xlu1 %2278 }
0x1d90   :  { %v4783_v21 = vadd.f32 %v2279_v25, %v2271_v41 }
0x1d91   :  { %3784 = vtanh.f32 %v4779_v16 }
0x1d92   :  { %3786 = vtanh.f32 %v4783_v21 }
0x1d93   :  { %3788 = vpow2.f32 %v3126_v48 }
0x1d9b   :  { %v3785_v42 = vpop.eup %3784 }
0x1d9c   :  { %2198 = vrot.lane.b32.xlu0 %v3785_v42, %s3893_s24  ;;  %v3787_v61 = vpop.eup %3786 }
0x1d9d   :  { %2284 = vrot.lane.b32.xlu1 %v3787_v61, %s3890_s9  ;;  %v3789_v0 = vpop.eup %3788 }
0x1d9e   :  { %v2265_v34 = vadd.f32 1.0, %v3789_v0 }
0x1da0   :  { %126 = vperm.xlu0 %3520, %v56_v55   ;;  %3790 = vrcp.f32 %v2265_v34 }
0x1daa   :  { %v3791_v38 = vpop.eup %3790 }
0x1e0e   :  { %v2199_v36 = vpop.permute.xlu0 %2198 }
0x1e0f   :  { %v4791_v58 = vmul.f32 %v3781_v60, %v2199_v36  ;;  %v2285_v53 = vpop.permute.xlu1 %2284 }
0x1e10   :  { %v2287_v39 = vmul.f32 %v3791_v38, %v2285_v53 }
0x1e12   :  { %v2366_v24 = vpack.c.bf16 %v2287_v39, %v2287_v39  ;;  %v2288_v50 = vsel %vm314_vm1, %v2287_v39, %v4791_v58 }
0x1e13   :  { %v2289_v56 = vpack.c.bf16 %v2288_v50, %v2288_v50 }
0x1e14   :  { %3129 = vmatmul.mubr.msk.bf16.vlgmr.msra.gmra.mrb[48].mxu1 %vm314_vm1, %v2366_v24 }
0x1e15   :  { %3461 = vmatmul.mubr.msk.bf16.vlgmr.msra.gmra.mrb[52].mxu0 %vm429_vm2, %v2289_v56  ;;  %3465 = vmatpush3.bf16.msra.mxu1 %v4800_v33 }
0x1e16   :  { %3466 = vmatprep.subr.bf16.mxu1 %v3891_v44  ;;  %2526 = vmatpush1.bf16.msra.mxu0 %v4716_v54 }
0x1e17   :  { %2527 = vmatprep.subr.bf16.mxu0 %v4722_v5  ;;  %2557 = vmatprep.mubr.bf16.mxu0 %v3889_v1 }
0x1e18   :  { %3476 = vmatprep.mubr.msk.bf16.mxu1 %vm3892_vm0, %v3891_v44 }
0x1e19   :  { %3467 = vmatpush3.bf16.msra.mxu1 %v4812_v2 }
0x1e1a   :  { %3468 = vmatprep.subr.bf16.mxu1 %v3891_v44  ;;  %2528 = vmatpush1.bf16.msra.mxu0 %v4733_v20 }
0x1e1b   :  { %2529 = vmatprep.subr.bf16.mxu0 %v4739_v8 }
0x1e1d   :  { %3469 = vmatpush3.bf16.msra.mxu1 %v4821_v26 }
0x1e1e   :  { %3470 = vmatprep.subr.bf16.mxu1 %v3891_v44  ;;  %2530 = vmatpush1.bf16.msra.mxu0 %v4747_v49 }
0x1e1f   :  { %2531 = vmatprep.subr.bf16.mxu0 %v4753_v37  ;;  %v127_v27 = vpop.permute.xlu0 %126 }
0x1e20   :  { %v185_v14 = vmul.f32 %v3997_v17, %v127_v27  ;;  %v184_v55 = vmul.f32 %v4010_v32, %v127_v27 }
0x1e21   :  { %3471 = vmatpush3.bf16.msra.mxu1 %v4830_v7 }
0x1e22   :  { %3472 = vmatprep.subr.bf16.mxu1 %v3891_v44  ;;  %2532 = vmatpush1.bf16.msra.mxu0 %v4761_v40  ;;  %v235_v4 = vadd.f32 %v4002_v22, %v185_v14  ;;  %v234_v61 = vadd.f32 %v4014_v35, %v184_v55 }
0x1e23   :  { %3480 = vmatprep.subr.bf16.mxu0 %v3891_v44 }
0x1e25   :  { %3473 = vmatpush3.bf16.msra.mxu1 %v4839_v62 }
0x1e26   :  { %3474 = vmatprep.subr.bf16.mxu1 %v3891_v44 }
0x1e29   :  { %3475 = vmatpush3.bf16.msra.mxu1 %v4846_v45 }
0x1e2a   :  { %2680 = vmatprep.subr.bf16.mxu1 %v4680_v57 }
0x1ee7   :  { %v2404_v46 = vpop.f32.mrb[48].mxu1 }
0x1ee8   :  { %v2327_v60 = vpop.f32.mrb[52].mxu0  ;;  %v2406_v28 = vpop.f32.mrb[49].mxu1  ;;  %v2411_v48 = vadd.f32 %v2404_v46, %v234_v61 }
0x1ee9   :  { %v2328_v47 = vadd.f32 %v2327_v60, %v4098_v15  ;;  %v3462_v12 = vpop.f32.mrb[53].mxu0  ;;  %v2408_v19 = vpop.f32.mrb[50].mxu1  ;;  %v2412_v41 = vadd.f32 %v2406_v28, %v235_v4 }
0x1eea   :  { %v2330_v9 = vpop.f32.mrb[54].mxu0  ;;  %v2409_v59 = vpop.f32.mrb[51].mxu1  ;;  %v3130_v34 = vmul.f32 -1.442695, %v2411_v48 }
0x1eeb   :  { %3792 = vtanh.f32 %v2328_v47  ;;  %v3463_v25 = vpop.f32.mrb[55].mxu0  ;;  %v3128_v0 = vmul.f32 -1.442695, %v2328_v47  ;;  %v57_v59 = vld [vmem:[%s5111_s0 + $0x70] sm:$0xff] }
0x1eec   :  { %3794 = vtanh.f32 %v2412_v41  ;;  %v3131_v25 = vmul.f32 -1.442695, %v2412_v41 }
0x1eed   :  { %3796 = vpow2.f32 %v3128_v0 }
0x1eee   :  { %3798 = vpow2.f32 %v3130_v34 }
0x1ef5   :  { %v3793_v42 = vpop.eup %3792 }
0x1ef6   :  { %2342 = vrot.lane.b32.xlu1 %v3793_v42, %s3893_s24  ;;  %v3795_v57 = vpop.eup %3794 }
0x1ef7   :  { %2428 = vrot.lane.b32.xlu0 %v3795_v57, %s3890_s9  ;;  %v3797_v36 = vpop.eup %3796 }
0x1ef8   :  { %v2336_v38 = vadd.f32 1.0, %v3797_v36  ;;  %v3799_v53 = vpop.eup %3798 }
0x1ef9   :  { %v2419_v39 = vadd.f32 1.0, %v3799_v53 }
0x1efa   :  { %3800 = vrcp.f32 %v2336_v38 }
0x1efb   :  { %3802 = vrcp.f32 %v2419_v39 }
0x1f04   :  { %v3801_v24 = vpop.eup %3800 }
0x1f05   :  { %v3803_v14 = vpop.eup %3802  ;;  %v2340_v46 = vmul.f32 %v3801_v24, %v4779_v16 }
0x1f06   :  { %v2426_v4 = vmul.f32 %v3803_v14, %v4783_v21 }
0x1f68   :  { %v2343_v50 = vpop.permute.xlu1 %2342 }
0x1f69   :  { %v2345_v56 = vmul.f32 %v3801_v24, %v2343_v50  ;;  %v2429_v27 = vpop.permute.xlu0 %2428 }
0x1f6a   :  { %v2431_v60 = vmul.f32 %v3803_v14, %v2429_v27 }
0x1f6b   :  { %2347 = vrot.lane.b32.xlu1 %v2345_v56, %s3893_s24 }
0x1f6c   :  { %2433 = vrot.lane.b32.xlu0 %v2431_v60, %s3890_s9 }
0x1fdd   :  { %v2348_v28 = vpop.permute.xlu1 %2347 }
0x1fde   :  { %v4860_v47 = vadd.f32 %v2348_v28, %v2340_v46  ;;  %v2434_v12 = vpop.permute.xlu0 %2433 }
0x1fdf   :  { %v4864_v19 = vadd.f32 %v2434_v12, %v2426_v4 }
0x1fe0   :  { %3804 = vtanh.f32 %v4860_v47 }
0x1fe1   :  { %3806 = vtanh.f32 %v4864_v19 }
0x1fe2   :  { %3808 = vpow2.f32 %v3131_v25 }
0x1fea   :  { %v3805_v9 = vpop.eup %3804 }
0x1feb   :  { %2353 = vrot.lane.b32.xlu1 %v3805_v9, %s3893_s24  ;;  %v3807_v16 = vpop.eup %3806 }
0x1fec   :  { %2439 = vrot.lane.b32.xlu0 %v3807_v16, %s3890_s9  ;;  %v3809_v42 = vpop.eup %3808 }
0x1fed   :  { %v2420_v21 = vadd.f32 1.0, %v3809_v42 }
0x1fef   :  { %131 = vperm.xlu1 %3521, %v57_v59   ;;  %3810 = vrcp.f32 %v2420_v21 }
0x1ff9   :  { %v3811_v61 = vpop.eup %3810 }
0x205d   :  { %v2354_v57 = vpop.permute.xlu1 %2353 }
0x205e   :  { %v4872_v55 = vmul.f32 %v3801_v24, %v2354_v57  ;;  %v2440_v48 = vpop.permute.xlu0 %2439 }
0x205f   :  { %v2442_v0 = vmul.f32 %v3811_v61, %v2440_v48 }
0x2061   :  { %v2443_v34 = vsel %vm314_vm1, %v2442_v0, %v4872_v55  ;;  %v2521_v36 = vpack.c.bf16 %v2442_v0, %v2442_v0 }
0x2062   :  { %v2444_v38 = vpack.c.bf16 %v2443_v34, %v2443_v34 }
0x2063   :  { %3134 = vmatmul.mubr.msk.bf16.vlgmr.msra.gmra.mrb[56].mxu0 %vm314_vm1, %v2521_v36 }
0x2064   :  { %3477 = vmatmul.mubr.msk.bf16.vlgmr.msra.gmra.mrb[52].mxu1 %vm429_vm2, %v2444_v38  ;;  %3481 = vmatpush3.bf16.msra.mxu0 %v4800_v33 }
0x2065   :  { %3482 = vmatprep.subr.bf16.mxu0 %v3891_v44  ;;  %2681 = vmatpush1.bf16.msra.mxu1 %v4716_v54 }
0x2066   :  { %2682 = vmatprep.subr.bf16.mxu1 %v4722_v5  ;;  %2712 = vmatprep.mubr.bf16.mxu1 %v3889_v1 }
0x2067   :  { %3492 = vmatprep.mubr.msk.bf16.mxu0 %vm3892_vm0, %v3891_v44 }
0x2068   :  { %3483 = vmatpush3.bf16.msra.mxu0 %v4812_v2 }
0x2069   :  { %3484 = vmatprep.subr.bf16.mxu0 %v3891_v44  ;;  %2683 = vmatpush1.bf16.msra.mxu1 %v4733_v20 }
0x206a   :  { %2684 = vmatprep.subr.bf16.mxu1 %v4739_v8 }
0x206c   :  { %3485 = vmatpush3.bf16.msra.mxu0 %v4821_v26 }
0x206d   :  { %3486 = vmatprep.subr.bf16.mxu0 %v3891_v44  ;;  %2685 = vmatpush1.bf16.msra.mxu1 %v4747_v49 }
0x206e   :  { %2686 = vmatprep.subr.bf16.mxu1 %v4753_v37  ;;  %v132_v1 = vpop.permute.xlu1 %131 }
0x206f   :  { %v187_v54 = vmul.f32 %v3997_v17, %v132_v1  ;;  %v186_v27 = vmul.f32 %v4010_v32, %v132_v1 }
0x2070   :  { %3487 = vmatpush3.bf16.msra.mxu0 %v4830_v7 }
0x2071   :  { %3488 = vmatprep.subr.bf16.mxu0 %v3891_v44  ;;  %2687 = vmatpush1.bf16.msra.mxu1 %v4761_v40  ;;  %v237_v37 = vadd.f32 %v4002_v22, %v187_v54  ;;  %v236_v60 = vadd.f32 %v4014_v35, %v186_v27 }
0x2072   :  { %3496 = vmatprep.subr.bf16.mxu1 %v3891_v44 }
0x2074   :  { %3489 = vmatpush3.bf16.msra.mxu0 %v4839_v62 }
0x2075   :  { %3490 = vmatprep.subr.bf16.mxu0 %v3891_v44 }
0x2078   :  { %3491 = vmatpush3.bf16.msra.mxu0 %v4846_v45 }
0x2136   :  { %v2559_v5 = vpop.f32.mrb[56].mxu0 }
0x2137   :  { %v2482_v20 = vpop.f32.mrb[52].mxu1  ;;  %v2561_v8 = vpop.f32.mrb[57].mxu0  ;;  %v2566_v46 = vadd.f32 %v2559_v5, %v236_v60 }
0x2138   :  { %v2483_v49 = vadd.f32 %v2482_v20, %v4098_v15  ;;  %v3478_v41 = vpop.f32.mrb[53].mxu1  ;;  %v2563_v40 = vpop.f32.mrb[58].mxu0  ;;  %v2567_v24 = vadd.f32 %v2561_v8, %v237_v37  ;;  %v58_v20 = vld [vmem:[%s5111_s0 + $0x78] sm:$0xff] }
0x2139   :  { %v2485_v53 = vpop.f32.mrb[54].mxu1  ;;  %v2564_v39 = vpop.f32.mrb[59].mxu0  ;;  %v3135_v4 = vmul.f32 -1.442695, %v2566_v46 }
0x213a   :  { %3812 = vtanh.f32 %v2483_v49  ;;  %v3479_v50 = vpop.f32.mrb[55].mxu1  ;;  %v3133_v28 = vmul.f32 -1.442695, %v2483_v49  ;;  %v3136_v8 = vmul.f32 -1.442695, %v2567_v24 }
0x213b   :  { %3814 = vtanh.f32 %v2567_v24 }
0x213c   :  { %3816 = vpow2.f32 %v3133_v28 }
0x213d   :  { %3818 = vpow2.f32 %v3135_v4 }
0x2144   :  { %v3813_v56 = vpop.eup %3812 }
0x2145   :  { %2497 = vrot.lane.b32.xlu0 %v3813_v56, %s3893_s24  ;;  %v3815_v14 = vpop.eup %3814 }
0x2146   :  { %2583 = vrot.lane.b32.xlu1 %v3815_v14, %s3890_s9  ;;  %v3817_v12 = vpop.eup %3816 }
0x2147   :  { %v2491_v9 = vadd.f32 1.0, %v3817_v12  ;;  %v3819_v59 = vpop.eup %3818 }
0x2148   :  { %v2574_v16 = vadd.f32 1.0, %v3819_v59 }
0x2149   :  { %3820 = vrcp.f32 %v2491_v9 }
0x214a   :  { %3822 = vrcp.f32 %v2574_v16 }
0x2153   :  { %v3821_v25 = vpop.eup %3820 }
0x2154   :  { %v3823_v57 = vpop.eup %3822  ;;  %v2495_v0 = vmul.f32 %v3821_v25, %v4860_v47 }
0x2155   :  { %v2581_v38 = vmul.f32 %v3823_v57, %v4864_v19 }
0x21b7   :  { %v2498_v42 = vpop.permute.xlu0 %2497 }
0x21b8   :  { %v2500_v21 = vmul.f32 %v3821_v25, %v2498_v42  ;;  %v2584_v61 = vpop.permute.xlu1 %2583 }
0x21b9   :  { %v2586_v48 = vmul.f32 %v3823_v57, %v2584_v61 }
0x21ba   :  { %2502 = vrot.lane.b32.xlu0 %v2500_v21, %s3893_s24 }
0x21bb   :  { %2588 = vrot.lane.b32.xlu1 %v2586_v48, %s3890_s9 }
0x222c   :  { %v2503_v34 = vpop.permute.xlu0 %2502 }
0x222d   :  { %v4910_v36 = vadd.f32 %v2503_v34, %v2495_v0  ;;  %v2589_v1 = vpop.permute.xlu1 %2588 }
0x222e   :  { %v4914_v54 = vadd.f32 %v2589_v1, %v2581_v38 }
0x222f   :  { %3824 = vtanh.f32 %v4910_v36 }
0x2230   :  { %3826 = vtanh.f32 %v4914_v54 }
0x2231   :  { %3828 = vpow2.f32 %v3136_v8 }
0x2239   :  { %v3825_v5 = vpop.eup %3824 }
0x223a   :  { %2508 = vrot.lane.b32.xlu0 %v3825_v5, %s3893_s24  ;;  %v3827_v47 = vpop.eup %3826 }
0x223b   :  { %2594 = vrot.lane.b32.xlu1 %v3827_v47, %s3890_s9  ;;  %v3829_v19 = vpop.eup %3828 }
0x223c   :  { %v2575_v49 = vadd.f32 1.0, %v3829_v19 }
0x223e   :  { %136 = vperm.xlu0 %3520, %v58_v20   ;;  %3830 = vrcp.f32 %v2575_v49 }
0x2248   :  { %v3831_v40 = vpop.eup %3830 }
0x22ac   :  { %v2509_v37 = vpop.permute.xlu0 %2508 }
0x22ad   :  { %v4922_v41 = vmul.f32 %v3821_v25, %v2509_v37  ;;  %v2595_v53 = vpop.permute.xlu1 %2594 }
0x22ae   :  { %v2597_v39 = vmul.f32 %v3831_v40, %v2595_v53 }
0x22b0   :  { %v2676_v50 = vpack.c.bf16 %v2597_v39, %v2597_v39  ;;  %v2598_v56 = vsel %vm314_vm1, %v2597_v39, %v4922_v41 }
0x22b1   :  { %v2599_v14 = vpack.c.bf16 %v2598_v56, %v2598_v56 }
0x22b2   :  { %3139 = vmatmul.mubr.msk.bf16.vlgmr.msra.gmra.mrb[56].mxu1 %vm314_vm1, %v2676_v50 }
0x22b3   :  { %3493 = vmatmul.mubr.msk.bf16.vlgmr.msra.gmra.mrb[60].mxu0 %vm429_vm2, %v2599_v14  ;;  %3497 = vmatpush3.bf16.msra.mxu1 %v4800_v33 }
0x22b4   :  { %3498 = vmatprep.subr.bf16.mxu1 %v3891_v44  ;;  %3508 = vmatprep.mubr.msk.bf16.mxu1 %vm3892_vm0, %v3891_v44 }
0x22b7   :  { %3499 = vmatpush3.bf16.msra.mxu1 %v4812_v2 }
0x22b8   :  { %3500 = vmatprep.subr.bf16.mxu1 %v3891_v44 }
0x22bb   :  { %3501 = vmatpush3.bf16.msra.mxu1 %v4821_v26 }
0x22bc   :  { %3502 = vmatprep.subr.bf16.mxu1 %v3891_v44 }
0x22bd   :  { %v137_v33 = vpop.permute.xlu0 %136 }
0x22be   :  { %v189_v24 = vmul.f32 %v3997_v17, %v137_v33  ;;  %v188_v17 = vmul.f32 %v4010_v32, %v137_v33 }
0x22bf   :  { %3503 = vmatpush3.bf16.msra.mxu1 %v4830_v7 }
0x22c0   :  { %3504 = vmatprep.subr.bf16.mxu1 %v3891_v44  ;;  %v239_v46 = vadd.f32 %v4002_v22, %v189_v24  ;;  %v238_v59 = vadd.f32 %v4014_v35, %v188_v17 }
0x22c3   :  { %3505 = vmatpush3.bf16.msra.mxu1 %v4839_v62 }
0x22c4   :  { %3506 = vmatprep.subr.bf16.mxu1 %v3891_v44 }
0x22c7   :  { %3507 = vmatpush3.bf16.msra.mxu1 %v4846_v45 }
0x2385   :  { %v2714_v2 = vpop.f32.mrb[56].mxu1 }
0x2386   :  { %v2637_v27 = vpop.f32.mrb[60].mxu0  ;;  %v2716_v60 = vpop.f32.mrb[57].mxu1  ;;  %v2721_v16 = vadd.f32 %v2714_v2, %v238_v59 }
0x2387   :  { %v2638_v26 = vadd.f32 %v2637_v27, %v4098_v15  ;;  %v3494_v28 = vpop.f32.mrb[61].mxu0  ;;  %v2718_v7 = vpop.f32.mrb[58].mxu1  ;;  %v2722_v62 = vadd.f32 %v2716_v60, %v239_v46 }
0x2388   :  { %v2640_v4 = vpop.f32.mrb[62].mxu0  ;;  %v2719_v12 = vpop.f32.mrb[59].mxu1  ;;  %v3140_v25 = vmul.f32 -1.442695, %v2721_v16 }
0x2389   :  { %3832 = vtanh.f32 %v2638_v26  ;;  %v3495_v9 = vpop.f32.mrb[63].mxu0  ;;  %v3138_v22 = vmul.f32 -1.442695, %v2638_v26  ;;  %v3141_v40 = vmul.f32 -1.442695, %v2722_v62 }
0x238a   :  { %3834 = vtanh.f32 %v2722_v62 }
0x238b   :  { %3836 = vpow2.f32 %v3138_v22 }
0x238c   :  { %3838 = vpow2.f32 %v3140_v25 }
0x2393   :  { %v3833_v44 = vpop.eup %3832 }
0x2394   :  { %2652 = vrot.lane.b32.xlu1 %v3833_v44, %s3893_s24  ;;  %v3835_v45 = vpop.eup %3834 }
0x2395   :  { %2738 = vrot.lane.b32.xlu0 %v3835_v45, %s3890_s9  ;;  %v3837_v42 = vpop.eup %3836 }
0x2396   :  { %v2646_v21 = vadd.f32 1.0, %v3837_v42  ;;  %v3839_v57 = vpop.eup %3838 }
0x2397   :  { %v2729_v61 = vadd.f32 1.0, %v3839_v57 }
0x2398   :  { %3840 = vrcp.f32 %v2646_v21 }
0x2399   :  { %3842 = vrcp.f32 %v2729_v61 }
0x23a2   :  { %v3841_v48 = vpop.eup %3840 }
0x23a3   :  { %v3843_v38 = vpop.eup %3842  ;;  %v2650_v35 = vmul.f32 %v3841_v48, %v4910_v36 }
0x23a4   :  { %v2736_v47 = vmul.f32 %v3843_v38, %v4914_v54 }
0x2406   :  { %v2653_v0 = vpop.permute.xlu1 %2652 }
0x2407   :  { %v2655_v34 = vmul.f32 %v3841_v48, %v2653_v0  ;;  %v2739_v32 = vpop.permute.xlu0 %2738 }
0x2408   :  { %v2741_v1 = vmul.f32 %v3843_v38, %v2739_v32 }
0x2409   :  { %2657 = vrot.lane.b32.xlu1 %v2655_v34, %s3893_s24 }
0x240a   :  { %2743 = vrot.lane.b32.xlu0 %v2741_v1, %s3890_s9 }
0x247b   :  { %v2658_v5 = vpop.permute.xlu1 %2657 }
0x247c   :  { %v2660_v20 = vadd.f32 %v2658_v5, %v2650_v35  ;;  %v2744_v8 = vpop.permute.xlu0 %2743 }
0x247d   :  { %v2746_v19 = vadd.f32 %v2744_v8, %v2736_v47 }
0x247e   :  { %3844 = vtanh.f32 %v2660_v20 }
0x247f   :  { %3846 = vtanh.f32 %v2746_v19 }
0x2480   :  { %3848 = vpow2.f32 %v3141_v40 }
0x2488   :  { %v3845_v49 = vpop.eup %3844 }
0x2489   :  { %2663 = vrot.lane.b32.xlu1 %v3845_v49, %s3893_s24  ;;  %v3847_v37 = vpop.eup %3846 }
0x248a   :  { %2749 = vrot.lane.b32.xlu0 %v3847_v37, %s3890_s9  ;;  %v3849_v53 = vpop.eup %3848 }
0x248b   :  { %v2730_v39 = vadd.f32 1.0, %v3849_v53 }
0x248d   :  { %3850 = vrcp.f32 %v2730_v39 }
0x2497   :  { %v3851_v56 = vpop.eup %3850 }
0x24fb   :  { %v2664_v36 = vpop.permute.xlu1 %2663 }
0x24fc   :  { %v4954_v50 = vmul.f32 %v3841_v48, %v2664_v36  ;;  %v2750_v14 = vpop.permute.xlu0 %2749 }
0x24fd   :  { %v2752_v54 = vmul.f32 %v3851_v56, %v2750_v14 }
0x24ff   :  { %v2753_v33 = vsel %vm314_vm1, %v2752_v54, %v4954_v50 }
0x2500   :  { %v2754_v24 = vpack.c.bf16 %v2753_v33, %v2753_v33 }
0x2502   :  { %3509 = vmatmul.mubr.msk.bf16.vlgmr.msra.gmra.mrb[60].mxu1 %vm429_vm2, %v2754_v24 }
0x25d5   :  { %v2792_v2 = vpop.f32.mrb[60].mxu1 }
0x25d6   :  { %v2793_v27 = vadd.f32 %v2792_v2, %v4098_v15  ;;  %v3510_v60 = vpop.f32.mrb[61].mxu1  ;;  %v2916_v15 = vsub.s32 6, %v3986_v11 }
0x25d7   :  { %v2795_v26 = vpop.f32.mrb[62].mxu1 }
0x25d8   :  { %3852 = vtanh.f32 %v2793_v27  ;;  %v3511_v46 = vpop.f32.mrb[63].mxu1  ;;  %v3143_v7 = vmul.f32 -1.442695, %v2793_v27 }
0x25da   :  { %3854 = vpow2.f32 %v3143_v7 }
0x25e2   :  { %v3853_v28 = vpop.eup %3852 }
0x25e3   :  { %2807 = vrot.lane.b32.xlu1 %v3853_v28, %s3893_s24 }
0x25e4   :  { %v3855_v4 = vpop.eup %3854 }
0x25e5   :  { %v2801_v12 = vadd.f32 1.0, %v3855_v4 }
0x25e7   :  { %3856 = vrcp.f32 %v2801_v12 }
0x25f1   :  { %v3857_v62 = vpop.eup %3856 }
0x2655   :  { %v2808_v9 = vpop.permute.xlu1 %2807 }
0x2656   :  { %v2810_v44 = vmul.f32 %v3857_v62, %v2808_v9 }
0x2658   :  { %2812 = vrot.lane.b32.xlu0 %v2810_v44, %s3893_s24 }
0x265c   :  { %498 = vrot.lane.b32.xlu0 %v4120_v18, %s3890_s9  ;;  %v3888_v18 = vld [vmem:[%s5112_s3] sm:$0x77] }
0x2660   :  { %1738 = vrot.lane.b32.xlu0 %v4598_v23, %s3890_s9 }
0x2664   :  { %808 = vrot.lane.b32.xlu0 %v4222_v43, %s3890_s9  ;;  %v2917_v43 = vrot.slane %v3888_v18, %v2916_v15 }
0x2668   :  { %963 = vrot.lane.b32.xlu0 %v4273_v52, %s3890_s9  ;;  %v2805_v52 = vmul.f32 %v3857_v62, %v2660_v20 }
0x266c   :  { %1118 = vrot.lane.b32.xlu0 %v4329_v3, %s3890_s9 }
0x2670   :  { %1273 = vrot.lane.b32.xlu0 %v4415_v29, %s3890_s9 }
0x2674   :  { %1428 = vrot.lane.b32.xlu0 %v4496_v63, %s3890_s9 }
0x2678   :  { %1583 = vrot.lane.b32.xlu0 %v4547_v30, %s3890_s9 }
0x267c   :  { %2918 = vrot.lane.b32.xlu0 %v2917_v43, %s3894_s11 }
0x26ca   :  { %v2813_v3 = vpop.permute.xlu0 %2812 }
0x26cb   :  { %v2815_v23 = vadd.f32 %v2813_v3, %v2805_v52 }
0x26cd   :  { %3858 = vtanh.f32 %v2815_v23 }
0x26ce   :  { %v499_v29 = vpop.permute.xlu0 %498 }
0x26cf   :  { %502 = vst.msk [vmem:[#allocation3] sm:$0xff] %vm501_vm3, %v499_v29 }
0x26d2   :  { %v1739_v63 = vpop.permute.xlu0 %1738 }
0x26d3   :  { %1742 = vst.msk [vmem:[#allocation3 + $0x40] sm:$0xff] %vm501_vm3, %v1739_v63 }
0x26d6   :  { %v809_v45 = vpop.permute.xlu0 %808 }
0x26d7   :  { %v3859_v30 = vpop.eup %3858  ;;  %812 = vst.msk [vmem:[#allocation3 + $0x10] sm:$0xff] %vm501_vm3, %v809_v45 }
0x26d8   :  { %2818 = vrot.lane.b32.xlu1 %v3859_v30, %s3893_s24 }
0x26da   :  { %v964_v17 = vpop.permute.xlu0 %963  ;;  %v2836_v61 = vld [vmem:[#allocation3 + $0x40] sm:$0xff] }
0x26db   :  { %967 = vst.msk [vmem:[#allocation3 + $0x18] sm:$0xff] %vm501_vm3, %v964_v17 }
0x26dc   :  { %653 = vrot.lane.b32.xlu1 %v4171_v13, %s3890_s9 }
0x26de   :  { %v1119_v59 = vpop.permute.xlu0 %1118  ;;  %v2830_v32 = vld [vmem:[#allocation3 + $0x10] sm:$0xff] }
0x26df   :  { %1122 = vst.msk [vmem:[#allocation3 + $0x20] sm:$0xff] %vm501_vm3, %v1119_v59 }
0x26e0   :  { %1893 = vrot.lane.b32.xlu1 %v4649_v31, %s3890_s9 }
0x26e2   :  { %v1274_v16 = vpop.permute.xlu0 %1273  ;;  %v2831_v5 = vld [vmem:[#allocation3 + $0x18] sm:$0xff] }
0x26e3   :  { %1277 = vst.msk [vmem:[#allocation3 + $0x28] sm:$0xff] %vm501_vm3, %v1274_v16 }
0x26e4   :  { %2048 = vrot.lane.b32.xlu1 %v4705_v51, %s3890_s9 }
0x26e6   :  { %v1429_v22 = vpop.permute.xlu0 %1428  ;;  %v2832_v19 = vld [vmem:[#allocation3 + $0x20] sm:$0xff] }
0x26e7   :  { %1432 = vst.msk [vmem:[#allocation3 + $0x30] sm:$0xff] %vm501_vm3, %v1429_v22 }
0x26e8   :  { %2203 = vrot.lane.b32.xlu1 %v4791_v58, %s3890_s9  ;;  %v2844_v58 = vrot.slane %v3888_v18, 4 }
0x26ea   :  { %v1584_v25 = vpop.permute.xlu0 %1583  ;;  %v2833_v53 = vld [vmem:[#allocation3 + $0x28] sm:$0xff] }
0x26eb   :  { %1587 = vst.msk [vmem:[#allocation3 + $0x38] sm:$0xff] %vm501_vm3, %v1584_v25 }
0x26ec   :  { %2358 = vrot.lane.b32.xlu1 %v4872_v55, %s3890_s9  ;;  %v5010_v55 = vrot.slane %v2844_v58, %v41_v6  ;;  %v2956_v58 = vand.u32 127, %v39_v10 }
0x26ee   :  { %v2919_v13 = vpop.permute.xlu0 %2918  ;;  %v2858_v34 = vmul.f32 %v5010_v55, %v2836_v61  ;;  %v2852_v6 = vmul.f32 %v5010_v55, %v2830_v32  ;;  %v2853_v47 = vmul.f32 %v5010_v55, %v2831_v5  ;;  %v2854_v37 = vmul.f32 %v5010_v55, %v2832_v19  ;;  %v2834_v56 = vld [vmem:[#allocation3 + $0x30] sm:$0xff] }
0x26ef   :  { %3512 = vpush %v2919_v13  ;;  %v2855_v36 = vmul.f32 %v5010_v55, %v2833_v53  ;;  %v2856_v33 = vmul.f32 %v5010_v55, %v2834_v56 }
0x26f0   :  { %2513 = vrot.lane.b32.xlu1 %v4922_v41, %s3890_s9  ;;  %v2890_v1 = vsel %vm501_vm3, %v2858_v34, 0.0  ;;  %v2872_v20 = vsel %vm501_vm3, %v2852_v6, 0.0  ;;  %v2875_v49 = vsel %vm501_vm3, %v2853_v47, 0.0  ;;  %v2878_v39 = vsel %vm501_vm3, %v2854_v37, 0.0 }
0x26f1   :  { %v2881_v54 = vsel %vm501_vm3, %v2855_v36, 0.0  ;;  %v2884_v26 = vsel %vm501_vm3, %v2856_v33, 0.0 }
0x26f2   :  { %v2835_v2 = vld [vmem:[#allocation3 + $0x38] sm:$0xff] }
0x26f3   :  { %v2857_v46 = vmul.f32 %v5010_v55, %v2835_v2 }
0x26f4   :  { %2668 = vrot.lane.b32.xlu1 %v4954_v50, %s3890_s9  ;;  %v2828_v50 = vld [vmem:[#allocation3] sm:$0xff] }
0x26f5   :  { %v2850_v14 = vmul.f32 %v5010_v55, %v2828_v50  ;;  %v2887_v12 = vsel %vm501_vm3, %v2857_v46, 0.0 }
0x26f7   :  { %v2866_v27 = vsel %vm501_vm3, %v2850_v14, 0.0 }
0x2720   :  { %s3513_s3 = spop %3512 }
0x274a   :  { %v2819_v31 = vpop.permute.xlu1 %2818 }
0x274b   :  { %v2821_v51 = vmul.f32 %v3857_v62, %v2819_v31 }
0x274d   :  { %2823 = vrot.lane.b32.xlu1 %v2821_v51, %s3890_s9 }
0x274e   :  { %v654_v42 = vpop.permute.xlu1 %653 }
0x274f   :  { %657 = vst.msk [vmem:[#allocation3 + $0x8] sm:$0xff] %vm501_vm3, %v654_v42 }
0x2752   :  { %v1894_v21 = vpop.permute.xlu1 %1893 }
0x2753   :  { %1897 = vst.msk [vmem:[#allocation3 + $0x48] sm:$0xff] %vm501_vm3, %v1894_v21  ;;  %v5051_v21 = vstv %s3513_s3 }
0x2756   :  { %v2049_v41 = vpop.permute.xlu1 %2048  ;;  %v2829_v57 = vld [vmem:[#allocation3 + $0x8] sm:$0xff] }
0x2757   :  { %2052 = vst.msk [vmem:[#allocation3 + $0x50] sm:$0xff] %vm501_vm3, %v2049_v41  ;;  %v2851_v48 = vmul.f32 %v5010_v55, %v2829_v57  ;;  %v5054_v57 = vsub.s32 %v2956_v58, %v3986_v11 }
0x2759   :  { %v2869_v0 = vsel %vm501_vm3, %v2851_v48, 0.0 }
0x275a   :  { %2870 = vadd.xlane.f32.xlu0 %v2869_v0  ;;  %v2204_v38 = vpop.permute.xlu1 %2203  ;;  %v2837_v24 = vld [vmem:[#allocation3 + $0x48] sm:$0xff] }
0x275b   :  { %2207 = vst.msk [vmem:[#allocation3 + $0x58] sm:$0xff] %vm501_vm3, %v2204_v38  ;;  %v2859_v60 = vmul.f32 %v5010_v55, %v2837_v24 }
0x275d   :  { %v2893_v7 = vsel %vm501_vm3, %v2859_v60, 0.0 }
0x275e   :  { %2891 = vadd.xlane.f32.xlu0 %v2890_v1  ;;  %v2359_v35 = vpop.permute.xlu1 %2358  ;;  %v2838_v28 = vld [vmem:[#allocation3 + $0x50] sm:$0xff] }
0x275f   :  { %2362 = vst.msk [vmem:[#allocation3 + $0x60] sm:$0xff] %vm501_vm3, %v2359_v35  ;;  %v2860_v4 = vmul.f32 %v5010_v55, %v2838_v28 }
0x2761   :  { %v2896_v9 = vsel %vm501_vm3, %v2860_v4, 0.0 }
0x2762   :  { %2873 = vadd.xlane.f32.xlu0 %v2872_v20  ;;  %v2514_v8 = vpop.permute.xlu1 %2513  ;;  %v2839_v62 = vld [vmem:[#allocation3 + $0x58] sm:$0xff] }
0x2763   :  { %2517 = vst.msk [vmem:[#allocation3 + $0x68] sm:$0xff] %vm501_vm3, %v2514_v8  ;;  %v2861_v44 = vmul.f32 %v5010_v55, %v2839_v62 }
0x2765   :  { %v2899_v18 = vsel %vm501_vm3, %v2861_v44, 0.0 }
0x2766   :  { %2876 = vadd.xlane.f32.xlu0 %v2875_v49  ;;  %v2669_v40 = vpop.permute.xlu1 %2668  ;;  %v2840_v15 = vld [vmem:[#allocation3 + $0x60] sm:$0xff] }
0x2767   :  { %2672 = vst.msk [vmem:[#allocation3 + $0x70] sm:$0xff] %vm501_vm3, %v2669_v40  ;;  %v2862_v43 = vmul.f32 %v5010_v55, %v2840_v15 }
0x2769   :  { %v2902_v3 = vsel %vm501_vm3, %v2862_v43, 0.0 }
0x276a   :  { %2879 = vadd.xlane.f32.xlu0 %v2878_v39  ;;  %v2841_v52 = vld [vmem:[#allocation3 + $0x68] sm:$0xff] }
0x276b   :  { %v2863_v23 = vmul.f32 %v5010_v55, %v2841_v52 }
0x276d   :  { %v2905_v63 = vsel %vm501_vm3, %v2863_v23, 0.0 }
0x276e   :  { %2882 = vadd.xlane.f32.xlu0 %v2881_v54  ;;  %v2842_v29 = vld [vmem:[#allocation3 + $0x70] sm:$0xff] }
0x276f   :  { %v2864_v45 = vmul.f32 %v5010_v55, %v2842_v29 }
0x2771   :  { %2867 = vadd.xlane.f32.xlu1 %v2866_v27  ;;  %v2908_v30 = vsel %vm501_vm3, %v2864_v45, 0.0 }
0x2772   :  { %2885 = vadd.xlane.f32.xlu0 %v2884_v26 }
0x2775   :  { %2894 = vadd.xlane.f32.xlu1 %v2893_v7 }
0x2776   :  { %2888 = vadd.xlane.f32.xlu0 %v2887_v12 }
0x2779   :  { %2897 = vadd.xlane.f32.xlu1 %v2896_v9 }
0x277d   :  { %2900 = vadd.xlane.f32.xlu1 %v2899_v18 }
0x2781   :  { %2903 = vadd.xlane.f32.xlu1 %v2902_v3 }
0x2785   :  { %2906 = vadd.xlane.f32.xlu1 %v2905_v63 }
0x2789   :  { %2909 = vadd.xlane.f32.xlu1 %v2908_v30 }
0x27bf   :  { %v2824_v17 = vpop.permute.xlu1 %2823 }
0x27c0   :  { %2827 = vst.msk [vmem:[#allocation3 + $0x78] sm:$0xff] %vm501_vm3, %v2824_v17 }
0x27c7   :  { %v2843_v59 = vld [vmem:[#allocation3 + $0x78] sm:$0xff] }
0x27c8   :  { %v2865_v16 = vmul.f32 %v5010_v55, %v2843_v59 }
0x27ca   :  { %v2911_v22 = vsel %vm501_vm3, %v2865_v16, 0.0 }
0x27cb   :  { %2912 = vadd.xlane.f32.xlu1 %v2911_v22 }
0x27e7   :  { %v2871_v25 = vpop.xlane.xlu0 %2870 }
0x27e8   :  { %v2924_v61 = vadd.f32 %v5051_v21, %v2871_v25 }
0x27ea   :  { %v2964_v10 = vrot.slane %v2924_v61, %v5054_v57 }
0x27eb   :  { %v2892_v13 = vpop.xlane.xlu0 %2891 }
0x27ec   :  { %v2931_v1 = vadd.f32 %v5051_v21, %v2892_v13 }
0x27ee   :  { %v2992_v39 = vrot.slane %v2931_v1, %v5054_v57 }
0x27ef   :  { %v2874_v31 = vpop.xlane.xlu0 %2873 }
0x27f0   :  { %v2925_v55 = vadd.f32 %v5051_v21, %v2874_v31 }
0x27f2   :  { %v2968_v35 = vrot.slane %v2925_v55, %v5054_v57 }
0x27f3   :  { %v2877_v51 = vpop.xlane.xlu0 %2876 }
0x27f4   :  { %v2926_v0 = vadd.f32 %v5051_v21, %v2877_v51 }
0x27f6   :  { %v2972_v47 = vrot.slane %v2926_v0, %v5054_v57 }
0x27f7   :  { %v2880_v42 = vpop.xlane.xlu0 %2879 }
0x27f8   :  { %v2927_v32 = vadd.f32 %v5051_v21, %v2880_v42 }
0x27fa   :  { %v2976_v37 = vrot.slane %v2927_v32, %v5054_v57 }
0x27fb   :  { %v2883_v41 = vpop.xlane.xlu0 %2882 }
0x27fc   :  { %v2928_v11 = vadd.f32 %v5051_v21, %v2883_v41 }
0x27fe   :  { %v2868_v48 = vpop.xlane.xlu1 %2867  ;;  %v2980_v36 = vrot.slane %v2928_v11, %v5054_v57 }
0x27ff   :  { %v2923_v34 = vadd.f32 %v5051_v21, %v2868_v48  ;;  %v2886_v38 = vpop.xlane.xlu0 %2885 }
0x2800   :  { %v2929_v5 = vadd.f32 %v5051_v21, %v2886_v38 }
0x2801   :  { %v2960_v6 = vrot.slane %v2923_v34, %v5054_v57 }
0x2802   :  { %v2895_v20 = vpop.xlane.xlu1 %2894  ;;  %v2984_v14 = vrot.slane %v2929_v5, %v5054_v57 }
0x2803   :  { %v3022_v8 = vsel %vm3021_vm4, %v2964_v10, %v2960_v6  ;;  %v2932_v19 = vadd.f32 %v5051_v21, %v2895_v20  ;;  %v2889_v49 = vpop.xlane.xlu0 %2888 }
0x2804   :  { %v3024_v40 = vsel %vm3023_vm5, %v2968_v35, %v3022_v8  ;;  %v2930_v53 = vadd.f32 %v5051_v21, %v2889_v49 }
0x2805   :  { %v3026_v50 = vsel %vm3025_vm6, %v2972_v47, %v3024_v40  ;;  %v2996_v56 = vrot.slane %v2932_v19, %v5054_v57 }
0x2806   :  { %v3028_v54 = vsel %vm3027_vm7, %v2976_v37, %v3026_v50  ;;  %v2988_v33 = vrot.slane %v2930_v53, %v5054_v57  ;;  %v2898_v24 = vpop.xlane.xlu1 %2897 }
0x2807   :  { %v3030_v2 = vsel %vm3029_vm8, %v2980_v36, %v3028_v54  ;;  %v3035_v27 = vsel %vm3021_vm4, %v2996_v56, %v2992_v39  ;;  %v2933_v60 = vadd.f32 %v5051_v21, %v2898_v24 }
0x2808   :  { %v3032_v26 = vsel %vm3031_vm9, %v2984_v14, %v3030_v2 }
0x2809   :  { %v3034_v46 = vsel %vm3033_vm10, %v2988_v33, %v3032_v26  ;;  %v3000_v28 = vrot.slane %v2933_v60, %v5054_v57 }
0x280a   :  { %3045 = vst.msk [vmem:[%s5114_s4] sm:$0xff] %vm3044_vm11, %v3034_v46  ;;  %v2901_v7 = vpop.xlane.xlu1 %2900 }
0x280b   :  { %v3036_v4 = vsel %vm3023_vm5, %v3000_v28, %v3035_v27  ;;  %v2934_v12 = vadd.f32 %v5051_v21, %v2901_v7 }
0x280d   :  { %v3004_v62 = vrot.slane %v2934_v12, %v5054_v57 }
0x280e   :  { %v2904_v9 = vpop.xlane.xlu1 %2903 }
0x280f   :  { %v3037_v44 = vsel %vm3025_vm6, %v3004_v62, %v3036_v4  ;;  %v2935_v15 = vadd.f32 %v5051_v21, %v2904_v9 }
0x2811   :  { %v3008_v18 = vrot.slane %v2935_v15, %v5054_v57 }
0x2812   :  { %v2907_v43 = vpop.xlane.xlu1 %2906 }
0x2813   :  { %v3038_v52 = vsel %vm3027_vm7, %v3008_v18, %v3037_v44  ;;  %v2936_v3 = vadd.f32 %v5051_v21, %v2907_v43 }
0x2815   :  { %v3012_v23 = vrot.slane %v2936_v3, %v5054_v57 }
0x2816   :  { %v2910_v29 = vpop.xlane.xlu1 %2909 }
0x2817   :  { %v3039_v63 = vsel %vm3029_vm8, %v3012_v23, %v3038_v52  ;;  %v2937_v45 = vadd.f32 %v5051_v21, %v2910_v29 }
0x2819   :  { %v3016_v30 = vrot.slane %v2937_v45, %v5054_v57 }
0x281b   :  { %v3040_v17 = vsel %vm3031_vm9, %v3016_v30, %v3039_v63 }
0x2858   :  { %v2913_v59 = vpop.xlane.xlu1 %2912 }
0x2859   :  { %v2938_v16 = vadd.f32 %v5051_v21, %v2913_v59 }
0x285b   :  { %v3020_v22 = vrot.slane %v2938_v16, %v5054_v57 }
0x285d   :  { %v3041_v25 = vsel %vm3033_vm10, %v3020_v22, %v3040_v17 }
0x285e   :  { %3046 = vst.msk [vmem:[%s5114_s4 + $0x8] sm:$0xff] %vm3044_vm11, %v3041_v25 }

</bundles_post_ra>
